<compile_context>
chip_gen: v7x
topology: tpu7x:2x2x1
jax: 0.10.0
libtpu: 0.0.40
codegen_flags: <defaults>
</compile_context>

<pallas_src>
import functools

import numpy as np
import jax
import jax.numpy as jnp
from jax import lax
from jax.experimental import pallas as pl
from jax.experimental.pallas import tpu as pltpu


# (name, out_channels, stride) — synthetic "pretrained" CNN with a layer4 stage.
_LAYER_DEFS = (
    ("stem",   8,  1),
    ("layer1", 8,  1),
    ("layer2", 16, 2),
    ("layer3", 16, 1),
    ("layer4", 32, 2),   # the hooked layer
)
_NUM_LAYERS = len(_LAYER_DEFS)
_BATCH_TILE = 2          # samples folded into the lane axis per grid step


def _layer_geoms(h, w):
    """Spatial geometry at which each layer's stride-1 conv runs, plus final (h4, w4)."""
    geoms = []
    for _, _, stride in _LAYER_DEFS:
        geoms.append((h, w))
        if stride == 2:
            assert h % 2 == 0 and w % 2 == 0
            h, w = h // 2, w // 2
    return geoms, (h, w)


def _subsample_matrix(h, w, bt):
    """Exact 0/1 operator taking the stride-1 conv result (lanes = bt*h*w) to the
    stride-2 output (lanes = bt*(h//2)*(w//2)); block-diagonal over the batch tile."""
    ho, wo = h // 2, w // 2
    m_in, m_out = h * w, ho * wo
    s = np.zeros((bt * m_in, bt * m_out), np.float32)
    for b in range(bt):
        for yo in range(ho):
            for xo in range(wo):
                s[b * m_in + (2 * yo) * w + (2 * xo), b * m_out + yo * wo + xo] = 1.0
    return jnp.asarray(s)


def _pool_matrix(m, bt):
    """Block-diagonal per-sample mean operator (AdaptiveAvgPool2d(1))."""
    p = np.zeros((bt * m, bt), np.float32)
    for b in range(bt):
        p[b * m:(b + 1) * m, b] = 1.0 / m
    return jnp.asarray(p)


# ----------------------------- Pallas kernel ------------------------------ #

def _conv3x3_same(a_bf16, wt_ref, hh, ww, bt):
    """3x3 / stride-1 / padding-1 conv in (C, bt*H*W) layout.

    ONE MXU GEMM applies all nine per-tap weight matrices at once (wt_ref is
    (9*Cout, Cin) bf16); the spatial shift of each tap is an XLU lane-roll of the f32
    result plus a static border mask.  Returns the f32 pre-activation (Cout, bt*H*W)."""
    m = hh * ww
    n = bt * m
    assert m & (m - 1) == 0 and ww & (ww - 1) == 0, "spatial dims must be powers of two"
    cout = wt_ref.shape[0] // 9

    t = jnp.dot(wt_ref[...], a_bf16, preferred_element_type=jnp.float32)  # (9*Cout, n)

    pos = lax.broadcasted_iota(jnp.int32, (1, n), 1)
    loc = pos & (m - 1)        # position within a sample's H*W block
    xin = pos & (ww - 1)       # column within a row

    acc = jnp.zeros((cout, n), jnp.float32)
    for dy in (-1, 0, 1):
        for dx in (-1, 0, 1):
            k = (dy + 1) * 3 + (dx + 1)
            tk = t[k * cout:(k + 1) * cout, :]
            off = dy * ww + dx
            if off != 0:
                # out[:, p] needs t_k[:, p + off]  ->  lane roll (free XLU slot).
                tk = pltpu.roll(tk, shift=(-off) % n, axis=1)
            conds = []
            if dy == -1:
                conds.append(loc >= ww)            # y >= 1
            if dy == 1:
                conds.append(loc < m - ww)         # y <= H-2
            if dx == -1:
                conds.append(xin >= 1)             # x >= 1
            if dx == 1:
                conds.append(xin < ww - 1)         # x <= W-2
            if conds:
                valid = functools.reduce(jnp.logical_and, conds)
                tk = tk * valid.astype(jnp.float32)   # zero the padded border
            acc = acc + tk
    return acc


def _fused_forward_kernel(x_ref, *refs, geoms, strides, batch_tile):
    n_l = _NUM_LAYERS
    wt_refs = refs[:n_l]
    b_refs = refs[n_l:2 * n_l]
    n_sub = sum(1 for s in strides if s == 2)
    sub_refs = refs[2 * n_l:2 * n_l + n_sub]
    pool_ref = refs[2 * n_l + n_sub]
    fcwt_ref = refs[2 * n_l + n_sub + 1]
    fcb_ref = refs[2 * n_l + n_sub + 2]
    logits_ref = refs[2 * n_l + n_sub + 3]
    act_ref = refs[2 * n_l + n_sub + 4]

    h = x_ref[...].astype(jnp.float32)          # (C_in, bt*H*W), channels on sublanes
    sub_i = 0
    for i in range(n_l):
        hh, ww = geoms[i]
        acc = _conv3x3_same(h.astype(jnp.bfloat16), wt_refs[i], hh, ww, batch_tile)
        if strides[i] == 2:
            # exact 0/1 down-sample GEMM (f32, tiny) — stride-2 conv == stride-1 conv
            # evaluated at the even positions.
            acc = jnp.dot(acc, sub_refs[sub_i][...],
                          preferred_element_type=jnp.float32)
            sub_i += 1
        h = jnp.maximum(acc + b_refs[i][...], 0.0)   # f32 bias + ReLU (v5e-safe)

    # `h` is the post-ReLU layer4 activation — what the forward hook captures.
    act_ref[...] = h.astype(act_ref.dtype)

    # AdaptiveAvgPool2d(1) as an exact block-diagonal mean GEMM, then the FC head (f32).
    pooled = jnp.dot(h, pool_ref[...], preferred_element_type=jnp.float32)   # (C4, bt)
    logits = jnp.dot(fcwt_ref[...], pooled,
                     preferred_element_type=jnp.float32) + fcb_ref[...]      # (ncls, bt)
    logits_ref[...] = logits.astype(logits_ref.dtype)


# ------------------------------- wrapper ----------------------------------- #

def init_params(key, c_in=4, num_classes=10, hw=(16, 16), batch_tile=_BATCH_TILE):
    """Deterministic synthetic weights; conv weights bf16 (MXU), biases / FC f32."""
    keys = jax.random.split(key, _NUM_LAYERS + 1)
    conv = []
    cin = c_in
    for (name, cout, _), k in zip(_LAYER_DEFS, keys[:_NUM_LAYERS]):
        k1, k2 = jax.random.split(k)
        w = (jax.random.normal(k1, (9, cin, cout), jnp.float32)
             / np.sqrt(9.0 * cin)).astype(jnp.bfloat16)            # w[k, cin, cout]
        b = jax.random.normal(k2, (cout, 1), jnp.float32) * 0.01
        conv.append((w, b))
        cin = cout
    kf1, kf2 = jax.random.split(keys[-1])
    fc_w = jax.random.normal(kf1, (cin, num_classes), jnp.float32) / np.sqrt(cin)
    fc_b = jax.random.normal(kf2, (num_classes,), jnp.float32) * 0.01

    h, w_sp = hw
    geoms, (h4, w4) = _layer_geoms(h, w_sp)
    subs = [_subsample_matrix(gh, gw, batch_tile)
            for (gh, gw), (_, _, s) in zip(geoms, _LAYER_DEFS) if s == 2]
    pool = _pool_matrix(h4 * w4, batch_tile)

    return {"conv": conv, "fc_w": fc_w, "fc_b": fc_b,
            "subsample": subs, "pool": pool}


def gradcam_forward(params, x_nchw):
    """Equivalent of GradCamModel.forward: returns (out, selected_out); selected_out is
    the layer4 activation the forward hook would have captured (NCHW)."""
    n, c_in, h, w_sp = x_nchw.shape
    bt = params["pool"].shape[1]                       # static batch tile
    geoms, (h4, w4) = _layer_geoms(h, w_sp)
    c4 = _LAYER_DEFS[-1][1]
    num_classes = params["fc_w"].shape[1]
    m0, m4 = h * w_sp, h4 * w4

    # pad batch to a multiple of the batch tile
    n_pad = ((n + bt - 1) // bt) * bt
    if n_pad != n:
        pad = jnp.zeros((n_pad - n, c_in, h, w_sp), x_nchw.dtype)
        x_nchw = jnp.concatenate([x_nchw, pad], axis=0)
    g = n_pad // bt

    # Single boundary layout change: NCHW -> (grid, C, bt*H*W); channels on sublanes,
    # batch x spatial on lanes (lane-dense inside the kernel).
    x_lanes = (x_nchw.reshape(g, bt, c_in, m0)
               .transpose(0, 2, 1, 3)
               .reshape(g, c_in, bt * m0)
               .astype(jnp.float32))

    # kernel-side operand layouts
    conv_wt = [jnp.transpose(wc, (0, 2, 1)).reshape(-1, wc.shape[1])   # (9*Cout, Cin)
               for wc, _ in params["conv"]]
    conv_b = [b for _, b in params["conv"]]                            # (Cout, 1)
    subs = params["subsample"]
    pool = params["pool"]
    fc_wt = params["fc_w"].T                                           # (ncls, C4) f32
    fc_bc = params["fc_b"].reshape(-1, 1)                              # (ncls, 1) f32

    kernel = functools.partial(
        _fused_forward_kernel,
        geoms=tuple(geoms),
        strides=tuple(s for _, _, s in _LAYER_DEFS),
        batch_tile=bt)

    def invariant(a):                      # grid-invariant operand: fetched once
        zeros = (0,) * a.ndim
        return pl.BlockSpec(a.shape, lambda gi: zeros)

    grid_spec = pltpu.PrefetchScalarGridSpec(
        num_scalar_prefetch=0,
        grid=(g,),                         # one batch tile per step; demo => grid=(1,)
        in_specs=(
            [pl.BlockSpec((None, c_in, bt * m0), lambda gi: (gi, 0, 0))]
            + [invariant(a) for a in conv_wt]
            + [invariant(a) for a in conv_b]
            + [invariant(a) for a in subs]
            + [invariant(pool), invariant(fc_wt), invariant(fc_bc)]
        ),
        out_specs=(
            pl.BlockSpec((None, num_classes, bt), lambda gi: (gi, 0, 0)),
            pl.BlockSpec((None, c4, bt * m4), lambda gi: (gi, 0, 0)),
        ),
    )

    logits_t, act_lanes = pl.pallas_call(
        kernel,
        out_shape=(
            jax.ShapeDtypeStruct((g, num_classes, bt), jnp.float32),
            jax.ShapeDtypeStruct((g, c4, bt * m4), jnp.float32),
        ),
        grid_spec=grid_spec,
        compiler_params=pltpu.CompilerParams(
            dimension_semantics=("parallel",),
            vmem_limit_bytes=32 * 1024 * 1024,
        ),
    )(x_lanes, *conv_wt, *conv_b, *subs, pool, fc_wt, fc_bc)

    out = logits_t.transpose(0, 2, 1).reshape(n_pad, num_classes)[:n]
    selected_out = (act_lanes.reshape(g, c4, bt, m4)
                    .transpose(0, 2, 1, 3)
                    .reshape(n_pad, c4, h4, w4)[:n])
    # TODO(synk): activations_hook / get_act_grads capture *backward* gradients of the
    # hooked activation; obtain them with jax.grad of a loss on `out` w.r.t. selected_out.
    return out, selected_out


# ------------------------- pure-JAX reference ------------------------------ #

def reference_forward(params, x_nchw):
    """f32 reference with the same bf16 quantization points as the kernel."""
    h = x_nchw.astype(jnp.float32)
    for (name, cout, stride), (w, b) in zip(_LAYER_DEFS, params["conv"]):
        w_hwio = w.astype(jnp.float32).reshape(3, 3, -1, cout)
        h_q = h.astype(jnp.bfloat16).astype(jnp.float32)
        h = lax.conv_general_dilated(
            h_q, w_hwio, window_strides=(stride, stride),
            padding=((1, 1), (1, 1)),
            dimension_numbers=("NCHW", "HWIO", "NCHW"))
        h = jnp.maximum(h + b.reshape(1, cout, 1, 1), 0.0)
    act = h
    pooled = jnp.mean(h, axis=(2, 3))
    logits = jnp.dot(pooled, params["fc_w"],
                     precision=lax.Precision.HIGHEST) + params["fc_b"][None, :]
    return logits, act


if __name__ == "__main__":
    key = jax.random.PRNGKey(0)
    kx, kp = jax.random.split(key)
    x = jax.random.normal(kx, (2, 4, 16, 16), jnp.float32)   # NCHW, like PyTorch
    params = init_params(kp, c_in=4, num_classes=10, hw=(16, 16))

    out, selected = jax.jit(gradcam_forward)(params, x)
    jax.block_until_ready((out, selected))

    assert out.shape == (2, 10), out.shape
    assert selected.shape == (2, 32, 4, 4), selected.shape

    ref_out, ref_sel = reference_forward(params, x)
    err_out = float(jnp.max(jnp.abs(out - ref_out)))
    err_sel = float(jnp.max(jnp.abs(selected - ref_sel)))
    assert err_out < 2e-2 and err_sel < 2e-2, (err_out, err_sel)

    print("KERNEL_OK")
</pallas_src>

<mosaic_0001>
module attributes {stable_mosaic.version = 11 : i64} {
  func.func @_fused_forward_kernel(%arg0: i32, %arg1: memref<1x4x512xf32, #tpu.memory_space<vmem>>, %arg2: memref<72x4xbf16, #tpu.memory_space<vmem>>, %arg3: memref<72x8xbf16, #tpu.memory_space<vmem>>, %arg4: memref<144x8xbf16, #tpu.memory_space<vmem>>, %arg5: memref<144x16xbf16, #tpu.memory_space<vmem>>, %arg6: memref<288x16xbf16, #tpu.memory_space<vmem>>, %arg7: memref<8x1xf32, #tpu.memory_space<vmem>>, %arg8: memref<8x1xf32, #tpu.memory_space<vmem>>, %arg9: memref<16x1xf32, #tpu.memory_space<vmem>>, %arg10: memref<16x1xf32, #tpu.memory_space<vmem>>, %arg11: memref<32x1xf32, #tpu.memory_space<vmem>>, %arg12: memref<512x128xf32, #tpu.memory_space<vmem>>, %arg13: memref<128x32xf32, #tpu.memory_space<vmem>>, %arg14: memref<32x2xf32, #tpu.memory_space<vmem>>, %arg15: memref<10x32xf32, #tpu.memory_space<vmem>>, %arg16: memref<10x1xf32, #tpu.memory_space<vmem>>, %arg17: memref<1x10x2xf32, #tpu.memory_space<vmem>>, %arg18: memref<1x32x32xf32, #tpu.memory_space<vmem>>) attributes {dimension_semantics = [#tpu.dimension_semantics<parallel>], iteration_bounds = array<i64: 1>, scalar_prefetch = 0 : i64, scratch_operands = 0 : i64, tpu.core_type = #tpu.core_type<tc>, window_params = [{transform_indices = @transform_0, window_bounds = array<i64: 1, 4, 512>}, {pipeline_mode = #tpu.pipeline_mode<synchronous>, transform_indices = @transform_1, window_bounds = array<i64: 72, 4>}, {pipeline_mode = #tpu.pipeline_mode<synchronous>, transform_indices = @transform_2, window_bounds = array<i64: 72, 8>}, {pipeline_mode = #tpu.pipeline_mode<synchronous>, transform_indices = @transform_3, window_bounds = array<i64: 144, 8>}, {pipeline_mode = #tpu.pipeline_mode<synchronous>, transform_indices = @transform_4, window_bounds = array<i64: 144, 16>}, {pipeline_mode = #tpu.pipeline_mode<synchronous>, transform_indices = @transform_5, window_bounds = array<i64: 288, 16>}, {pipeline_mode = #tpu.pipeline_mode<synchronous>, transform_indices = @transform_6, window_bounds = array<i64: 8, 1>}, {pipeline_mode = #tpu.pipeline_mode<synchronous>, transform_indices = @transform_7, window_bounds = array<i64: 8, 1>}, {pipeline_mode = #tpu.pipeline_mode<synchronous>, transform_indices = @transform_8, window_bounds = array<i64: 16, 1>}, {pipeline_mode = #tpu.pipeline_mode<synchronous>, transform_indices = @transform_9, window_bounds = array<i64: 16, 1>}, {pipeline_mode = #tpu.pipeline_mode<synchronous>, transform_indices = @transform_10, window_bounds = array<i64: 32, 1>}, {pipeline_mode = #tpu.pipeline_mode<synchronous>, transform_indices = @transform_11, window_bounds = array<i64: 512, 128>}, {pipeline_mode = #tpu.pipeline_mode<synchronous>, transform_indices = @transform_12, window_bounds = array<i64: 128, 32>}, {pipeline_mode = #tpu.pipeline_mode<synchronous>, transform_indices = @transform_13, window_bounds = array<i64: 32, 2>}, {pipeline_mode = #tpu.pipeline_mode<synchronous>, transform_indices = @transform_14, window_bounds = array<i64: 10, 32>}, {pipeline_mode = #tpu.pipeline_mode<synchronous>, transform_indices = @transform_15, window_bounds = array<i64: 10, 1>}, {transform_indices = @transform_16, window_bounds = array<i64: 1, 10, 2>}, {transform_indices = @transform_17, window_bounds = array<i64: 1, 32, 32>}]} {
    %c0 = arith.constant 0 : index
    %c0_0 = arith.constant 0 : index
    %c0_1 = arith.constant 0 : index
    %0 = vector.load %arg1[%c0, %c0_0, %c0_1] : memref<1x4x512xf32, #tpu.memory_space<vmem>>, vector<1x4x512xf32>
    %1 = vector.shape_cast %0 : vector<1x4x512xf32> to vector<4x512xf32>
    %2 = arith.truncf %1 : vector<4x512xf32> to vector<4x512xbf16>
    %c0_2 = arith.constant 0 : index
    %c0_3 = arith.constant 0 : index
    %3 = vector.load %arg2[%c0_2, %c0_3] : memref<72x4xbf16, #tpu.memory_space<vmem>>, vector<72x4xbf16>
    %cst = arith.constant dense<0.000000e+00> : vector<72x512xf32>
    %4 = tpu.matmul %3, %2, %cst {dimension_numbers = #tpu.dot_dimension_numbers<[1], [0], [0], [1], [0, 0, 1, 1], [], []>} : vector<72x4xbf16>, vector<4x512xbf16>, vector<72x512xf32> -> vector<72x512xf32>
    %5 = tpu.iota {dimensions = array<i32: 1>} : vector<1x512xi32>
    %c255_i32 = arith.constant 255 : i32
    %6 = vector.broadcast %c255_i32 : i32 to vector<1x512xi32>
    %7 = arith.andi %5, %6 : vector<1x512xi32>
    %c15_i32 = arith.constant 15 : i32
    %8 = vector.broadcast %c15_i32 : i32 to vector<1x512xi32>
    %9 = arith.andi %5, %8 : vector<1x512xi32>
    %cst_4 = arith.constant 0.000000e+00 : f32
    %10 = vector.broadcast %cst_4 : f32 to vector<8x512xf32>
    %11 = vector.extract_strided_slice %4 {offsets = [0, 0], sizes = [8, 512], strides = [1, 1]} : vector<72x512xf32> to vector<8x512xf32>
    %c17_i32 = arith.constant 17 : i32
    %12 = tpu.dynamic_rotate %11 by %c17_i32 dim 1 : vector<8x512xf32>, i32 -> vector<8x512xf32>
    %c16_i32 = arith.constant 16 : i32
    %13 = vector.broadcast %c16_i32 : i32 to vector<1x512xi32>
    %14 = arith.cmpi sge, %7, %13 : vector<1x512xi32>
    %c1_i32 = arith.constant 1 : i32
    %15 = vector.broadcast %c1_i32 : i32 to vector<1x512xi32>
    %16 = arith.cmpi sge, %9, %15 : vector<1x512xi32>
    %17 = arith.andi %14, %16 : vector<1x512xi1>
    %18 = arith.extui %17 : vector<1x512xi1> to vector<1x512xi32>
    %19 = arith.sitofp %18 : vector<1x512xi32> to vector<1x512xf32>
    %20 = vector.broadcast %19 : vector<1x512xf32> to vector<8x512xf32>
    %21 = arith.mulf %12, %20 : vector<8x512xf32>
    %22 = arith.addf %10, %21 : vector<8x512xf32>
    %23 = vector.extract_strided_slice %4 {offsets = [8, 0], sizes = [8, 512], strides = [1, 1]} : vector<72x512xf32> to vector<8x512xf32>
    %c16_i32_5 = arith.constant 16 : i32
    %24 = tpu.dynamic_rotate %23 by %c16_i32_5 dim 1 : vector<8x512xf32>, i32 -> vector<8x512xf32>
    %c16_i32_6 = arith.constant 16 : i32
    %25 = vector.broadcast %c16_i32_6 : i32 to vector<1x512xi32>
    %26 = arith.cmpi sge, %7, %25 : vector<1x512xi32>
    %27 = arith.extui %26 : vector<1x512xi1> to vector<1x512xi32>
    %28 = arith.sitofp %27 : vector<1x512xi32> to vector<1x512xf32>
    %29 = vector.broadcast %28 : vector<1x512xf32> to vector<8x512xf32>
    %30 = arith.mulf %24, %29 : vector<8x512xf32>
    %31 = arith.addf %22, %30 : vector<8x512xf32>
    %32 = vector.extract_strided_slice %4 {offsets = [16, 0], sizes = [8, 512], strides = [1, 1]} : vector<72x512xf32> to vector<8x512xf32>
    %c15_i32_7 = arith.constant 15 : i32
    %33 = tpu.dynamic_rotate %32 by %c15_i32_7 dim 1 : vector<8x512xf32>, i32 -> vector<8x512xf32>
    %c16_i32_8 = arith.constant 16 : i32
    %34 = vector.broadcast %c16_i32_8 : i32 to vector<1x512xi32>
    %35 = arith.cmpi sge, %7, %34 : vector<1x512xi32>
    %c15_i32_9 = arith.constant 15 : i32
    %36 = vector.broadcast %c15_i32_9 : i32 to vector<1x512xi32>
    %37 = arith.cmpi slt, %9, %36 : vector<1x512xi32>
    %38 = arith.andi %35, %37 : vector<1x512xi1>
    %39 = arith.extui %38 : vector<1x512xi1> to vector<1x512xi32>
    %40 = arith.sitofp %39 : vector<1x512xi32> to vector<1x512xf32>
    %41 = vector.broadcast %40 : vector<1x512xf32> to vector<8x512xf32>
    %42 = arith.mulf %33, %41 : vector<8x512xf32>
    %43 = arith.addf %31, %42 : vector<8x512xf32>
    %44 = vector.extract_strided_slice %4 {offsets = [24, 0], sizes = [8, 512], strides = [1, 1]} : vector<72x512xf32> to vector<8x512xf32>
    %c1_i32_10 = arith.constant 1 : i32
    %45 = tpu.dynamic_rotate %44 by %c1_i32_10 dim 1 : vector<8x512xf32>, i32 -> vector<8x512xf32>
    %c1_i32_11 = arith.constant 1 : i32
    %46 = vector.broadcast %c1_i32_11 : i32 to vector<1x512xi32>
    %47 = arith.cmpi sge, %9, %46 : vector<1x512xi32>
    %48 = arith.extui %47 : vector<1x512xi1> to vector<1x512xi32>
    %49 = arith.sitofp %48 : vector<1x512xi32> to vector<1x512xf32>
    %50 = vector.broadcast %49 : vector<1x512xf32> to vector<8x512xf32>
    %51 = arith.mulf %45, %50 : vector<8x512xf32>
    %52 = arith.addf %43, %51 : vector<8x512xf32>
    %53 = vector.extract_strided_slice %4 {offsets = [32, 0], sizes = [8, 512], strides = [1, 1]} : vector<72x512xf32> to vector<8x512xf32>
    %54 = arith.addf %52, %53 : vector<8x512xf32>
    %55 = vector.extract_strided_slice %4 {offsets = [40, 0], sizes = [8, 512], strides = [1, 1]} : vector<72x512xf32> to vector<8x512xf32>
    %c511_i32 = arith.constant 511 : i32
    %56 = tpu.dynamic_rotate %55 by %c511_i32 dim 1 : vector<8x512xf32>, i32 -> vector<8x512xf32>
    %c15_i32_12 = arith.constant 15 : i32
    %57 = vector.broadcast %c15_i32_12 : i32 to vector<1x512xi32>
    %58 = arith.cmpi slt, %9, %57 : vector<1x512xi32>
    %59 = arith.extui %58 : vector<1x512xi1> to vector<1x512xi32>
    %60 = arith.sitofp %59 : vector<1x512xi32> to vector<1x512xf32>
    %61 = vector.broadcast %60 : vector<1x512xf32> to vector<8x512xf32>
    %62 = arith.mulf %56, %61 : vector<8x512xf32>
    %63 = arith.addf %54, %62 : vector<8x512xf32>
    %64 = vector.extract_strided_slice %4 {offsets = [48, 0], sizes = [8, 512], strides = [1, 1]} : vector<72x512xf32> to vector<8x512xf32>
    %c497_i32 = arith.constant 497 : i32
    %65 = tpu.dynamic_rotate %64 by %c497_i32 dim 1 : vector<8x512xf32>, i32 -> vector<8x512xf32>
    %c240_i32 = arith.constant 240 : i32
    %66 = vector.broadcast %c240_i32 : i32 to vector<1x512xi32>
    %67 = arith.cmpi slt, %7, %66 : vector<1x512xi32>
    %c1_i32_13 = arith.constant 1 : i32
    %68 = vector.broadcast %c1_i32_13 : i32 to vector<1x512xi32>
    %69 = arith.cmpi sge, %9, %68 : vector<1x512xi32>
    %70 = arith.andi %67, %69 : vector<1x512xi1>
    %71 = arith.extui %70 : vector<1x512xi1> to vector<1x512xi32>
    %72 = arith.sitofp %71 : vector<1x512xi32> to vector<1x512xf32>
    %73 = vector.broadcast %72 : vector<1x512xf32> to vector<8x512xf32>
    %74 = arith.mulf %65, %73 : vector<8x512xf32>
    %75 = arith.addf %63, %74 : vector<8x512xf32>
    %76 = vector.extract_strided_slice %4 {offsets = [56, 0], sizes = [8, 512], strides = [1, 1]} : vector<72x512xf32> to vector<8x512xf32>
    %c496_i32 = arith.constant 496 : i32
    %77 = tpu.dynamic_rotate %76 by %c496_i32 dim 1 : vector<8x512xf32>, i32 -> vector<8x512xf32>
    %c240_i32_14 = arith.constant 240 : i32
    %78 = vector.broadcast %c240_i32_14 : i32 to vector<1x512xi32>
    %79 = arith.cmpi slt, %7, %78 : vector<1x512xi32>
    %80 = arith.extui %79 : vector<1x512xi1> to vector<1x512xi32>
    %81 = arith.sitofp %80 : vector<1x512xi32> to vector<1x512xf32>
    %82 = vector.broadcast %81 : vector<1x512xf32> to vector<8x512xf32>
    %83 = arith.mulf %77, %82 : vector<8x512xf32>
    %84 = arith.addf %75, %83 : vector<8x512xf32>
    %85 = vector.extract_strided_slice %4 {offsets = [64, 0], sizes = [8, 512], strides = [1, 1]} : vector<72x512xf32> to vector<8x512xf32>
    %c495_i32 = arith.constant 495 : i32
    %86 = tpu.dynamic_rotate %85 by %c495_i32 dim 1 : vector<8x512xf32>, i32 -> vector<8x512xf32>
    %c240_i32_15 = arith.constant 240 : i32
    %87 = vector.broadcast %c240_i32_15 : i32 to vector<1x512xi32>
    %88 = arith.cmpi slt, %7, %87 : vector<1x512xi32>
    %c15_i32_16 = arith.constant 15 : i32
    %89 = vector.broadcast %c15_i32_16 : i32 to vector<1x512xi32>
    %90 = arith.cmpi slt, %9, %89 : vector<1x512xi32>
    %91 = arith.andi %88, %90 : vector<1x512xi1>
    %92 = arith.extui %91 : vector<1x512xi1> to vector<1x512xi32>
    %93 = arith.sitofp %92 : vector<1x512xi32> to vector<1x512xf32>
    %94 = vector.broadcast %93 : vector<1x512xf32> to vector<8x512xf32>
    %95 = arith.mulf %86, %94 : vector<8x512xf32>
    %96 = arith.addf %84, %95 : vector<8x512xf32>
    %c0_17 = arith.constant 0 : index
    %c0_18 = arith.constant 0 : index
    %97 = vector.load %arg7[%c0_17, %c0_18] : memref<8x1xf32, #tpu.memory_space<vmem>>, vector<8x1xf32>
    %98 = vector.broadcast %97 : vector<8x1xf32> to vector<8x512xf32>
    %99 = arith.addf %96, %98 : vector<8x512xf32>
    %cst_19 = arith.constant 0.000000e+00 : f32
    %100 = vector.broadcast %cst_19 : f32 to vector<8x512xf32>
    %101 = arith.maximumf %99, %100 : vector<8x512xf32>
    %102 = arith.truncf %101 : vector<8x512xf32> to vector<8x512xbf16>
    %c0_20 = arith.constant 0 : index
    %c0_21 = arith.constant 0 : index
    %103 = vector.load %arg3[%c0_20, %c0_21] : memref<72x8xbf16, #tpu.memory_space<vmem>>, vector<72x8xbf16>
    %cst_22 = arith.constant dense<0.000000e+00> : vector<72x512xf32>
    %104 = tpu.matmul %103, %102, %cst_22 {dimension_numbers = #tpu.dot_dimension_numbers<[1], [0], [0], [1], [0, 0, 1, 1], [], []>} : vector<72x8xbf16>, vector<8x512xbf16>, vector<72x512xf32> -> vector<72x512xf32>
    %105 = tpu.iota {dimensions = array<i32: 1>} : vector<1x512xi32>
    %c255_i32_23 = arith.constant 255 : i32
    %106 = vector.broadcast %c255_i32_23 : i32 to vector<1x512xi32>
    %107 = arith.andi %105, %106 : vector<1x512xi32>
    %c15_i32_24 = arith.constant 15 : i32
    %108 = vector.broadcast %c15_i32_24 : i32 to vector<1x512xi32>
    %109 = arith.andi %105, %108 : vector<1x512xi32>
    %cst_25 = arith.constant 0.000000e+00 : f32
    %110 = vector.broadcast %cst_25 : f32 to vector<8x512xf32>
    %111 = vector.extract_strided_slice %104 {offsets = [0, 0], sizes = [8, 512], strides = [1, 1]} : vector<72x512xf32> to vector<8x512xf32>
    %c17_i32_26 = arith.constant 17 : i32
    %112 = tpu.dynamic_rotate %111 by %c17_i32_26 dim 1 : vector<8x512xf32>, i32 -> vector<8x512xf32>
    %c16_i32_27 = arith.constant 16 : i32
    %113 = vector.broadcast %c16_i32_27 : i32 to vector<1x512xi32>
    %114 = arith.cmpi sge, %107, %113 : vector<1x512xi32>
    %c1_i32_28 = arith.constant 1 : i32
    %115 = vector.broadcast %c1_i32_28 : i32 to vector<1x512xi32>
    %116 = arith.cmpi sge, %109, %115 : vector<1x512xi32>
    %117 = arith.andi %114, %116 : vector<1x512xi1>
    %118 = arith.extui %117 : vector<1x512xi1> to vector<1x512xi32>
    %119 = arith.sitofp %118 : vector<1x512xi32> to vector<1x512xf32>
    %120 = vector.broadcast %119 : vector<1x512xf32> to vector<8x512xf32>
    %121 = arith.mulf %112, %120 : vector<8x512xf32>
    %122 = arith.addf %110, %121 : vector<8x512xf32>
    %123 = vector.extract_strided_slice %104 {offsets = [8, 0], sizes = [8, 512], strides = [1, 1]} : vector<72x512xf32> to vector<8x512xf32>
    %c16_i32_29 = arith.constant 16 : i32
    %124 = tpu.dynamic_rotate %123 by %c16_i32_29 dim 1 : vector<8x512xf32>, i32 -> vector<8x512xf32>
    %c16_i32_30 = arith.constant 16 : i32
    %125 = vector.broadcast %c16_i32_30 : i32 to vector<1x512xi32>
    %126 = arith.cmpi sge, %107, %125 : vector<1x512xi32>
    %127 = arith.extui %126 : vector<1x512xi1> to vector<1x512xi32>
    %128 = arith.sitofp %127 : vector<1x512xi32> to vector<1x512xf32>
    %129 = vector.broadcast %128 : vector<1x512xf32> to vector<8x512xf32>
    %130 = arith.mulf %124, %129 : vector<8x512xf32>
    %131 = arith.addf %122, %130 : vector<8x512xf32>
    %132 = vector.extract_strided_slice %104 {offsets = [16, 0], sizes = [8, 512], strides = [1, 1]} : vector<72x512xf32> to vector<8x512xf32>
    %c15_i32_31 = arith.constant 15 : i32
    %133 = tpu.dynamic_rotate %132 by %c15_i32_31 dim 1 : vector<8x512xf32>, i32 -> vector<8x512xf32>
    %c16_i32_32 = arith.constant 16 : i32
    %134 = vector.broadcast %c16_i32_32 : i32 to vector<1x512xi32>
    %135 = arith.cmpi sge, %107, %134 : vector<1x512xi32>
    %c15_i32_33 = arith.constant 15 : i32
    %136 = vector.broadcast %c15_i32_33 : i32 to vector<1x512xi32>
    %137 = arith.cmpi slt, %109, %136 : vector<1x512xi32>
    %138 = arith.andi %135, %137 : vector<1x512xi1>
    %139 = arith.extui %138 : vector<1x512xi1> to vector<1x512xi32>
    %140 = arith.sitofp %139 : vector<1x512xi32> to vector<1x512xf32>
    %141 = vector.broadcast %140 : vector<1x512xf32> to vector<8x512xf32>
    %142 = arith.mulf %133, %141 : vector<8x512xf32>
    %143 = arith.addf %131, %142 : vector<8x512xf32>
    %144 = vector.extract_strided_slice %104 {offsets = [24, 0], sizes = [8, 512], strides = [1, 1]} : vector<72x512xf32> to vector<8x512xf32>
    %c1_i32_34 = arith.constant 1 : i32
    %145 = tpu.dynamic_rotate %144 by %c1_i32_34 dim 1 : vector<8x512xf32>, i32 -> vector<8x512xf32>
    %c1_i32_35 = arith.constant 1 : i32
    %146 = vector.broadcast %c1_i32_35 : i32 to vector<1x512xi32>
    %147 = arith.cmpi sge, %109, %146 : vector<1x512xi32>
    %148 = arith.extui %147 : vector<1x512xi1> to vector<1x512xi32>
    %149 = arith.sitofp %148 : vector<1x512xi32> to vector<1x512xf32>
    %150 = vector.broadcast %149 : vector<1x512xf32> to vector<8x512xf32>
    %151 = arith.mulf %145, %150 : vector<8x512xf32>
    %152 = arith.addf %143, %151 : vector<8x512xf32>
    %153 = vector.extract_strided_slice %104 {offsets = [32, 0], sizes = [8, 512], strides = [1, 1]} : vector<72x512xf32> to vector<8x512xf32>
    %154 = arith.addf %152, %153 : vector<8x512xf32>
    %155 = vector.extract_strided_slice %104 {offsets = [40, 0], sizes = [8, 512], strides = [1, 1]} : vector<72x512xf32> to vector<8x512xf32>
    %c511_i32_36 = arith.constant 511 : i32
    %156 = tpu.dynamic_rotate %155 by %c511_i32_36 dim 1 : vector<8x512xf32>, i32 -> vector<8x512xf32>
    %c15_i32_37 = arith.constant 15 : i32
    %157 = vector.broadcast %c15_i32_37 : i32 to vector<1x512xi32>
    %158 = arith.cmpi slt, %109, %157 : vector<1x512xi32>
    %159 = arith.extui %158 : vector<1x512xi1> to vector<1x512xi32>
    %160 = arith.sitofp %159 : vector<1x512xi32> to vector<1x512xf32>
    %161 = vector.broadcast %160 : vector<1x512xf32> to vector<8x512xf32>
    %162 = arith.mulf %156, %161 : vector<8x512xf32>
    %163 = arith.addf %154, %162 : vector<8x512xf32>
    %164 = vector.extract_strided_slice %104 {offsets = [48, 0], sizes = [8, 512], strides = [1, 1]} : vector<72x512xf32> to vector<8x512xf32>
    %c497_i32_38 = arith.constant 497 : i32
    %165 = tpu.dynamic_rotate %164 by %c497_i32_38 dim 1 : vector<8x512xf32>, i32 -> vector<8x512xf32>
    %c240_i32_39 = arith.constant 240 : i32
    %166 = vector.broadcast %c240_i32_39 : i32 to vector<1x512xi32>
    %167 = arith.cmpi slt, %107, %166 : vector<1x512xi32>
    %c1_i32_40 = arith.constant 1 : i32
    %168 = vector.broadcast %c1_i32_40 : i32 to vector<1x512xi32>
    %169 = arith.cmpi sge, %109, %168 : vector<1x512xi32>
    %170 = arith.andi %167, %169 : vector<1x512xi1>
    %171 = arith.extui %170 : vector<1x512xi1> to vector<1x512xi32>
    %172 = arith.sitofp %171 : vector<1x512xi32> to vector<1x512xf32>
    %173 = vector.broadcast %172 : vector<1x512xf32> to vector<8x512xf32>
    %174 = arith.mulf %165, %173 : vector<8x512xf32>
    %175 = arith.addf %163, %174 : vector<8x512xf32>
    %176 = vector.extract_strided_slice %104 {offsets = [56, 0], sizes = [8, 512], strides = [1, 1]} : vector<72x512xf32> to vector<8x512xf32>
    %c496_i32_41 = arith.constant 496 : i32
    %177 = tpu.dynamic_rotate %176 by %c496_i32_41 dim 1 : vector<8x512xf32>, i32 -> vector<8x512xf32>
    %c240_i32_42 = arith.constant 240 : i32
    %178 = vector.broadcast %c240_i32_42 : i32 to vector<1x512xi32>
    %179 = arith.cmpi slt, %107, %178 : vector<1x512xi32>
    %180 = arith.extui %179 : vector<1x512xi1> to vector<1x512xi32>
    %181 = arith.sitofp %180 : vector<1x512xi32> to vector<1x512xf32>
    %182 = vector.broadcast %181 : vector<1x512xf32> to vector<8x512xf32>
    %183 = arith.mulf %177, %182 : vector<8x512xf32>
    %184 = arith.addf %175, %183 : vector<8x512xf32>
    %185 = vector.extract_strided_slice %104 {offsets = [64, 0], sizes = [8, 512], strides = [1, 1]} : vector<72x512xf32> to vector<8x512xf32>
    %c495_i32_43 = arith.constant 495 : i32
    %186 = tpu.dynamic_rotate %185 by %c495_i32_43 dim 1 : vector<8x512xf32>, i32 -> vector<8x512xf32>
    %c240_i32_44 = arith.constant 240 : i32
    %187 = vector.broadcast %c240_i32_44 : i32 to vector<1x512xi32>
    %188 = arith.cmpi slt, %107, %187 : vector<1x512xi32>
    %c15_i32_45 = arith.constant 15 : i32
    %189 = vector.broadcast %c15_i32_45 : i32 to vector<1x512xi32>
    %190 = arith.cmpi slt, %109, %189 : vector<1x512xi32>
    %191 = arith.andi %188, %190 : vector<1x512xi1>
    %192 = arith.extui %191 : vector<1x512xi1> to vector<1x512xi32>
    %193 = arith.sitofp %192 : vector<1x512xi32> to vector<1x512xf32>
    %194 = vector.broadcast %193 : vector<1x512xf32> to vector<8x512xf32>
    %195 = arith.mulf %186, %194 : vector<8x512xf32>
    %196 = arith.addf %184, %195 : vector<8x512xf32>
    %c0_46 = arith.constant 0 : index
    %c0_47 = arith.constant 0 : index
    %197 = vector.load %arg8[%c0_46, %c0_47] : memref<8x1xf32, #tpu.memory_space<vmem>>, vector<8x1xf32>
    %198 = vector.broadcast %197 : vector<8x1xf32> to vector<8x512xf32>
    %199 = arith.addf %196, %198 : vector<8x512xf32>
    %cst_48 = arith.constant 0.000000e+00 : f32
    %200 = vector.broadcast %cst_48 : f32 to vector<8x512xf32>
    %201 = arith.maximumf %199, %200 : vector<8x512xf32>
    %202 = arith.truncf %201 : vector<8x512xf32> to vector<8x512xbf16>
    %c0_49 = arith.constant 0 : index
    %c0_50 = arith.constant 0 : index
    %203 = vector.load %arg4[%c0_49, %c0_50] : memref<144x8xbf16, #tpu.memory_space<vmem>>, vector<144x8xbf16>
    %cst_51 = arith.constant dense<0.000000e+00> : vector<144x512xf32>
    %204 = tpu.matmul %203, %202, %cst_51 {dimension_numbers = #tpu.dot_dimension_numbers<[1], [0], [0], [1], [0, 0, 1, 1], [], []>} : vector<144x8xbf16>, vector<8x512xbf16>, vector<144x512xf32> -> vector<144x512xf32>
    %205 = tpu.iota {dimensions = array<i32: 1>} : vector<1x512xi32>
    %c255_i32_52 = arith.constant 255 : i32
    %206 = vector.broadcast %c255_i32_52 : i32 to vector<1x512xi32>
    %207 = arith.andi %205, %206 : vector<1x512xi32>
    %c15_i32_53 = arith.constant 15 : i32
    %208 = vector.broadcast %c15_i32_53 : i32 to vector<1x512xi32>
    %209 = arith.andi %205, %208 : vector<1x512xi32>
    %cst_54 = arith.constant 0.000000e+00 : f32
    %210 = vector.broadcast %cst_54 : f32 to vector<16x512xf32>
    %211 = vector.extract_strided_slice %204 {offsets = [0, 0], sizes = [16, 512], strides = [1, 1]} : vector<144x512xf32> to vector<16x512xf32>
    %c17_i32_55 = arith.constant 17 : i32
    %212 = tpu.dynamic_rotate %211 by %c17_i32_55 dim 1 : vector<16x512xf32>, i32 -> vector<16x512xf32>
    %c16_i32_56 = arith.constant 16 : i32
    %213 = vector.broadcast %c16_i32_56 : i32 to vector<1x512xi32>
    %214 = arith.cmpi sge, %207, %213 : vector<1x512xi32>
    %c1_i32_57 = arith.constant 1 : i32
    %215 = vector.broadcast %c1_i32_57 : i32 to vector<1x512xi32>
    %216 = arith.cmpi sge, %209, %215 : vector<1x512xi32>
    %217 = arith.andi %214, %216 : vector<1x512xi1>
    %218 = arith.extui %217 : vector<1x512xi1> to vector<1x512xi32>
    %219 = arith.sitofp %218 : vector<1x512xi32> to vector<1x512xf32>
    %220 = vector.broadcast %219 : vector<1x512xf32> to vector<16x512xf32>
    %221 = arith.mulf %212, %220 : vector<16x512xf32>
    %222 = arith.addf %210, %221 : vector<16x512xf32>
    %223 = vector.extract_strided_slice %204 {offsets = [16, 0], sizes = [16, 512], strides = [1, 1]} : vector<144x512xf32> to vector<16x512xf32>
    %c16_i32_58 = arith.constant 16 : i32
    %224 = tpu.dynamic_rotate %223 by %c16_i32_58 dim 1 : vector<16x512xf32>, i32 -> vector<16x512xf32>
    %c16_i32_59 = arith.constant 16 : i32
    %225 = vector.broadcast %c16_i32_59 : i32 to vector<1x512xi32>
    %226 = arith.cmpi sge, %207, %225 : vector<1x512xi32>
    %227 = arith.extui %226 : vector<1x512xi1> to vector<1x512xi32>
    %228 = arith.sitofp %227 : vector<1x512xi32> to vector<1x512xf32>
    %229 = vector.broadcast %228 : vector<1x512xf32> to vector<16x512xf32>
    %230 = arith.mulf %224, %229 : vector<16x512xf32>
    %231 = arith.addf %222, %230 : vector<16x512xf32>
    %232 = vector.extract_strided_slice %204 {offsets = [32, 0], sizes = [16, 512], strides = [1, 1]} : vector<144x512xf32> to vector<16x512xf32>
    %c15_i32_60 = arith.constant 15 : i32
    %233 = tpu.dynamic_rotate %232 by %c15_i32_60 dim 1 : vector<16x512xf32>, i32 -> vector<16x512xf32>
    %c16_i32_61 = arith.constant 16 : i32
    %234 = vector.broadcast %c16_i32_61 : i32 to vector<1x512xi32>
    %235 = arith.cmpi sge, %207, %234 : vector<1x512xi32>
    %c15_i32_62 = arith.constant 15 : i32
    %236 = vector.broadcast %c15_i32_62 : i32 to vector<1x512xi32>
    %237 = arith.cmpi slt, %209, %236 : vector<1x512xi32>
    %238 = arith.andi %235, %237 : vector<1x512xi1>
    %239 = arith.extui %238 : vector<1x512xi1> to vector<1x512xi32>
    %240 = arith.sitofp %239 : vector<1x512xi32> to vector<1x512xf32>
    %241 = vector.broadcast %240 : vector<1x512xf32> to vector<16x512xf32>
    %242 = arith.mulf %233, %241 : vector<16x512xf32>
    %243 = arith.addf %231, %242 : vector<16x512xf32>
    %244 = vector.extract_strided_slice %204 {offsets = [48, 0], sizes = [16, 512], strides = [1, 1]} : vector<144x512xf32> to vector<16x512xf32>
    %c1_i32_63 = arith.constant 1 : i32
    %245 = tpu.dynamic_rotate %244 by %c1_i32_63 dim 1 : vector<16x512xf32>, i32 -> vector<16x512xf32>
    %c1_i32_64 = arith.constant 1 : i32
    %246 = vector.broadcast %c1_i32_64 : i32 to vector<1x512xi32>
    %247 = arith.cmpi sge, %209, %246 : vector<1x512xi32>
    %248 = arith.extui %247 : vector<1x512xi1> to vector<1x512xi32>
    %249 = arith.sitofp %248 : vector<1x512xi32> to vector<1x512xf32>
    %250 = vector.broadcast %249 : vector<1x512xf32> to vector<16x512xf32>
    %251 = arith.mulf %245, %250 : vector<16x512xf32>
    %252 = arith.addf %243, %251 : vector<16x512xf32>
    %253 = vector.extract_strided_slice %204 {offsets = [64, 0], sizes = [16, 512], strides = [1, 1]} : vector<144x512xf32> to vector<16x512xf32>
    %254 = arith.addf %252, %253 : vector<16x512xf32>
    %255 = vector.extract_strided_slice %204 {offsets = [80, 0], sizes = [16, 512], strides = [1, 1]} : vector<144x512xf32> to vector<16x512xf32>
    %c511_i32_65 = arith.constant 511 : i32
    %256 = tpu.dynamic_rotate %255 by %c511_i32_65 dim 1 : vector<16x512xf32>, i32 -> vector<16x512xf32>
    %c15_i32_66 = arith.constant 15 : i32
    %257 = vector.broadcast %c15_i32_66 : i32 to vector<1x512xi32>
    %258 = arith.cmpi slt, %209, %257 : vector<1x512xi32>
    %259 = arith.extui %258 : vector<1x512xi1> to vector<1x512xi32>
    %260 = arith.sitofp %259 : vector<1x512xi32> to vector<1x512xf32>
    %261 = vector.broadcast %260 : vector<1x512xf32> to vector<16x512xf32>
    %262 = arith.mulf %256, %261 : vector<16x512xf32>
    %263 = arith.addf %254, %262 : vector<16x512xf32>
    %264 = vector.extract_strided_slice %204 {offsets = [96, 0], sizes = [16, 512], strides = [1, 1]} : vector<144x512xf32> to vector<16x512xf32>
    %c497_i32_67 = arith.constant 497 : i32
    %265 = tpu.dynamic_rotate %264 by %c497_i32_67 dim 1 : vector<16x512xf32>, i32 -> vector<16x512xf32>
    %c240_i32_68 = arith.constant 240 : i32
    %266 = vector.broadcast %c240_i32_68 : i32 to vector<1x512xi32>
    %267 = arith.cmpi slt, %207, %266 : vector<1x512xi32>
    %c1_i32_69 = arith.constant 1 : i32
    %268 = vector.broadcast %c1_i32_69 : i32 to vector<1x512xi32>
    %269 = arith.cmpi sge, %209, %268 : vector<1x512xi32>
    %270 = arith.andi %267, %269 : vector<1x512xi1>
    %271 = arith.extui %270 : vector<1x512xi1> to vector<1x512xi32>
    %272 = arith.sitofp %271 : vector<1x512xi32> to vector<1x512xf32>
    %273 = vector.broadcast %272 : vector<1x512xf32> to vector<16x512xf32>
    %274 = arith.mulf %265, %273 : vector<16x512xf32>
    %275 = arith.addf %263, %274 : vector<16x512xf32>
    %276 = vector.extract_strided_slice %204 {offsets = [112, 0], sizes = [16, 512], strides = [1, 1]} : vector<144x512xf32> to vector<16x512xf32>
    %c496_i32_70 = arith.constant 496 : i32
    %277 = tpu.dynamic_rotate %276 by %c496_i32_70 dim 1 : vector<16x512xf32>, i32 -> vector<16x512xf32>
    %c240_i32_71 = arith.constant 240 : i32
    %278 = vector.broadcast %c240_i32_71 : i32 to vector<1x512xi32>
    %279 = arith.cmpi slt, %207, %278 : vector<1x512xi32>
    %280 = arith.extui %279 : vector<1x512xi1> to vector<1x512xi32>
    %281 = arith.sitofp %280 : vector<1x512xi32> to vector<1x512xf32>
    %282 = vector.broadcast %281 : vector<1x512xf32> to vector<16x512xf32>
    %283 = arith.mulf %277, %282 : vector<16x512xf32>
    %284 = arith.addf %275, %283 : vector<16x512xf32>
    %285 = vector.extract_strided_slice %204 {offsets = [128, 0], sizes = [16, 512], strides = [1, 1]} : vector<144x512xf32> to vector<16x512xf32>
    %c495_i32_72 = arith.constant 495 : i32
    %286 = tpu.dynamic_rotate %285 by %c495_i32_72 dim 1 : vector<16x512xf32>, i32 -> vector<16x512xf32>
    %c240_i32_73 = arith.constant 240 : i32
    %287 = vector.broadcast %c240_i32_73 : i32 to vector<1x512xi32>
    %288 = arith.cmpi slt, %207, %287 : vector<1x512xi32>
    %c15_i32_74 = arith.constant 15 : i32
    %289 = vector.broadcast %c15_i32_74 : i32 to vector<1x512xi32>
    %290 = arith.cmpi slt, %209, %289 : vector<1x512xi32>
    %291 = arith.andi %288, %290 : vector<1x512xi1>
    %292 = arith.extui %291 : vector<1x512xi1> to vector<1x512xi32>
    %293 = arith.sitofp %292 : vector<1x512xi32> to vector<1x512xf32>
    %294 = vector.broadcast %293 : vector<1x512xf32> to vector<16x512xf32>
    %295 = arith.mulf %286, %294 : vector<16x512xf32>
    %296 = arith.addf %284, %295 : vector<16x512xf32>
    %c0_75 = arith.constant 0 : index
    %c0_76 = arith.constant 0 : index
    %297 = vector.load %arg12[%c0_75, %c0_76] : memref<512x128xf32, #tpu.memory_space<vmem>>, vector<512x128xf32>
    %cst_77 = arith.constant dense<0.000000e+00> : vector<16x128xf32>
    %298 = tpu.matmul %296, %297, %cst_77 {dimension_numbers = #tpu.dot_dimension_numbers<[1], [0], [0], [1], [0, 0, 1, 1], [], []>} : vector<16x512xf32>, vector<512x128xf32>, vector<16x128xf32> -> vector<16x128xf32>
    %c0_78 = arith.constant 0 : index
    %c0_79 = arith.constant 0 : index
    %299 = vector.load %arg9[%c0_78, %c0_79] : memref<16x1xf32, #tpu.memory_space<vmem>>, vector<16x1xf32>
    %300 = vector.broadcast %299 : vector<16x1xf32> to vector<16x128xf32>
    %301 = arith.addf %298, %300 : vector<16x128xf32>
    %cst_80 = arith.constant 0.000000e+00 : f32
    %302 = vector.broadcast %cst_80 : f32 to vector<16x128xf32>
    %303 = arith.maximumf %301, %302 : vector<16x128xf32>
    %304 = arith.truncf %303 : vector<16x128xf32> to vector<16x128xbf16>
    %c0_81 = arith.constant 0 : index
    %c0_82 = arith.constant 0 : index
    %305 = vector.load %arg5[%c0_81, %c0_82] : memref<144x16xbf16, #tpu.memory_space<vmem>>, vector<144x16xbf16>
    %cst_83 = arith.constant dense<0.000000e+00> : vector<144x128xf32>
    %306 = tpu.matmul %305, %304, %cst_83 {dimension_numbers = #tpu.dot_dimension_numbers<[1], [0], [0], [1], [0, 0, 1, 1], [], []>} : vector<144x16xbf16>, vector<16x128xbf16>, vector<144x128xf32> -> vector<144x128xf32>
    %307 = tpu.iota {dimensions = array<i32: 1>} : vector<1x128xi32>
    %c63_i32 = arith.constant 63 : i32
    %308 = vector.broadcast %c63_i32 : i32 to vector<1x128xi32>
    %309 = arith.andi %307, %308 : vector<1x128xi32>
    %c7_i32 = arith.constant 7 : i32
    %310 = vector.broadcast %c7_i32 : i32 to vector<1x128xi32>
    %311 = arith.andi %307, %310 : vector<1x128xi32>
    %cst_84 = arith.constant 0.000000e+00 : f32
    %312 = vector.broadcast %cst_84 : f32 to vector<16x128xf32>
    %313 = vector.extract_strided_slice %306 {offsets = [0, 0], sizes = [16, 128], strides = [1, 1]} : vector<144x128xf32> to vector<16x128xf32>
    %c9_i32 = arith.constant 9 : i32
    %314 = tpu.dynamic_rotate %313 by %c9_i32 dim 1 : vector<16x128xf32>, i32 -> vector<16x128xf32>
    %c8_i32 = arith.constant 8 : i32
    %315 = vector.broadcast %c8_i32 : i32 to vector<1x128xi32>
    %316 = arith.cmpi sge, %309, %315 : vector<1x128xi32>
    %c1_i32_85 = arith.constant 1 : i32
    %317 = vector.broadcast %c1_i32_85 : i32 to vector<1x128xi32>
    %318 = arith.cmpi sge, %311, %317 : vector<1x128xi32>
    %319 = arith.andi %316, %318 : vector<1x128xi1>
    %320 = arith.extui %319 : vector<1x128xi1> to vector<1x128xi32>
    %321 = arith.sitofp %320 : vector<1x128xi32> to vector<1x128xf32>
    %322 = vector.broadcast %321 : vector<1x128xf32> to vector<16x128xf32>
    %323 = arith.mulf %314, %322 : vector<16x128xf32>
    %324 = arith.addf %312, %323 : vector<16x128xf32>
    %325 = vector.extract_strided_slice %306 {offsets = [16, 0], sizes = [16, 128], strides = [1, 1]} : vector<144x128xf32> to vector<16x128xf32>
    %c8_i32_86 = arith.constant 8 : i32
    %326 = tpu.dynamic_rotate %325 by %c8_i32_86 dim 1 : vector<16x128xf32>, i32 -> vector<16x128xf32>
    %c8_i32_87 = arith.constant 8 : i32
    %327 = vector.broadcast %c8_i32_87 : i32 to vector<1x128xi32>
    %328 = arith.cmpi sge, %309, %327 : vector<1x128xi32>
    %329 = arith.extui %328 : vector<1x128xi1> to vector<1x128xi32>
    %330 = arith.sitofp %329 : vector<1x128xi32> to vector<1x128xf32>
    %331 = vector.broadcast %330 : vector<1x128xf32> to vector<16x128xf32>
    %332 = arith.mulf %326, %331 : vector<16x128xf32>
    %333 = arith.addf %324, %332 : vector<16x128xf32>
    %334 = vector.extract_strided_slice %306 {offsets = [32, 0], sizes = [16, 128], strides = [1, 1]} : vector<144x128xf32> to vector<16x128xf32>
    %c7_i32_88 = arith.constant 7 : i32
    %335 = tpu.dynamic_rotate %334 by %c7_i32_88 dim 1 : vector<16x128xf32>, i32 -> vector<16x128xf32>
    %c8_i32_89 = arith.constant 8 : i32
    %336 = vector.broadcast %c8_i32_89 : i32 to vector<1x128xi32>
    %337 = arith.cmpi sge, %309, %336 : vector<1x128xi32>
    %c7_i32_90 = arith.constant 7 : i32
    %338 = vector.broadcast %c7_i32_90 : i32 to vector<1x128xi32>
    %339 = arith.cmpi slt, %311, %338 : vector<1x128xi32>
    %340 = arith.andi %337, %339 : vector<1x128xi1>
    %341 = arith.extui %340 : vector<1x128xi1> to vector<1x128xi32>
    %342 = arith.sitofp %341 : vector<1x128xi32> to vector<1x128xf32>
    %343 = vector.broadcast %342 : vector<1x128xf32> to vector<16x128xf32>
    %344 = arith.mulf %335, %343 : vector<16x128xf32>
    %345 = arith.addf %333, %344 : vector<16x128xf32>
    %346 = vector.extract_strided_slice %306 {offsets = [48, 0], sizes = [16, 128], strides = [1, 1]} : vector<144x128xf32> to vector<16x128xf32>
    %c1_i32_91 = arith.constant 1 : i32
    %347 = tpu.dynamic_rotate %346 by %c1_i32_91 dim 1 : vector<16x128xf32>, i32 -> vector<16x128xf32>
    %c1_i32_92 = arith.constant 1 : i32
    %348 = vector.broadcast %c1_i32_92 : i32 to vector<1x128xi32>
    %349 = arith.cmpi sge, %311, %348 : vector<1x128xi32>
    %350 = arith.extui %349 : vector<1x128xi1> to vector<1x128xi32>
    %351 = arith.sitofp %350 : vector<1x128xi32> to vector<1x128xf32>
    %352 = vector.broadcast %351 : vector<1x128xf32> to vector<16x128xf32>
    %353 = arith.mulf %347, %352 : vector<16x128xf32>
    %354 = arith.addf %345, %353 : vector<16x128xf32>
    %355 = vector.extract_strided_slice %306 {offsets = [64, 0], sizes = [16, 128], strides = [1, 1]} : vector<144x128xf32> to vector<16x128xf32>
    %356 = arith.addf %354, %355 : vector<16x128xf32>
    %357 = vector.extract_strided_slice %306 {offsets = [80, 0], sizes = [16, 128], strides = [1, 1]} : vector<144x128xf32> to vector<16x128xf32>
    %c127_i32 = arith.constant 127 : i32
    %358 = tpu.dynamic_rotate %357 by %c127_i32 dim 1 : vector<16x128xf32>, i32 -> vector<16x128xf32>
    %c7_i32_93 = arith.constant 7 : i32
    %359 = vector.broadcast %c7_i32_93 : i32 to vector<1x128xi32>
    %360 = arith.cmpi slt, %311, %359 : vector<1x128xi32>
    %361 = arith.extui %360 : vector<1x128xi1> to vector<1x128xi32>
    %362 = arith.sitofp %361 : vector<1x128xi32> to vector<1x128xf32>
    %363 = vector.broadcast %362 : vector<1x128xf32> to vector<16x128xf32>
    %364 = arith.mulf %358, %363 : vector<16x128xf32>
    %365 = arith.addf %356, %364 : vector<16x128xf32>
    %366 = vector.extract_strided_slice %306 {offsets = [96, 0], sizes = [16, 128], strides = [1, 1]} : vector<144x128xf32> to vector<16x128xf32>
    %c121_i32 = arith.constant 121 : i32
    %367 = tpu.dynamic_rotate %366 by %c121_i32 dim 1 : vector<16x128xf32>, i32 -> vector<16x128xf32>
    %c56_i32 = arith.constant 56 : i32
    %368 = vector.broadcast %c56_i32 : i32 to vector<1x128xi32>
    %369 = arith.cmpi slt, %309, %368 : vector<1x128xi32>
    %c1_i32_94 = arith.constant 1 : i32
    %370 = vector.broadcast %c1_i32_94 : i32 to vector<1x128xi32>
    %371 = arith.cmpi sge, %311, %370 : vector<1x128xi32>
    %372 = arith.andi %369, %371 : vector<1x128xi1>
    %373 = arith.extui %372 : vector<1x128xi1> to vector<1x128xi32>
    %374 = arith.sitofp %373 : vector<1x128xi32> to vector<1x128xf32>
    %375 = vector.broadcast %374 : vector<1x128xf32> to vector<16x128xf32>
    %376 = arith.mulf %367, %375 : vector<16x128xf32>
    %377 = arith.addf %365, %376 : vector<16x128xf32>
    %378 = vector.extract_strided_slice %306 {offsets = [112, 0], sizes = [16, 128], strides = [1, 1]} : vector<144x128xf32> to vector<16x128xf32>
    %c120_i32 = arith.constant 120 : i32
    %379 = tpu.dynamic_rotate %378 by %c120_i32 dim 1 : vector<16x128xf32>, i32 -> vector<16x128xf32>
    %c56_i32_95 = arith.constant 56 : i32
    %380 = vector.broadcast %c56_i32_95 : i32 to vector<1x128xi32>
    %381 = arith.cmpi slt, %309, %380 : vector<1x128xi32>
    %382 = arith.extui %381 : vector<1x128xi1> to vector<1x128xi32>
    %383 = arith.sitofp %382 : vector<1x128xi32> to vector<1x128xf32>
    %384 = vector.broadcast %383 : vector<1x128xf32> to vector<16x128xf32>
    %385 = arith.mulf %379, %384 : vector<16x128xf32>
    %386 = arith.addf %377, %385 : vector<16x128xf32>
    %387 = vector.extract_strided_slice %306 {offsets = [128, 0], sizes = [16, 128], strides = [1, 1]} : vector<144x128xf32> to vector<16x128xf32>
    %c119_i32 = arith.constant 119 : i32
    %388 = tpu.dynamic_rotate %387 by %c119_i32 dim 1 : vector<16x128xf32>, i32 -> vector<16x128xf32>
    %c56_i32_96 = arith.constant 56 : i32
    %389 = vector.broadcast %c56_i32_96 : i32 to vector<1x128xi32>
    %390 = arith.cmpi slt, %309, %389 : vector<1x128xi32>
    %c7_i32_97 = arith.constant 7 : i32
    %391 = vector.broadcast %c7_i32_97 : i32 to vector<1x128xi32>
    %392 = arith.cmpi slt, %311, %391 : vector<1x128xi32>
    %393 = arith.andi %390, %392 : vector<1x128xi1>
    %394 = arith.extui %393 : vector<1x128xi1> to vector<1x128xi32>
    %395 = arith.sitofp %394 : vector<1x128xi32> to vector<1x128xf32>
    %396 = vector.broadcast %395 : vector<1x128xf32> to vector<16x128xf32>
    %397 = arith.mulf %388, %396 : vector<16x128xf32>
    %398 = arith.addf %386, %397 : vector<16x128xf32>
    %c0_98 = arith.constant 0 : index
    %c0_99 = arith.constant 0 : index
    %399 = vector.load %arg10[%c0_98, %c0_99] : memref<16x1xf32, #tpu.memory_space<vmem>>, vector<16x1xf32>
    %400 = vector.broadcast %399 : vector<16x1xf32> to vector<16x128xf32>
    %401 = arith.addf %398, %400 : vector<16x128xf32>
    %cst_100 = arith.constant 0.000000e+00 : f32
    %402 = vector.broadcast %cst_100 : f32 to vector<16x128xf32>
    %403 = arith.maximumf %401, %402 : vector<16x128xf32>
    %404 = arith.truncf %403 : vector<16x128xf32> to vector<16x128xbf16>
    %c0_101 = arith.constant 0 : index
    %c0_102 = arith.constant 0 : index
    %405 = vector.load %arg6[%c0_101, %c0_102] : memref<288x16xbf16, #tpu.memory_space<vmem>>, vector<288x16xbf16>
    %cst_103 = arith.constant dense<0.000000e+00> : vector<288x128xf32>
    %406 = tpu.matmul %405, %404, %cst_103 {dimension_numbers = #tpu.dot_dimension_numbers<[1], [0], [0], [1], [0, 0, 1, 1], [], []>} : vector<288x16xbf16>, vector<16x128xbf16>, vector<288x128xf32> -> vector<288x128xf32>
    %407 = tpu.iota {dimensions = array<i32: 1>} : vector<1x128xi32>
    %c63_i32_104 = arith.constant 63 : i32
    %408 = vector.broadcast %c63_i32_104 : i32 to vector<1x128xi32>
    %409 = arith.andi %407, %408 : vector<1x128xi32>
    %c7_i32_105 = arith.constant 7 : i32
    %410 = vector.broadcast %c7_i32_105 : i32 to vector<1x128xi32>
    %411 = arith.andi %407, %410 : vector<1x128xi32>
    %cst_106 = arith.constant 0.000000e+00 : f32
    %412 = vector.broadcast %cst_106 : f32 to vector<32x128xf32>
    %413 = vector.extract_strided_slice %406 {offsets = [0, 0], sizes = [32, 128], strides = [1, 1]} : vector<288x128xf32> to vector<32x128xf32>
    %c9_i32_107 = arith.constant 9 : i32
    %414 = tpu.dynamic_rotate %413 by %c9_i32_107 dim 1 : vector<32x128xf32>, i32 -> vector<32x128xf32>
    %c8_i32_108 = arith.constant 8 : i32
    %415 = vector.broadcast %c8_i32_108 : i32 to vector<1x128xi32>
    %416 = arith.cmpi sge, %409, %415 : vector<1x128xi32>
    %c1_i32_109 = arith.constant 1 : i32
    %417 = vector.broadcast %c1_i32_109 : i32 to vector<1x128xi32>
    %418 = arith.cmpi sge, %411, %417 : vector<1x128xi32>
    %419 = arith.andi %416, %418 : vector<1x128xi1>
    %420 = arith.extui %419 : vector<1x128xi1> to vector<1x128xi32>
    %421 = arith.sitofp %420 : vector<1x128xi32> to vector<1x128xf32>
    %422 = vector.broadcast %421 : vector<1x128xf32> to vector<32x128xf32>
    %423 = arith.mulf %414, %422 : vector<32x128xf32>
    %424 = arith.addf %412, %423 : vector<32x128xf32>
    %425 = vector.extract_strided_slice %406 {offsets = [32, 0], sizes = [32, 128], strides = [1, 1]} : vector<288x128xf32> to vector<32x128xf32>
    %c8_i32_110 = arith.constant 8 : i32
    %426 = tpu.dynamic_rotate %425 by %c8_i32_110 dim 1 : vector<32x128xf32>, i32 -> vector<32x128xf32>
    %c8_i32_111 = arith.constant 8 : i32
    %427 = vector.broadcast %c8_i32_111 : i32 to vector<1x128xi32>
    %428 = arith.cmpi sge, %409, %427 : vector<1x128xi32>
    %429 = arith.extui %428 : vector<1x128xi1> to vector<1x128xi32>
    %430 = arith.sitofp %429 : vector<1x128xi32> to vector<1x128xf32>
    %431 = vector.broadcast %430 : vector<1x128xf32> to vector<32x128xf32>
    %432 = arith.mulf %426, %431 : vector<32x128xf32>
    %433 = arith.addf %424, %432 : vector<32x128xf32>
    %434 = vector.extract_strided_slice %406 {offsets = [64, 0], sizes = [32, 128], strides = [1, 1]} : vector<288x128xf32> to vector<32x128xf32>
    %c7_i32_112 = arith.constant 7 : i32
    %435 = tpu.dynamic_rotate %434 by %c7_i32_112 dim 1 : vector<32x128xf32>, i32 -> vector<32x128xf32>
    %c8_i32_113 = arith.constant 8 : i32
    %436 = vector.broadcast %c8_i32_113 : i32 to vector<1x128xi32>
    %437 = arith.cmpi sge, %409, %436 : vector<1x128xi32>
    %c7_i32_114 = arith.constant 7 : i32
    %438 = vector.broadcast %c7_i32_114 : i32 to vector<1x128xi32>
    %439 = arith.cmpi slt, %411, %438 : vector<1x128xi32>
    %440 = arith.andi %437, %439 : vector<1x128xi1>
    %441 = arith.extui %440 : vector<1x128xi1> to vector<1x128xi32>
    %442 = arith.sitofp %441 : vector<1x128xi32> to vector<1x128xf32>
    %443 = vector.broadcast %442 : vector<1x128xf32> to vector<32x128xf32>
    %444 = arith.mulf %435, %443 : vector<32x128xf32>
    %445 = arith.addf %433, %444 : vector<32x128xf32>
    %446 = vector.extract_strided_slice %406 {offsets = [96, 0], sizes = [32, 128], strides = [1, 1]} : vector<288x128xf32> to vector<32x128xf32>
    %c1_i32_115 = arith.constant 1 : i32
    %447 = tpu.dynamic_rotate %446 by %c1_i32_115 dim 1 : vector<32x128xf32>, i32 -> vector<32x128xf32>
    %c1_i32_116 = arith.constant 1 : i32
    %448 = vector.broadcast %c1_i32_116 : i32 to vector<1x128xi32>
    %449 = arith.cmpi sge, %411, %448 : vector<1x128xi32>
    %450 = arith.extui %449 : vector<1x128xi1> to vector<1x128xi32>
    %451 = arith.sitofp %450 : vector<1x128xi32> to vector<1x128xf32>
    %452 = vector.broadcast %451 : vector<1x128xf32> to vector<32x128xf32>
    %453 = arith.mulf %447, %452 : vector<32x128xf32>
    %454 = arith.addf %445, %453 : vector<32x128xf32>
    %455 = vector.extract_strided_slice %406 {offsets = [128, 0], sizes = [32, 128], strides = [1, 1]} : vector<288x128xf32> to vector<32x128xf32>
    %456 = arith.addf %454, %455 : vector<32x128xf32>
    %457 = vector.extract_strided_slice %406 {offsets = [160, 0], sizes = [32, 128], strides = [1, 1]} : vector<288x128xf32> to vector<32x128xf32>
    %c127_i32_117 = arith.constant 127 : i32
    %458 = tpu.dynamic_rotate %457 by %c127_i32_117 dim 1 : vector<32x128xf32>, i32 -> vector<32x128xf32>
    %c7_i32_118 = arith.constant 7 : i32
    %459 = vector.broadcast %c7_i32_118 : i32 to vector<1x128xi32>
    %460 = arith.cmpi slt, %411, %459 : vector<1x128xi32>
    %461 = arith.extui %460 : vector<1x128xi1> to vector<1x128xi32>
    %462 = arith.sitofp %461 : vector<1x128xi32> to vector<1x128xf32>
    %463 = vector.broadcast %462 : vector<1x128xf32> to vector<32x128xf32>
    %464 = arith.mulf %458, %463 : vector<32x128xf32>
    %465 = arith.addf %456, %464 : vector<32x128xf32>
    %466 = vector.extract_strided_slice %406 {offsets = [192, 0], sizes = [32, 128], strides = [1, 1]} : vector<288x128xf32> to vector<32x128xf32>
    %c121_i32_119 = arith.constant 121 : i32
    %467 = tpu.dynamic_rotate %466 by %c121_i32_119 dim 1 : vector<32x128xf32>, i32 -> vector<32x128xf32>
    %c56_i32_120 = arith.constant 56 : i32
    %468 = vector.broadcast %c56_i32_120 : i32 to vector<1x128xi32>
    %469 = arith.cmpi slt, %409, %468 : vector<1x128xi32>
    %c1_i32_121 = arith.constant 1 : i32
    %470 = vector.broadcast %c1_i32_121 : i32 to vector<1x128xi32>
    %471 = arith.cmpi sge, %411, %470 : vector<1x128xi32>
    %472 = arith.andi %469, %471 : vector<1x128xi1>
    %473 = arith.extui %472 : vector<1x128xi1> to vector<1x128xi32>
    %474 = arith.sitofp %473 : vector<1x128xi32> to vector<1x128xf32>
    %475 = vector.broadcast %474 : vector<1x128xf32> to vector<32x128xf32>
    %476 = arith.mulf %467, %475 : vector<32x128xf32>
    %477 = arith.addf %465, %476 : vector<32x128xf32>
    %478 = vector.extract_strided_slice %406 {offsets = [224, 0], sizes = [32, 128], strides = [1, 1]} : vector<288x128xf32> to vector<32x128xf32>
    %c120_i32_122 = arith.constant 120 : i32
    %479 = tpu.dynamic_rotate %478 by %c120_i32_122 dim 1 : vector<32x128xf32>, i32 -> vector<32x128xf32>
    %c56_i32_123 = arith.constant 56 : i32
    %480 = vector.broadcast %c56_i32_123 : i32 to vector<1x128xi32>
    %481 = arith.cmpi slt, %409, %480 : vector<1x128xi32>
    %482 = arith.extui %481 : vector<1x128xi1> to vector<1x128xi32>
    %483 = arith.sitofp %482 : vector<1x128xi32> to vector<1x128xf32>
    %484 = vector.broadcast %483 : vector<1x128xf32> to vector<32x128xf32>
    %485 = arith.mulf %479, %484 : vector<32x128xf32>
    %486 = arith.addf %477, %485 : vector<32x128xf32>
    %487 = vector.extract_strided_slice %406 {offsets = [256, 0], sizes = [32, 128], strides = [1, 1]} : vector<288x128xf32> to vector<32x128xf32>
    %c119_i32_124 = arith.constant 119 : i32
    %488 = tpu.dynamic_rotate %487 by %c119_i32_124 dim 1 : vector<32x128xf32>, i32 -> vector<32x128xf32>
    %c56_i32_125 = arith.constant 56 : i32
    %489 = vector.broadcast %c56_i32_125 : i32 to vector<1x128xi32>
    %490 = arith.cmpi slt, %409, %489 : vector<1x128xi32>
    %c7_i32_126 = arith.constant 7 : i32
    %491 = vector.broadcast %c7_i32_126 : i32 to vector<1x128xi32>
    %492 = arith.cmpi slt, %411, %491 : vector<1x128xi32>
    %493 = arith.andi %490, %492 : vector<1x128xi1>
    %494 = arith.extui %493 : vector<1x128xi1> to vector<1x128xi32>
    %495 = arith.sitofp %494 : vector<1x128xi32> to vector<1x128xf32>
    %496 = vector.broadcast %495 : vector<1x128xf32> to vector<32x128xf32>
    %497 = arith.mulf %488, %496 : vector<32x128xf32>
    %498 = arith.addf %486, %497 : vector<32x128xf32>
    %c0_127 = arith.constant 0 : index
    %c0_128 = arith.constant 0 : index
    %499 = vector.load %arg13[%c0_127, %c0_128] : memref<128x32xf32, #tpu.memory_space<vmem>>, vector<128x32xf32>
    %cst_129 = arith.constant dense<0.000000e+00> : vector<32x32xf32>
    %500 = tpu.matmul %498, %499, %cst_129 {dimension_numbers = #tpu.dot_dimension_numbers<[1], [0], [0], [1], [0, 0, 1, 1], [], []>} : vector<32x128xf32>, vector<128x32xf32>, vector<32x32xf32> -> vector<32x32xf32>
    %c0_130 = arith.constant 0 : index
    %c0_131 = arith.constant 0 : index
    %501 = vector.load %arg11[%c0_130, %c0_131] : memref<32x1xf32, #tpu.memory_space<vmem>>, vector<32x1xf32>
    %502 = vector.broadcast %501 : vector<32x1xf32> to vector<32x32xf32>
    %503 = arith.addf %500, %502 : vector<32x32xf32>
    %cst_132 = arith.constant 0.000000e+00 : f32
    %504 = vector.broadcast %cst_132 : f32 to vector<32x32xf32>
    %505 = arith.maximumf %503, %504 : vector<32x32xf32>
    %c0_133 = arith.constant 0 : index
    %c0_134 = arith.constant 0 : index
    %c0_135 = arith.constant 0 : index
    %506 = vector.load %arg18[%c0_133, %c0_134, %c0_135] : memref<1x32x32xf32, #tpu.memory_space<vmem>>, vector<1x32x32xf32>
    %507 = vector.shape_cast %506 : vector<1x32x32xf32> to vector<32x32xf32>
    %508 = vector.shape_cast %505 : vector<32x32xf32> to vector<1x32x32xf32>
    tpu.vector_store %arg18[%c0_133, %c0_134, %c0_135], %508 {strides = array<i32>} : memref<1x32x32xf32, #tpu.memory_space<vmem>>, vector<1x32x32xf32>,
    %c0_136 = arith.constant 0 : index
    %c0_137 = arith.constant 0 : index
    %509 = vector.load %arg14[%c0_136, %c0_137] : memref<32x2xf32, #tpu.memory_space<vmem>>, vector<32x2xf32>
    %cst_138 = arith.constant dense<0.000000e+00> : vector<32x2xf32>
    %510 = tpu.matmul %505, %509, %cst_138 {dimension_numbers = #tpu.dot_dimension_numbers<[1], [0], [0], [1], [0, 0, 1, 1], [], []>} : vector<32x32xf32>, vector<32x2xf32>, vector<32x2xf32> -> vector<32x2xf32>
    %c0_139 = arith.constant 0 : index
    %c0_140 = arith.constant 0 : index
    %511 = vector.load %arg15[%c0_139, %c0_140] : memref<10x32xf32, #tpu.memory_space<vmem>>, vector<10x32xf32>
    %cst_141 = arith.constant dense<0.000000e+00> : vector<10x2xf32>
    %512 = tpu.matmul %511, %510, %cst_141 {dimension_numbers = #tpu.dot_dimension_numbers<[1], [0], [0], [1], [0, 0, 1, 1], [], []>} : vector<10x32xf32>, vector<32x2xf32>, vector<10x2xf32> -> vector<10x2xf32>
    %c0_142 = arith.constant 0 : index
    %c0_143 = arith.constant 0 : index
    %513 = vector.load %arg16[%c0_142, %c0_143] : memref<10x1xf32, #tpu.memory_space<vmem>>, vector<10x1xf32>
    %514 = vector.broadcast %513 : vector<10x1xf32> to vector<10x2xf32>
    %515 = arith.addf %512, %514 : vector<10x2xf32>
    %c0_144 = arith.constant 0 : index
    %c0_145 = arith.constant 0 : index
    %c0_146 = arith.constant 0 : index
    %516 = vector.load %arg17[%c0_144, %c0_145, %c0_146] : memref<1x10x2xf32, #tpu.memory_space<vmem>>, vector<1x10x2xf32>
    %517 = vector.shape_cast %516 : vector<1x10x2xf32> to vector<10x2xf32>
    %518 = vector.shape_cast %515 : vector<10x2xf32> to vector<1x10x2xf32>
    tpu.vector_store %arg17[%c0_144, %c0_145, %c0_146], %518 {strides = array<i32>} : memref<1x10x2xf32, #tpu.memory_space<vmem>>, vector<1x10x2xf32>,
    return
  }
  func.func @transform_0(%arg0: i32) -> (i32, i32, i32) {
    %c0_i32 = arith.constant 0 : i32
    %c0_i32_0 = arith.constant 0 : i32
    %c0_i32_1 = arith.constant 0 : i32
    return %arg0, %c0_i32, %c0_i32_0 : i32, i32, i32
  }
  func.func @transform_1(%arg0: i32) -> (i32, i32) {
    %c0_i32 = arith.constant 0 : i32
    %c0_i32_0 = arith.constant 0 : i32
    %c0_i32_1 = arith.constant 0 : i32
    return %c0_i32, %c0_i32_0 : i32, i32
  }
  func.func @transform_2(%arg0: i32) -> (i32, i32) {
    %c0_i32 = arith.constant 0 : i32
    %c0_i32_0 = arith.constant 0 : i32
    %c0_i32_1 = arith.constant 0 : i32
    return %c0_i32, %c0_i32_0 : i32, i32
  }
  func.func @transform_3(%arg0: i32) -> (i32, i32) {
    %c0_i32 = arith.constant 0 : i32
    %c0_i32_0 = arith.constant 0 : i32
    %c0_i32_1 = arith.constant 0 : i32
    return %c0_i32, %c0_i32_0 : i32, i32
  }
  func.func @transform_4(%arg0: i32) -> (i32, i32) {
    %c0_i32 = arith.constant 0 : i32
    %c0_i32_0 = arith.constant 0 : i32
    %c0_i32_1 = arith.constant 0 : i32
    return %c0_i32, %c0_i32_0 : i32, i32
  }
  func.func @transform_5(%arg0: i32) -> (i32, i32) {
    %c0_i32 = arith.constant 0 : i32
    %c0_i32_0 = arith.constant 0 : i32
    %c0_i32_1 = arith.constant 0 : i32
    return %c0_i32, %c0_i32_0 : i32, i32
  }
  func.func @transform_6(%arg0: i32) -> (i32, i32) {
    %c0_i32 = arith.constant 0 : i32
    %c0_i32_0 = arith.constant 0 : i32
    %c0_i32_1 = arith.constant 0 : i32
    return %c0_i32, %c0_i32_0 : i32, i32
  }
  func.func @transform_7(%arg0: i32) -> (i32, i32) {
    %c0_i32 = arith.constant 0 : i32
    %c0_i32_0 = arith.constant 0 : i32
    %c0_i32_1 = arith.constant 0 : i32
    return %c0_i32, %c0_i32_0 : i32, i32
  }
  func.func @transform_8(%arg0: i32) -> (i32, i32) {
    %c0_i32 = arith.constant 0 : i32
    %c0_i32_0 = arith.constant 0 : i32
    %c0_i32_1 = arith.constant 0 : i32
    return %c0_i32, %c0_i32_0 : i32, i32
  }
  func.func @transform_9(%arg0: i32) -> (i32, i32) {
    %c0_i32 = arith.constant 0 : i32
    %c0_i32_0 = arith.constant 0 : i32
    %c0_i32_1 = arith.constant 0 : i32
    return %c0_i32, %c0_i32_0 : i32, i32
  }
  func.func @transform_10(%arg0: i32) -> (i32, i32) {
    %c0_i32 = arith.constant 0 : i32
    %c0_i32_0 = arith.constant 0 : i32
    %c0_i32_1 = arith.constant 0 : i32
    return %c0_i32, %c0_i32_0 : i32, i32
  }
  func.func @transform_11(%arg0: i32) -> (i32, i32) {
    %c0_i32 = arith.constant 0 : i32
    %c0_i32_0 = arith.constant 0 : i32
    %c0_i32_1 = arith.constant 0 : i32
    return %c0_i32, %c0_i32_0 : i32, i32
  }
  func.func @transform_12(%arg0: i32) -> (i32, i32) {
    %c0_i32 = arith.constant 0 : i32
    %c0_i32_0 = arith.constant 0 : i32
    %c0_i32_1 = arith.constant 0 : i32
    return %c0_i32, %c0_i32_0 : i32, i32
  }
  func.func @transform_13(%arg0: i32) -> (i32, i32) {
    %c0_i32 = arith.constant 0 : i32
    %c0_i32_0 = arith.constant 0 : i32
    %c0_i32_1 = arith.constant 0 : i32
    return %c0_i32, %c0_i32_0 : i32, i32
  }
  func.func @transform_14(%arg0: i32) -> (i32, i32) {
    %c0_i32 = arith.constant 0 : i32
    %c0_i32_0 = arith.constant 0 : i32
    %c0_i32_1 = arith.constant 0 : i32
    return %c0_i32, %c0_i32_0 : i32, i32
  }
  func.func @transform_15(%arg0: i32) -> (i32, i32) {
    %c0_i32 = arith.constant 0 : i32
    %c0_i32_0 = arith.constant 0 : i32
    %c0_i32_1 = arith.constant 0 : i32
    return %c0_i32, %c0_i32_0 : i32, i32
  }
  func.func @transform_16(%arg0: i32) -> (i32, i32, i32) {
    %c0_i32 = arith.constant 0 : i32
    %c0_i32_0 = arith.constant 0 : i32
    %c0_i32_1 = arith.constant 0 : i32
    return %arg0, %c0_i32, %c0_i32_0 : i32, i32, i32
  }
  func.func @transform_17(%arg0: i32) -> (i32, i32, i32) {
    %c0_i32 = arith.constant 0 : i32
    %c0_i32_0 = arith.constant 0 : i32
    %c0_i32_1 = arith.constant 0 : i32
    return %arg0, %c0_i32, %c0_i32_0 : i32, i32, i32
  }
}

</mosaic_0001>

<bundles_post_ra>
// kernel: gradcam_forward.1
= control target key start
LH: loop header
LB: loop body
LE: loop exit
PB: predicated region body
PF: predicated region fallthrough
CT: control target
= control target key end

     0   :  { %vm116_vm0 = vcmask 1041408   ;;  %v5596_v2 = vmov 0   ;;  %vm100_vm1 = vcmask 31744   ;;  %s3654_s27 = smov 16   ;;  %s3655_s28 = smov 15   ;;  %s5574_s0 = inlined_call_operand.vmem [shape: f32[1,4,512], index: 0, kind: input, shape index: {}]   ;;  %s5575_s1 = inlined_call_operand.vmem [shape: bf16[72,4], index: 1, kind: input, shape index: {}]   ;;  %s5576_s6 = inlined_call_operand.vmem [shape: f32[8,1], index: 6, kind: input, shape index: {}]   ;;  %s5577_s7 = inlined_call_operand.vmem [shape: f32[8,1], index: 7, kind: input, shape index: {}]   ;;  %s5578_s2 = inlined_call_operand.vmem [shape: bf16[72,8], index: 2, kind: input, shape index: {}]   ;;  %s5579_s3 = inlined_call_operand.vmem [shape: bf16[144,8], index: 3, kind: input, shape index: {}]   ;;  %s5580_s11 = inlined_call_operand.vmem [shape: f32[512,128], index: 11, kind: input, shape index: {}]   ;;  %s5581_s8 = inlined_call_operand.vmem [shape: f32[16,1], index: 8, kind: input, shape index: {}]   ;;  %s5582_s9 = inlined_call_operand.vmem [shape: f32[16,1], index: 9, kind: input, shape index: {}]   ;;  %s5583_s4 = inlined_call_operand.vmem [shape: bf16[144,16], index: 4, kind: input, shape index: {}]   ;;  %s5584_s5 = inlined_call_operand.vmem [shape: bf16[288,16], index: 5, kind: input, shape index: {}]   ;;  %s5585_s12 = inlined_call_operand.vmem [shape: f32[128,32], index: 12, kind: input, shape index: {}]   ;;  %s5586_s10 = inlined_call_operand.vmem [shape: f32[32,1], index: 10, kind: input, shape index: {}]   ;;  %s5587_s15 = inlined_call_operand.vmem [shape: f32[10,1], index: 15, kind: input, shape index: {}]   ;;  %s5588_s13 = inlined_call_operand.vmem [shape: f32[32,2], index: 13, kind: input, shape index: {}]   ;;  %s5589_s17 = inlined_call_operand.vmem [shape: f32[1,32,32], index: 17, kind: output, shape index: {1}]   ;;  %s5590_s14 = inlined_call_operand.vmem [shape: f32[10,32], index: 14, kind: input, shape index: {}]   ;;  %s5591_s16 = inlined_call_operand.vmem [shape: f32[1,10,2], index: 16, kind: output, shape index: {0}]  }
   0x1   :  { %5624 = sst [smem:[#allocation25_spill]] %s5574_s0  ;;  %161 = vmatprep.mubr.bf16.mxu0 %v5596_v2  ;;  %242 = vmatprep.mubr.bf16.mxu1 %v5596_v2  ;;  %v572_v12 = vld [vmem:[%s5576_s6] sm:$0xff]  ;;  %s3656_s29 = smov 1  }
   0x2   :  { %5625 = sst [smem:[#allocation26_spill]] %s5575_s1  ;;  %s5626_s26 = sld [smem:[#allocation25_spill]]  ;;  %3602 = vset.pattern.permute.xlu0 %v5596_v2  ;;  %3603 = vset.pattern.permute.xlu1 %v5596_v2  ;;  %v977_v57 = vld [vmem:[%s5577_s7] sm:$0xff] }
   0x3   :  { %s5627_s30 = sld [smem:[#allocation26_spill]]  ;;  %575 = vperm.xlu0 %3602, %v572_v12   ;;  %s3657_s0 = smov 127  }
   0x4   :  { %s3659_s18 = smov 112   ;;  %s3660_s19 = smov 111  }
   0x5   :  { %s3668_s20 = smov 119  }
   0x8   :  { %v56_v0 = vld [vmem:[%s5626_s26] sm:$0xff]  ;;  %v57_v1 = vld [vmem:[%s5626_s26 + $0x8] sm:$0xff]  ;;  %s3653_s26 = smov 17  }
   0x9   :  { %v60_v3 = vcombine.high %v56_v0, %v56_v0  ;;  %v61_v4 = vcombine.high %v57_v1, %v57_v1  ;;  %v64_v5 = vpack.c.bf16 %v56_v0, %v56_v0  ;;  %v66_v6 = vpack.c.bf16 %v57_v1, %v57_v1  ;;  %v3606_v11 = vld [vmem:[%s5627_s30] sm:$0xff]   ;;  %v3607_v13 = vld [vmem:[%s5627_s30 + $0x8] sm:$0xff]   ;;  %v3608_v14 = vld [vmem:[%s5627_s30 + $0x10] sm:$0xff]  }
   0xa   :  { %v3609_v15 = vld [vmem:[%s5627_s30 + $0x18] sm:$0xff]   ;;  %v3610_v16 = vld [vmem:[%s5627_s30 + $0x20] ss:$0 sps:$4 sm:$0xff]   ;;  %s3658_s30 = smov 113  }
   0xb   :  { %v65_v7 = vpack.c.bf16 %v60_v3, %v60_v3  ;;  %v67_v8 = vpack.c.bf16 %v61_v4, %v61_v4  ;;  %v118_v9 = vsel %vm116_vm0, %v64_v5, 0  ;;  %v124_v10 = vsel %vm116_vm0, %v66_v6, 0 }
   0xc   :  { %v291_v4 = vlaneseq }
   0xd   :  { %3041 = vmatprep.subr.msk.bf16.mxu0 %vm116_vm0, %v65_v7  ;;  %3047 = vmatprep.subr.msk.bf16.mxu1 %vm116_vm0, %v67_v8 }
   0xe   :  { %130 = vmatpush1.bf16.msra.mxu0 %v118_v9  ;;  %211 = vmatpush1.bf16.msra.mxu1 %v124_v10  ;;  %v3876_v7 = vand.u32 127, %v291_v4 }
  0x10   :  { %v294_v10 = vadd.s32 256, %v3876_v7  ;;  %vm312_vm11 = vcmp.lt.s32.totalorder %v3876_v7, 17  ;;  %vm353_vm13 = vcmp.lt.s32.totalorder %v3876_v7, 16 }
  0x11   :  { %3042 = vmatmul.mubr.msk.bf16.vlgmr.msra.gmra.mrb[0].mxu0 %vm100_vm1, %v3606_v11  ;;  %3048 = vmatmul.mubr.msk.bf16.vlgmr.msra.gmra.mrb[0].mxu1 %vm100_vm1, %v3606_v11 }
  0x12   :  { %252 = vmatprep.mubr.bf16.mxu1 %v5596_v2  ;;  %171 = vmatprep.mubr.bf16.mxu0 %v5596_v2 }
  0x19   :  { %3049 = vmatmul.mubr.msk.bf16.gmra.mrb[4].mxu1 %vm100_vm1, %v3607_v13  ;;  %3043 = vmatmul.mubr.msk.bf16.gmra.mrb[4].mxu0 %vm100_vm1, %v3607_v13  ;;  %v295_v13 = vadd.s32 384, %v3876_v7 }
  0x1a   :  { %181 = vmatprep.mubr.bf16.mxu0 %v5596_v2  ;;  %262 = vmatprep.mubr.bf16.mxu1 %v5596_v2 }
  0x21   :  { %3044 = vmatmul.mubr.msk.bf16.gmra.mrb[8].mxu0 %vm100_vm1, %v3608_v14  ;;  %3050 = vmatmul.mubr.msk.bf16.gmra.mrb[8].mxu1 %vm100_vm1, %v3608_v14  ;;  %v296_v14 = vand.u32 255, %v3876_v7 }
  0x22   :  { %191 = vmatprep.mubr.bf16.mxu0 %v5596_v2  ;;  %272 = vmatprep.mubr.bf16.mxu1 %v5596_v2 }
  0x23   :  { %vm3895_vm2 = vcmp.ge.s32.totalorder %v296_v14, 16 }
  0x29   :  { %3045 = vmatmul.mubr.msk.bf16.gmra.mrb[12].mxu0 %vm100_vm1, %v3609_v15  ;;  %3051 = vmatmul.mubr.msk.bf16.gmra.mrb[12].mxu1 %vm100_vm1, %v3609_v15  ;;  %v300_v15 = vand.u32 15, %v3876_v7 }
  0x2a   :  { %201 = vmatprep.mubr.bf16.mxu0 %v5596_v2  ;;  %282 = vmatprep.mubr.bf16.mxu1 %v5596_v2 }
  0x2b   :  { %vm321_vm3 = vcmp.ge.s32.totalorder %v300_v15, 1  ;;  %vm3909_vm7 = vcmp.lt.s32.totalorder %v300_v15, 15 }
  0x2c   :  { %vm325_vm6 = vmand %vm3895_vm2, %vm321_vm3 }
  0x2d   :  { %vm391_vm15 = vmand %vm3895_vm2, %vm3909_vm7 }
  0x31   :  { %3046 = vmatmul.mubr.msk.bf16.gmra.mrb[16].mxu0 %vm100_vm1, %v3610_v16  ;;  %3052 = vmatmul.mubr.msk.bf16.gmra.mrb[16].mxu1 %vm100_vm1, %v3610_v16  ;;  %v293_v16 = vadd.s32 128, %v3876_v7 }
  0x32   :  { %683 = vmatprep.mubr.bf16.mxu0 %v5596_v2  ;;  %764 = vmatprep.mubr.bf16.mxu1 %v5596_v2 }
  0x82   :  { %v3854_v58 = vpop.permute.xlu0 %575 }
  0xe4   :  { %v163_v17 = vpop.f32.mrb[0].mxu0  ;;  %v244_v18 = vpop.f32.mrb[0].mxu1 }
  0xe5   :  { %308 = vrot.lane.b32.xlu1 %v244_v18, %s3653_s26  ;;  %v246_v19 = vpop.f32.mrb[1].mxu1  ;;  %304 = vrot.lane.b32.xlu0 %v163_v17, %s3653_s26  ;;  %v165_v20 = vpop.f32.mrb[1].mxu0  ;;  %v298_v17 = vand.u32 255, %v294_v10  ;;  %v302_v18 = vand.u32 15, %v294_v10 }
  0xe6   :  { %v248_v21 = vpop.f32.mrb[2].mxu1  ;;  %v167_v22 = vpop.f32.mrb[2].mxu0 }
  0xe7   :  { %v250_v23 = vpop.f32.mrb[3].mxu1  ;;  %v169_v24 = vpop.f32.mrb[3].mxu0  ;;  %vm3899_vm4 = vcmp.ge.s32.totalorder %v298_v17, 16  ;;  %vm3903_vm5 = vcmp.ge.s32.totalorder %v302_v18, 1  ;;  %vm3925_vm10 = vcmp.lt.s32.totalorder %v302_v18, 15 }
  0xe8   :  { %vm327_vm9 = vmand %vm3899_vm4, %vm3903_vm5 }
  0xe9   :  { %310 = vrot.lane.b32.xlu1 %v246_v19, %s3653_s26  ;;  %306 = vrot.lane.b32.xlu0 %v165_v20, %s3653_s26  ;;  %vm393_vm1 = vmand %vm3899_vm4, %vm3925_vm10 }
  0xec   :  { %v254_v25 = vpop.f32.mrb[4].mxu1  ;;  %v173_v26 = vpop.f32.mrb[4].mxu0 }
  0xed   :  { %351 = vrot.lane.b32.xlu0 %v250_v23, %s3654_s27  ;;  %345 = vrot.lane.b32.xlu1 %v167_v22, %s3654_s27  ;;  %v256_v27 = vpop.f32.mrb[5].mxu1  ;;  %v175_v28 = vpop.f32.mrb[5].mxu0  ;;  %v301_v23 = vand.u32 15, %v293_v16 }
  0xee   :  { %v258_v29 = vpop.f32.mrb[6].mxu1  ;;  %v177_v30 = vpop.f32.mrb[6].mxu0 }
  0xef   :  { %v260_v31 = vpop.f32.mrb[7].mxu1  ;;  %v179_v32 = vpop.f32.mrb[7].mxu0  ;;  %vm3930_vm12 = vcmp.ge.s32.totalorder %v301_v23, 1  ;;  %vm3962_vm0 = vcmp.lt.s32.totalorder %v301_v23, 15 }
  0xf1   :  { %349 = vrot.lane.b32.xlu1 %v248_v21, %s3654_s27  ;;  %347 = vrot.lane.b32.xlu0 %v169_v24, %s3654_s27  ;;  %v303_v21 = vand.u32 15, %v295_v13 }
  0xf3   :  { %vm3917_vm8 = vcmp.ge.s32.totalorder %v303_v21, 1  ;;  %vm3941_vm14 = vcmp.lt.s32.totalorder %v303_v21, 15 }
  0xf4   :  { %v3819_v33 = vpop.f32.mrb[8].mxu0  ;;  %v3821_v34 = vpop.f32.mrb[8].mxu1 }
  0xf5   :  { %378 = vrot.lane.b32.xlu1 %v254_v25, %s3655_s28  ;;  %374 = vrot.lane.b32.xlu0 %v173_v26, %s3655_s28  ;;  %v3825_v35 = vpop.f32.mrb[9].mxu0  ;;  %v3827_v36 = vpop.f32.mrb[9].mxu1 }
  0xf6   :  { %v187_v37 = vpop.f32.mrb[10].mxu0  ;;  %v268_v38 = vpop.f32.mrb[10].mxu1 }
  0xf7   :  { %v189_v39 = vpop.f32.mrb[11].mxu0  ;;  %v270_v40 = vpop.f32.mrb[11].mxu1 }
  0xf9   :  { %380 = vrot.lane.b32.xlu0 %v256_v27, %s3655_s28  ;;  %376 = vrot.lane.b32.xlu1 %v175_v28, %s3655_s28 }
  0xfc   :  { %v193_v41 = vpop.f32.mrb[12].mxu0  ;;  %v274_v42 = vpop.f32.mrb[12].mxu1 }
  0xfd   :  { %415 = vrot.lane.b32.xlu1 %v258_v29, %s3656_s29  ;;  %411 = vrot.lane.b32.xlu0 %v177_v30, %s3656_s29  ;;  %v195_v43 = vpop.f32.mrb[13].mxu0  ;;  %v276_v44 = vpop.f32.mrb[13].mxu1 }
  0xfe   :  { %v197_v45 = vpop.f32.mrb[14].mxu0  ;;  %v278_v46 = vpop.f32.mrb[14].mxu1 }
  0xff   :  { %v199_v47 = vpop.f32.mrb[15].mxu0  ;;  %v280_v48 = vpop.f32.mrb[15].mxu1 }
 0x101   :  { %417 = vrot.lane.b32.xlu0 %v260_v31, %s3656_s29  ;;  %413 = vrot.lane.b32.xlu1 %v179_v32, %s3656_s29  ;;  %v5594_v32 = vmov 0.0  }
 0x102   :  { %v4031_v10 = vsel %vm3925_vm10, 1.0, %v5594_v32 }
 0x103   :  { %5648 = vst [vmem:[#allocation4_spill] sm:$0xff] %v4031_v10 }
 0x104   :  { %v203_v49 = vpop.f32.mrb[16].mxu0  ;;  %v284_v50 = vpop.f32.mrb[16].mxu1 }
 0x105   :  { %444 = vrot.lane.b32.xlu0 %v187_v37, %s3657_s0  ;;  %446 = vrot.lane.b32.xlu1 %v189_v39, %s3657_s0  ;;  %v205_v51 = vpop.f32.mrb[17].mxu0  ;;  %v286_v52 = vpop.f32.mrb[17].mxu1  ;;  %v3935_v37 = vsel %vm325_vm6, 1.0, %v5594_v32  ;;  %vm481_vm6 = vcmp.lt.s32.totalorder %v3876_v7, 113 }
 0x106   :  { %v207_v53 = vpop.f32.mrb[18].mxu0  ;;  %v288_v54 = vpop.f32.mrb[18].mxu1 }
 0x107   :  { %v208_v55 = vpop.f32.mrb[19].mxu0  ;;  %v289_v56 = vpop.f32.mrb[19].mxu1  ;;  %v4005_v53 = vsel %vm391_vm15, 1.0, %v5594_v32  ;;  %v4010_v54 = vsel %vm3909_vm7, 1.0, %v5594_v32  ;;  %vm547_vm15 = vcmp.lt.s32.totalorder %v3876_v7, 111 }
 0x108   :  { %5646 = vst [vmem:[#allocation2_spill] sm:$0xff] %v4005_v53  ;;  %5647 = vst [vmem:[#allocation3_spill] sm:$0xff] %v4010_v54  ;;  %v4015_v55 = vsel %vm3962_vm0, 1.0, %v5594_v32  ;;  %v4018_v56 = vsel %vm393_vm1, 1.0, %v5594_v32  ;;  %vm622_vm1 = vcmask 64512  }
 0x109   :  { %448 = vrot.lane.b32.xlu0 %v268_v38, %s3657_s0  ;;  %450 = vrot.lane.b32.xlu1 %v270_v40, %s3657_s0  ;;  %v3938_v38 = vsel %vm321_vm3, 1.0, %v5594_v32  ;;  %v3952_v40 = vsel %vm3917_vm8, 1.0, %v5594_v32  ;;  %vm382_vm3 = vcmp.lt.s32.totalorder %v3876_v7, 15 }
 0x10d   :  { %473 = vrot.lane.b32.xlu0 %v193_v41, %s3658_s30  ;;  %475 = vrot.lane.b32.xlu1 %v195_v43, %s3658_s30  ;;  %v3955_v41 = vsel %vm327_vm9, 1.0, %v5594_v32 }
 0x111   :  { %477 = vrot.lane.b32.xlu0 %v274_v42, %s3658_s30  ;;  %479 = vrot.lane.b32.xlu1 %v276_v44, %s3658_s30  ;;  %v3960_v42 = vsel %vm3903_vm5, 1.0, %v5594_v32 }
 0x115   :  { %514 = vrot.lane.b32.xlu1 %v278_v46, %s3659_s18  ;;  %512 = vrot.lane.b32.xlu0 %v199_v47, %s3659_s18  ;;  %v3977_v46 = vsel %vm3930_vm12, 1.0, %v5594_v32  ;;  %v3982_v47 = vsel %vm3895_vm2, 1.0, %v5594_v32  ;;  %vm419_vm2 = vcmp.lt.s32.totalorder %v3876_v7, 1 }
 0x119   :  { %510 = vrot.lane.b32.xlu1 %v197_v45, %s3659_s18  ;;  %539 = vrot.lane.b32.xlu0 %v203_v49, %s3660_s19  ;;  %v297_v49 = vand.u32 255, %v293_v16 }
 0x11b   :  { %vm4042_vm5 = vcmp.lt.s32.totalorder %v297_v49, 240 }
 0x11c   :  { %vm491_vm9 = vmand %vm4042_vm5, %vm3930_vm12 }
 0x11d   :  { %516 = vrot.lane.b32.xlu1 %v280_v48, %s3659_s18  ;;  %543 = vrot.lane.b32.xlu0 %v284_v50, %s3660_s19  ;;  %v3987_v48 = vsel %vm3899_vm4, 1.0, %v5594_v32  ;;  %vm452_vm4 = vcmp.lt.s32.totalorder %v3876_v7, 127  ;;  %v4119_v29 = vsel %vm491_vm9, 1.0, %v5594_v32  ;;  %vm553_vm12 = vmand %vm4042_vm5, %vm3962_vm0 }
 0x11e   :  { %5653 = vst [vmem:[#allocation5_spill] sm:$0xff] %v4119_v29 }
 0x121   :  { %980 = vperm.xlu0 %3602, %v977_v57   ;;  %541 = vrot.lane.b32.xlu1 %v205_v51, %s3660_s19  ;;  %v3997_v51 = vsel %vm3941_vm14, 1.0, %v5594_v32 }
 0x125   :  { %545 = vrot.lane.b32.xlu1 %v286_v52, %s3660_s19  ;;  %v299_v52 = vand.u32 255, %v295_v13 }
 0x127   :  { %vm4059_vm7 = vcmp.lt.s32.totalorder %v299_v52, 240 }
 0x128   :  { %vm493_vm10 = vmand %vm4059_vm7, %vm3917_vm8  ;;  %vm518_vm8 = vcmp.lt.s32.totalorder %v3876_v7, 112 }
 0x129   :  { %vm555_vm0 = vmand %vm4059_vm7, %vm3941_vm14  ;;  %vm638_vm14 = vcmask 1043456  }
 0x157   :  { %v3856_v59 = vpop.permute.xlu1 %308  ;;  %v3858_v60 = vpop.permute.xlu0 %304 }
 0x15b   :  { %v3860_v61 = vpop.permute.xlu1 %310  ;;  %v3862_v62 = vpop.permute.xlu0 %306 }
 0x15c   :  { %v313_v57 = vsel %vm312_vm11, %v3856_v59, %v3860_v61  ;;  %v316_v4 = vsel %vm312_vm11, %v3860_v61, %v3858_v60  ;;  %v314_v17 = vsel %vm312_vm11, %v3862_v62, %v3856_v59  ;;  %v315_v18 = vsel %vm312_vm11, %v3858_v60, %v3862_v62 }
 0x15d   :  { %v337_v23 = vmul.f32 %v3935_v37, %v316_v4  ;;  %v340_v59 = vmul.f32 %v3952_v40, %v313_v57  ;;  %v339_v4 = vmul.f32 %v3955_v41, %v314_v17 }
 0x15f   :  { %v3864_v63 = vpop.permute.xlu0 %351  ;;  %v3866_v0 = vpop.permute.xlu1 %345 }
 0x160   :  { %v357_v50 = vsel %vm353_vm13, %v3864_v63, %v3866_v0 }
 0x161   :  { %v366_v15 = vmul.f32 %v3982_v47, %v357_v50  ;;  %v338_v50 = vmul.f32 %v3977_v46, %v315_v18 }
 0x163   :  { %v3868_v1 = vpop.permute.xlu1 %349  ;;  %v3870_v3 = vpop.permute.xlu0 %347  ;;  %v370_v52 = vadd.f32 %v366_v15, %v337_v23 }
 0x164   :  { %v355_v60 = vsel %vm353_vm13, %v3870_v3, %v3868_v1 }
 0x167   :  { %v3872_v5 = vpop.permute.xlu1 %378  ;;  %v3874_v6 = vpop.permute.xlu0 %374 }
 0x16b   :  { %v3878_v8 = vpop.permute.xlu0 %380  ;;  %v3880_v9 = vpop.permute.xlu1 %376 }
 0x16c   :  { %v386_v16 = vsel %vm382_vm3, %v3878_v8, %v3874_v6  ;;  %v385_v21 = vsel %vm382_vm3, %v3874_v6, %v3880_v9  ;;  %v356_v6 = vsel %vm353_vm13, %v3866_v0, %v3870_v3  ;;  %v383_v24 = vsel %vm382_vm3, %v3872_v5, %v3878_v8 }
 0x16d   :  { %v403_v25 = vmul.f32 %v4005_v53, %v386_v16  ;;  %v384_v0 = vsel %vm382_vm3, %v3880_v9, %v3872_v5  ;;  %v404_v3 = vmul.f32 %v4015_v55, %v385_v21  ;;  %v354_v8 = vsel %vm353_vm13, %v3868_v1, %v3864_v63 }
 0x16e   :  { %v371_v9 = vadd.f32 %v356_v6, %v338_v50  ;;  %v406_v31 = vmul.f32 %v3997_v51, %v383_v24  ;;  %v405_v15 = vmul.f32 %v4018_v56, %v384_v0  ;;  %v373_v21 = vadd.f32 %v354_v8, %v340_v59 }
 0x16f   :  { %v3883_v11 = vpop.permute.xlu1 %415  ;;  %v3885_v12 = vpop.permute.xlu0 %411  ;;  %v4144_v0 = vsel %vm4042_vm5, 1.0, %v5594_v32 }
 0x170   :  { %v408_v23 = vadd.f32 %v404_v3, %v371_v9  ;;  %v410_v24 = vadd.f32 %v406_v31, %v373_v21  ;;  %5655 = vst [vmem:[#allocation7_spill] sm:$0xff] %v4144_v0  ;;  %v4180_v21 = vsel %vm553_vm12, 1.0, %v5594_v32  ;;  %vm3026_vm12 = vcmask 9216  }
 0x171   :  { %5657 = vst [vmem:[#allocation9_spill] sm:$0xff] %v4180_v21 }
 0x173   :  { %v3891_v19 = vpop.permute.xlu0 %417  ;;  %v3893_v20 = vpop.permute.xlu1 %413 }
 0x174   :  { %v423_v62 = vsel %vm419_vm2, %v3891_v19, %v3885_v12  ;;  %v422_v26 = vsel %vm419_vm2, %v3885_v12, %v3893_v20  ;;  %v368_v12 = vmul.f32 %v3987_v48, %v355_v60  ;;  %v420_v57 = vsel %vm419_vm2, %v3883_v11, %v3891_v19 }
 0x175   :  { %v432_v5 = vmul.f32 %v3938_v38, %v423_v62  ;;  %v421_v63 = vsel %vm419_vm2, %v3893_v20, %v3883_v11  ;;  %v433_v1 = vmul.f32 %v3977_v46, %v422_v26  ;;  %v407_v19 = vadd.f32 %v403_v25, %v370_v52 }
 0x176   :  { %v435_v60 = vmul.f32 %v3952_v40, %v420_v57  ;;  %v4123_v62 = vsel %vm493_vm10, 1.0, %v5594_v32  ;;  %v372_v11 = vadd.f32 %v368_v12, %v339_v4  ;;  %v434_v6 = vmul.f32 %v3960_v42, %v421_v63 }
 0x177   :  { %v3913_v27 = vpop.permute.xlu0 %444  ;;  %v3915_v28 = vpop.permute.xlu1 %446  ;;  %5654 = vst [vmem:[#allocation6_spill] sm:$0xff] %v4123_v62  ;;  %v436_v20 = vadd.f32 %v432_v5, %v407_v19  ;;  %v437_v25 = vadd.f32 %v433_v1, %v408_v23 }
 0x178   :  { %v455_v59 = vsel %vm452_vm4, %v3913_v27, %v3915_v28  ;;  %v409_v26 = vadd.f32 %v405_v15, %v372_v11  ;;  %v439_v12 = vadd.f32 %v435_v60, %v410_v24 }
 0x179   :  { %v440_v9 = vadd.f32 %v436_v20, %v3819_v33  ;;  %v465_v31 = vmul.f32 %v4010_v54, %v455_v59  ;;  %v441_v1 = vadd.f32 %v437_v25, %v3825_v35  ;;  %v4168_v33 = vsel %vm4059_vm7, 1.0, %v5594_v32 }
 0x17a   :  { %v438_v5 = vadd.f32 %v434_v6, %v409_v26  ;;  %5656 = vst [vmem:[#allocation8_spill] sm:$0xff] %v4168_v33  ;;  %v443_v11 = vadd.f32 %v439_v12, %v3827_v36 }
 0x17b   :  { %v3970_v44 = vpop.permute.xlu0 %448  ;;  %v3972_v45 = vpop.permute.xlu1 %450  ;;  %v469_v23 = vadd.f32 %v465_v31, %v440_v9 }
 0x17c   :  { %v454_v17 = vsel %vm452_vm4, %v3915_v28, %v3970_v44  ;;  %v453_v50 = vsel %vm452_vm4, %v3970_v44, %v3972_v45  ;;  %v456_v57 = vsel %vm452_vm4, %v3972_v45, %v3913_v27  ;;  %v442_v60 = vadd.f32 %v438_v5, %v3821_v34 }
 0x17d   :  { %v466_v28 = vmul.f32 %v4015_v55, %v454_v17  ;;  %v467_v27 = vmul.f32 %v4031_v10, %v453_v50 }
 0x17f   :  { %v4034_v13 = vpop.permute.xlu0 %473  ;;  %v476_v14 = vpop.permute.xlu1 %475  ;;  %v470_v19 = vadd.f32 %v466_v28, %v441_v1  ;;  %v471_v24 = vadd.f32 %v467_v27, %v442_v60 }
 0x180   :  { %v484_v44 = vsel %vm481_vm6, %v4034_v13, %v476_v14 }
 0x181   :  { %v502_v4 = vmul.f32 %v3938_v38, %v484_v44 }
 0x183   :  { %v478_v30 = vpop.permute.xlu0 %477  ;;  %v480_v49 = vpop.permute.xlu1 %479  ;;  %v506_v59 = vadd.f32 %v502_v4, %v469_v23 }
 0x184   :  { %v483_v52 = vsel %vm481_vm6, %v476_v14, %v478_v30  ;;  %v468_v14 = vmul.f32 %v3997_v51, %v456_v57  ;;  %v482_v43 = vsel %vm481_vm6, %v478_v30, %v480_v49  ;;  %v485_v35 = vsel %vm481_vm6, %v480_v49, %v4034_v13 }
 0x185   :  { %v503_v45 = vmul.f32 %v4119_v29, %v483_v52  ;;  %v504_v13 = vmul.f32 %v3960_v42, %v482_v43  ;;  %v505_v49 = vmul.f32 %v4123_v62, %v485_v35  ;;  %v4204_v57 = vsel %vm555_vm0, 1.0, %v5594_v32 }
 0x186   :  { %v472_v25 = vadd.f32 %v468_v14, %v443_v11  ;;  %5658 = vst [vmem:[#allocation10_spill] sm:$0xff] %v4204_v57 }
 0x187   :  { %v515_v16 = vpop.permute.xlu1 %514  ;;  %v513_v18 = vpop.permute.xlu0 %512  ;;  %v507_v6 = vadd.f32 %v503_v45, %v470_v19  ;;  %v508_v22 = vadd.f32 %v504_v13, %v471_v24  ;;  %v3613_v24 = vld [vmem:[%s5578_s2 + $0x10] sm:$0xff]  }
 0x188   :  { %v520_v63 = vsel %vm518_vm8, %v513_v18, %v515_v16  ;;  %v509_v28 = vadd.f32 %v505_v49, %v472_v25  ;;  %v3614_v25 = vld [vmem:[%s5578_s2 + $0x18] sm:$0xff]  }
 0x189   :  { %v532_v15 = vmul.f32 %v4144_v0, %v520_v63 }
 0x18b   :  { %v511_v3 = vpop.permute.xlu1 %510  ;;  %v540_v8 = vpop.permute.xlu0 %539  ;;  %v536_v34 = vadd.f32 %v532_v15, %v507_v6 }
 0x18c   :  { %v521_v17 = vsel %vm518_vm8, %v511_v3, %v513_v18 }
 0x18d   :  { %v535_v12 = vadd.f32 %v521_v17, %v506_v59  ;;  %v3612_v17 = vld [vmem:[%s5578_s2 + $0x8] sm:$0xff]   ;;  %v3615_v59 = vld [vmem:[%s5578_s2 + $0x20] ss:$0 sps:$4 sm:$0xff]  }
 0x18f   :  { %v517_v61 = vpop.permute.xlu1 %516  ;;  %v544_v20 = vpop.permute.xlu0 %543 }
 0x190   :  { %v522_v30 = vsel %vm518_vm8, %v517_v61, %v511_v3  ;;  %v519_v18 = vsel %vm518_vm8, %v515_v16, %v517_v61 }
 0x191   :  { %v534_v36 = vmul.f32 %v4168_v33, %v522_v30  ;;  %v537_v31 = vadd.f32 %v519_v18, %v508_v22 }
 0x193   :  { %v542_v26 = vpop.permute.xlu1 %541  ;;  %v538_v63 = vadd.f32 %v534_v36, %v509_v28 }
 0x194   :  { %v549_v50 = vsel %vm547_vm15, %v542_v26, %v544_v20  ;;  %v550_v52 = vsel %vm547_vm15, %v540_v8, %v542_v26 }
 0x195   :  { %v564_v3 = vmul.f32 %v4010_v54, %v550_v52  ;;  %v565_v39 = vmul.f32 %v4180_v21, %v549_v50 }
 0x197   :  { %v568_v44 = vadd.f32 %v564_v3, %v535_v12  ;;  %v569_v5 = vadd.f32 %v565_v39, %v536_v34  ;;  %v546_v9 = vpop.permute.xlu1 %545 }
 0x198   :  { %v548_v1 = vsel %vm547_vm15, %v544_v20, %v546_v9  ;;  %v551_v16 = vsel %vm547_vm15, %v546_v9, %v540_v8  ;;  %v3611_v20 = vld [vmem:[%s5578_s2] sm:$0xff]  }
 0x199   :  { %v566_v27 = vmul.f32 %v4031_v10, %v548_v1  ;;  %v567_v45 = vmul.f32 %v4204_v57, %v551_v16  ;;  %v579_v14 = vadd.f32 %v3854_v58, %v569_v5  ;;  %v578_v4 = vadd.f32 %v3854_v58, %v568_v44 }
 0x19b   :  { %v570_v43 = vadd.f32 %v566_v27, %v537_v31  ;;  %v571_v35 = vadd.f32 %v567_v45, %v538_v63  ;;  %v583_v61 = vmax.f32 %v579_v14, 0.0  ;;  %v582_v19 = vmax.f32 %v578_v4, 0.0 }
 0x19d   :  { %v587_v15 = vpack.c.bf16 %v583_v61, %v583_v61  ;;  %v586_v23 = vpack.c.bf16 %v582_v19, %v582_v19  ;;  %v581_v60 = vadd.f32 %v3854_v58, %v571_v35  ;;  %v580_v11 = vadd.f32 %v3854_v58, %v570_v43 }
 0x19f   :  { %3086 = vmatprep.subr.msk.bf16.mxu0 %vm638_vm14, %v587_v15  ;;  %v640_v8 = vsel %vm638_vm14, %v586_v23, 0  ;;  %v585_v30 = vmax.f32 %v581_v60, 0.0  ;;  %v584_v6 = vmax.f32 %v580_v11, 0.0 }
 0x1a0   :  { %652 = vmatpush1.bf16.msra.mxu0 %v640_v8 }
 0x1a1   :  { %v589_v13 = vpack.c.bf16 %v585_v30, %v585_v30  ;;  %v588_v49 = vpack.c.bf16 %v584_v6, %v584_v6 }
 0x1a3   :  { %3092 = vmatprep.subr.msk.bf16.mxu1 %vm638_vm14, %v589_v13  ;;  %3087 = vmatmul.mubr.msk.bf16.vlgmr.msra.gmra.mrb[20].mxu0 %vm622_vm1, %v3611_v20  ;;  %v646_v58 = vsel %vm638_vm14, %v588_v49, 0 }
 0x1a4   :  { %733 = vmatpush1.bf16.msra.mxu1 %v646_v58  ;;  %693 = vmatprep.mubr.bf16.mxu0 %v5596_v2 }
 0x1a7   :  { %3093 = vmatmul.mubr.msk.bf16.vlgmr.msra.gmra.mrb[20].mxu1 %vm622_vm1, %v3611_v20 }
 0x1a8   :  { %774 = vmatprep.mubr.bf16.mxu1 %v5596_v2 }
 0x1ab   :  { %3088 = vmatmul.mubr.msk.bf16.gmra.mrb[24].mxu0 %vm622_vm1, %v3612_v17 }
 0x1ac   :  { %703 = vmatprep.mubr.bf16.mxu0 %v5596_v2 }
 0x1af   :  { %3094 = vmatmul.mubr.msk.bf16.gmra.mrb[24].mxu1 %vm622_vm1, %v3612_v17 }
 0x1b0   :  { %784 = vmatprep.mubr.bf16.mxu1 %v5596_v2 }
 0x1b3   :  { %3089 = vmatmul.mubr.msk.bf16.gmra.mrb[28].mxu0 %vm622_vm1, %v3613_v24 }
 0x1b4   :  { %713 = vmatprep.mubr.bf16.mxu0 %v5596_v2 }
 0x1b7   :  { %3095 = vmatmul.mubr.msk.bf16.gmra.mrb[28].mxu1 %vm622_vm1, %v3613_v24 }
 0x1b8   :  { %794 = vmatprep.mubr.bf16.mxu1 %v5596_v2 }
 0x1bb   :  { %3090 = vmatmul.mubr.msk.bf16.gmra.mrb[32].mxu0 %vm622_vm1, %v3614_v25 }
 0x1bc   :  { %723 = vmatprep.mubr.bf16.mxu0 %v5596_v2 }
 0x1bf   :  { %3096 = vmatmul.mubr.msk.bf16.gmra.mrb[32].mxu1 %vm622_vm1, %v3614_v25 }
 0x1c0   :  { %804 = vmatprep.mubr.bf16.mxu1 %v5596_v2 }
 0x1c3   :  { %3091 = vmatmul.mubr.msk.bf16.gmra.mrb[36].mxu0 %vm622_vm1, %v3615_v59 }
 0x1c4   :  { %1129 = vmatprep.mubr.bf16.mxu0 %v5596_v2 }
 0x1c7   :  { %3097 = vmatmul.mubr.msk.bf16.gmra.mrb[36].mxu1 %vm622_vm1, %v3615_v59  ;;  %v4295_v59 = vpop.permute.xlu0 %980 }
 0x1c8   :  { %1252 = vmatprep.mubr.bf16.mxu1 %v5596_v2 }
 0x276   :  { %v685_v26 = vpop.f32.mrb[20].mxu0 }
 0x277   :  { %813 = vrot.lane.b32.xlu0 %v685_v26, %s3653_s26  ;;  %v687_v34 = vpop.f32.mrb[21].mxu0 }
 0x278   :  { %v689_v36 = vpop.f32.mrb[22].mxu0 }
 0x279   :  { %v691_v50 = vpop.f32.mrb[23].mxu0 }
 0x27a   :  { %v766_v52 = vpop.f32.mrb[20].mxu1 }
 0x27b   :  { %817 = vrot.lane.b32.xlu1 %v766_v52, %s3653_s26  ;;  %v768_v12 = vpop.f32.mrb[21].mxu1 }
 0x27c   :  { %v770_v18 = vpop.f32.mrb[22].mxu1  ;;  %819 = vrot.lane.b32.xlu0 %v768_v12, %s3653_s26 }
 0x27d   :  { %v772_v3 = vpop.f32.mrb[23].mxu1 }
 0x27e   :  { %v695_v39 = vpop.f32.mrb[24].mxu0 }
 0x27f   :  { %815 = vrot.lane.b32.xlu1 %v687_v34, %s3653_s26  ;;  %v697_v28 = vpop.f32.mrb[25].mxu0 }
 0x280   :  { %839 = vrot.lane.b32.xlu0 %v772_v3, %s3654_s27  ;;  %v699_v22 = vpop.f32.mrb[26].mxu0 }
 0x281   :  { %v701_v44 = vpop.f32.mrb[27].mxu0 }
 0x282   :  { %v776_v5 = vpop.f32.mrb[24].mxu1 }
 0x283   :  { %833 = vrot.lane.b32.xlu1 %v689_v36, %s3654_s27  ;;  %v778_v9 = vpop.f32.mrb[25].mxu1 }
 0x284   :  { %835 = vrot.lane.b32.xlu0 %v691_v50, %s3654_s27  ;;  %v780_v31 = vpop.f32.mrb[26].mxu1 }
 0x285   :  { %v782_v63 = vpop.f32.mrb[27].mxu1 }
 0x286   :  { %v4262_v1 = vpop.f32.mrb[28].mxu0 }
 0x287   :  { %837 = vrot.lane.b32.xlu1 %v770_v18, %s3654_s27  ;;  %v4265_v16 = vpop.f32.mrb[29].mxu0 }
 0x288   :  { %853 = vrot.lane.b32.xlu0 %v695_v39, %s3655_s28  ;;  %v709_v27 = vpop.f32.mrb[30].mxu0 }
 0x289   :  { %v711_v45 = vpop.f32.mrb[31].mxu0 }
 0x28a   :  { %v4268_v14 = vpop.f32.mrb[28].mxu1 }
 0x28b   :  { %857 = vrot.lane.b32.xlu1 %v776_v5, %s3655_s28  ;;  %v4271_v4 = vpop.f32.mrb[29].mxu1 }
 0x28c   :  { %859 = vrot.lane.b32.xlu0 %v778_v9, %s3655_s28  ;;  %v790_v43 = vpop.f32.mrb[30].mxu1 }
 0x28d   :  { %v792_v35 = vpop.f32.mrb[31].mxu1 }
 0x28e   :  { %v715_v61 = vpop.f32.mrb[32].mxu0 }
 0x28f   :  { %855 = vrot.lane.b32.xlu1 %v697_v28, %s3655_s28  ;;  %v717_v19 = vpop.f32.mrb[33].mxu0 }
 0x290   :  { %873 = vrot.lane.b32.xlu0 %v699_v22, %s3656_s29  ;;  %v719_v15 = vpop.f32.mrb[34].mxu0 }
 0x291   :  { %v721_v23 = vpop.f32.mrb[35].mxu0 }
 0x292   :  { %v796_v60 = vpop.f32.mrb[32].mxu1 }
 0x293   :  { %877 = vrot.lane.b32.xlu1 %v780_v31, %s3656_s29  ;;  %v798_v11 = vpop.f32.mrb[33].mxu1 }
 0x294   :  { %879 = vrot.lane.b32.xlu0 %v782_v63, %s3656_s29  ;;  %v800_v8 = vpop.f32.mrb[34].mxu1 }
 0x295   :  { %v802_v30 = vpop.f32.mrb[35].mxu1 }
 0x296   :  { %v725_v20 = vpop.f32.mrb[36].mxu0 }
 0x297   :  { %875 = vrot.lane.b32.xlu1 %v701_v44, %s3656_s29  ;;  %v727_v6 = vpop.f32.mrb[37].mxu0 }
 0x298   :  { %897 = vrot.lane.b32.xlu0 %v709_v27, %s3657_s0  ;;  %v729_v13 = vpop.f32.mrb[38].mxu0 }
 0x299   :  { %v730_v49 = vpop.f32.mrb[39].mxu0 }
 0x29a   :  { %v806_v58 = vpop.f32.mrb[36].mxu1 }
 0x29b   :  { %899 = vrot.lane.b32.xlu1 %v711_v45, %s3657_s0  ;;  %v808_v17 = vpop.f32.mrb[37].mxu1 }
 0x29c   :  { %901 = vrot.lane.b32.xlu0 %v790_v43, %s3657_s0  ;;  %v810_v24 = vpop.f32.mrb[38].mxu1 }
 0x29d   :  { %v811_v25 = vpop.f32.mrb[39].mxu1 }
 0x29f   :  { %903 = vrot.lane.b32.xlu1 %v792_v35, %s3657_s0 }
 0x2a0   :  { %917 = vrot.lane.b32.xlu0 %v715_v61, %s3658_s30 }
 0x2a3   :  { %919 = vrot.lane.b32.xlu1 %v717_v19, %s3658_s30 }
 0x2a4   :  { %921 = vrot.lane.b32.xlu0 %v796_v60, %s3658_s30 }
 0x2a7   :  { %923 = vrot.lane.b32.xlu1 %v798_v11, %s3658_s30 }
 0x2a8   :  { %939 = vrot.lane.b32.xlu0 %v721_v23, %s3659_s18 }
 0x2ab   :  { %941 = vrot.lane.b32.xlu1 %v800_v8, %s3659_s18 }
 0x2ac   :  { %943 = vrot.lane.b32.xlu0 %v802_v30, %s3659_s18 }
 0x2af   :  { %937 = vrot.lane.b32.xlu1 %v719_v15, %s3659_s18 }
 0x2b0   :  { %959 = vrot.lane.b32.xlu0 %v727_v6, %s3660_s19 }
 0x2b3   :  { %957 = vrot.lane.b32.xlu1 %v725_v20, %s3660_s19 }
 0x2b4   :  { %963 = vrot.lane.b32.xlu0 %v808_v17, %s3660_s19 }
 0x2b7   :  { %961 = vrot.lane.b32.xlu1 %v806_v58, %s3660_s19 }
 0x2e9   :  { %v814_v26 = vpop.permute.xlu0 %813 }
 0x2ed   :  { %v818_v34 = vpop.permute.xlu1 %817 }
 0x2ee   :  { %v820_v36 = vpop.permute.xlu0 %819 }
 0x2ef   :  { %v821_v35 = vsel %vm312_vm11, %v818_v34, %v820_v36  ;;  %v824_v61 = vsel %vm312_vm11, %v820_v36, %v814_v26 }
 0x2f0   :  { %v825_v23 = vmul.f32 %v3935_v37, %v824_v61  ;;  %v828_v60 = vmul.f32 %v3952_v40, %v821_v35 }
 0x2f1   :  { %v816_v50 = vpop.permute.xlu1 %815 }
 0x2f2   :  { %v840_v52 = vpop.permute.xlu0 %839  ;;  %v822_v30 = vsel %vm312_vm11, %v816_v50, %v818_v34  ;;  %v823_v20 = vsel %vm312_vm11, %v814_v26, %v816_v50 }
 0x2f5   :  { %v834_v12 = vpop.permute.xlu1 %833 }
 0x2f6   :  { %v836_v18 = vpop.permute.xlu0 %835  ;;  %v844_v19 = vsel %vm353_vm13, %v840_v52, %v834_v12 }
 0x2f7   :  { %v845_v49 = vmul.f32 %v3982_v47, %v844_v19  ;;  %v843_v58 = vsel %vm353_vm13, %v834_v12, %v836_v18 }
 0x2f9   :  { %v838_v3 = vpop.permute.xlu1 %837  ;;  %v849_v35 = vadd.f32 %v845_v49, %v825_v23 }
 0x2fa   :  { %v854_v39 = vpop.permute.xlu0 %853  ;;  %v842_v11 = vsel %vm353_vm13, %v836_v18, %v838_v3  ;;  %v841_v25 = vsel %vm353_vm13, %v838_v3, %v840_v52  ;;  %v826_v3 = vmul.f32 %v3977_v46, %v823_v20 }
 0x2fb   :  { %v847_v26 = vmul.f32 %v3987_v48, %v842_v11  ;;  %v852_v61 = vadd.f32 %v841_v25, %v828_v60 }
 0x2fd   :  { %v858_v28 = vpop.permute.xlu1 %857 }
 0x2fe   :  { %v860_v22 = vpop.permute.xlu0 %859 }
 0x2ff   :  { %v861_v6 = vsel %vm382_vm3, %v858_v28, %v860_v22  ;;  %v864_v13 = vsel %vm382_vm3, %v860_v22, %v854_v39  ;;  %v827_v22 = vmul.f32 %v3955_v41, %v822_v30 }
 0x300   :  { %v865_v12 = vmul.f32 %v4005_v53, %v864_v13  ;;  %v868_v18 = vmul.f32 %v3997_v51, %v861_v6  ;;  %v850_v6 = vadd.f32 %v843_v58, %v826_v3 }
 0x301   :  { %v856_v44 = vpop.permute.xlu1 %855 }
 0x302   :  { %v874_v5 = vpop.permute.xlu0 %873  ;;  %v862_v17 = vsel %vm382_vm3, %v856_v44, %v858_v28  ;;  %v863_v24 = vsel %vm382_vm3, %v854_v39, %v856_v44  ;;  %v869_v20 = vadd.f32 %v865_v12, %v849_v35  ;;  %v872_v32 = vadd.f32 %v868_v18, %v852_v61 }
 0x303   :  { %v866_v44 = vmul.f32 %v4015_v55, %v863_v24 }
 0x305   :  { %v878_v9 = vpop.permute.xlu1 %877  ;;  %v870_v2 = vadd.f32 %v866_v44, %v850_v6 }
 0x306   :  { %v880_v31 = vpop.permute.xlu0 %879 }
 0x307   :  { %v881_v34 = vsel %vm419_vm2, %v878_v9, %v880_v31  ;;  %v884_v36 = vsel %vm419_vm2, %v880_v31, %v874_v5  ;;  %v867_v31 = vmul.f32 %v4018_v56, %v862_v17 }
 0x308   :  { %v885_v19 = vmul.f32 %v3938_v38, %v884_v36  ;;  %v888_v11 = vmul.f32 %v3952_v40, %v881_v34 }
 0x309   :  { %v876_v63 = vpop.permute.xlu1 %875 }
 0x30a   :  { %v898_v27 = vpop.permute.xlu0 %897  ;;  %v882_v28 = vsel %vm419_vm2, %v876_v63, %v878_v9  ;;  %v883_v39 = vsel %vm419_vm2, %v874_v5, %v876_v63  ;;  %v851_v9 = vadd.f32 %v847_v26, %v827_v22  ;;  %v889_v53 = vadd.f32 %v885_v19, %v869_v20 }
 0x30b   :  { %v886_v13 = vmul.f32 %v3977_v46, %v883_v39  ;;  %v887_v5 = vmul.f32 %v3960_v42, %v882_v28  ;;  %v892_v17 = vadd.f32 %v888_v11, %v872_v32 }
 0x30c   :  { %v871_v24 = vadd.f32 %v867_v31, %v851_v9  ;;  %v893_v28 = vadd.f32 %v889_v53, %v4262_v1 }
 0x30d   :  { %v900_v45 = vpop.permute.xlu1 %899  ;;  %v890_v60 = vadd.f32 %v886_v13, %v870_v2 }
 0x30e   :  { %v902_v43 = vpop.permute.xlu0 %901  ;;  %v907_v23 = vsel %vm452_vm4, %v898_v27, %v900_v45  ;;  %v891_v49 = vadd.f32 %v887_v5, %v871_v24 }
 0x30f   :  { %v906_v34 = vsel %vm452_vm4, %v900_v45, %v902_v43  ;;  %v909_v32 = vmul.f32 %v4010_v54, %v907_v23 }
 0x310   :  { %v910_v39 = vmul.f32 %v4015_v55, %v906_v34  ;;  %v895_v3 = vadd.f32 %v891_v49, %v4268_v14 }
 0x311   :  { %v904_v15 = vpop.permute.xlu1 %903  ;;  %v913_v35 = vadd.f32 %v909_v32, %v893_v28 }
 0x312   :  { %v918_v8 = vpop.permute.xlu0 %917  ;;  %v905_v58 = vsel %vm452_vm4, %v902_v43, %v904_v15  ;;  %v908_v25 = vsel %vm452_vm4, %v904_v15, %v898_v27  ;;  %v896_v27 = vadd.f32 %v892_v17, %v4271_v4  ;;  %v894_v43 = vadd.f32 %v890_v60, %v4265_v16 }
 0x313   :  { %v911_v15 = vmul.f32 %v4031_v10, %v905_v58  ;;  %v912_v45 = vmul.f32 %v3997_v51, %v908_v25 }
 0x315   :  { %v920_v50 = vpop.permute.xlu1 %919  ;;  %v915_v61 = vadd.f32 %v911_v15, %v895_v3  ;;  %v916_v14 = vadd.f32 %v912_v45, %v896_v27 }
 0x316   :  { %v922_v52 = vpop.permute.xlu0 %921  ;;  %v927_v36 = vsel %vm481_vm6, %v918_v8, %v920_v50 }
 0x317   :  { %v929_v22 = vmul.f32 %v3938_v38, %v927_v36 }
 0x319   :  { %v924_v63 = vpop.permute.xlu1 %923  ;;  %v933_v6 = vadd.f32 %v929_v22, %v913_v35 }
 0x31a   :  { %v940_v30 = vpop.permute.xlu0 %939  ;;  %v925_v2 = vsel %vm481_vm6, %v922_v52, %v924_v63  ;;  %v928_v18 = vsel %vm481_vm6, %v924_v63, %v918_v8  ;;  %v926_v8 = vsel %vm481_vm6, %v920_v50, %v922_v52  ;;  %v914_v50 = vadd.f32 %v910_v39, %v894_v43 }
 0x31b   :  { %v931_v53 = vmul.f32 %v3960_v42, %v925_v2  ;;  %v932_v1 = vmul.f32 %v4123_v62, %v928_v18  ;;  %v930_v52 = vmul.f32 %v4119_v29, %v926_v8 }
 0x31d   :  { %v942_v26 = vpop.permute.xlu1 %941  ;;  %v936_v13 = vadd.f32 %v932_v1, %v916_v14  ;;  %v935_v63 = vadd.f32 %v931_v53, %v915_v61  ;;  %v934_v25 = vadd.f32 %v930_v52, %v914_v50  ;;  %v3618_v50 = vld [vmem:[%s5579_s3 + $0x10] sm:$0xff]   ;;  %v3619_v52 = vld [vmem:[%s5579_s3 + $0x18] sm:$0xff]  }
 0x31e   :  { %v944_v12 = vpop.permute.xlu0 %943  ;;  %v946_v16 = vsel %vm518_vm8, %v940_v30, %v942_v26 }
 0x31f   :  { %v950_v5 = vmul.f32 %v4144_v0, %v946_v16  ;;  %v945_v17 = vsel %vm518_vm8, %v942_v26, %v944_v12 }
 0x320   :  { %v955_v32 = vadd.f32 %v945_v17, %v935_v63  ;;  %v3624_v63 = vld [vmem:[%s5579_s3 + $0x40] sm:$0xff]  }
 0x321   :  { %v938_v44 = vpop.permute.xlu1 %937 }
 0x322   :  { %v948_v4 = vsel %vm518_vm8, %v944_v12, %v938_v44  ;;  %v960_v31 = vpop.permute.xlu0 %959  ;;  %v947_v19 = vsel %vm518_vm8, %v938_v44, %v940_v30  ;;  %v954_v12 = vadd.f32 %v950_v5, %v934_v25  ;;  %v3623_v5 = vld [vmem:[%s5579_s3 + $0x38] sm:$0xff]  }
 0x323   :  { %v952_v11 = vmul.f32 %v4168_v33, %v948_v4  ;;  %v953_v23 = vadd.f32 %v947_v19, %v933_v6  ;;  %v3616_v19 = vld [vmem:[%s5579_s3] sm:$0xff]  }
 0x324   :  { %v3620_v6 = vld [vmem:[%s5579_s3 + $0x20] sm:$0xff]  }
 0x325   :  { %v958_v9 = vpop.permute.xlu1 %957  ;;  %v956_v49 = vadd.f32 %v952_v11, %v936_v13  ;;  %v3617_v11 = vld [vmem:[%s5579_s3 + $0x8] sm:$0xff]   ;;  %v3622_v13 = vld [vmem:[%s5579_s3 + $0x30] sm:$0xff]  }
 0x326   :  { %v967_v20 = vsel %vm547_vm15, %v958_v9, %v960_v31  ;;  %v964_v24 = vpop.permute.xlu0 %963 }
 0x327   :  { %v969_v30 = vmul.f32 %v4010_v54, %v967_v20  ;;  %v968_v60 = vsel %vm547_vm15, %v964_v24, %v958_v9  ;;  %v3621_v9 = vld [vmem:[%s5579_s3 + $0x28] sm:$0xff]  }
 0x328   :  { %v972_v58 = vmul.f32 %v4204_v57, %v968_v60 }
 0x329   :  { %v973_v34 = vadd.f32 %v969_v30, %v953_v23  ;;  %v962_v36 = vpop.permute.xlu1 %961 }
 0x32a   :  { %v976_v2 = vadd.f32 %v972_v58, %v956_v49  ;;  %v965_v18 = vsel %vm547_vm15, %v962_v36, %v964_v24  ;;  %v966_v26 = vsel %vm547_vm15, %v960_v31, %v962_v36 }
 0x32b   :  { %v970_v28 = vmul.f32 %v4180_v21, %v966_v26  ;;  %v971_v27 = vmul.f32 %v4031_v10, %v965_v18  ;;  %v983_v15 = vadd.f32 %v4295_v59, %v973_v34 }
 0x32c   :  { %v986_v45 = vadd.f32 %v4295_v59, %v976_v2 }
 0x32d   :  { %v974_v43 = vadd.f32 %v970_v28, %v954_v12  ;;  %v975_v39 = vadd.f32 %v971_v27, %v955_v32  ;;  %v987_v3 = vmax.f32 %v983_v15, 0.0 }
 0x32e   :  { %v990_v22 = vmax.f32 %v986_v45, 0.0 }
 0x32f   :  { %v984_v44 = vadd.f32 %v4295_v59, %v974_v43  ;;  %v985_v8 = vadd.f32 %v4295_v59, %v975_v39  ;;  %v991_v4 = vpack.c.bf16 %v987_v3, %v987_v3  ;;  %v5659_v59 = vmov 0  }
 0x330   :  { %v994_v53 = vpack.c.bf16 %v990_v22, %v990_v22 }
 0x331   :  { %v988_v1 = vmax.f32 %v984_v44, 0.0  ;;  %v989_v31 = vmax.f32 %v985_v8, 0.0  ;;  %v1086_v61 = vsel %vm638_vm14, %v991_v4, 0 }
 0x332   :  { %3117 = vmatprep.subr.msk.bf16.mxu1 %vm638_vm14, %v994_v53 }
 0x333   :  { %v992_v35 = vpack.c.bf16 %v988_v1, %v988_v1  ;;  %v993_v16 = vpack.c.bf16 %v989_v31, %v989_v31 }
 0x335   :  { %3107 = vmatprep.subr.msk.bf16.mxu0 %vm638_vm14, %v992_v35  ;;  %v1092_v14 = vsel %vm638_vm14, %v993_v16, 0 }
 0x336   :  { %1098 = vmatpush1.bf16.msra.mxu0 %v1086_v61  ;;  %1221 = vmatpush1.bf16.msra.mxu1 %v1092_v14 }
 0x339   :  { %3108 = vmatmul.mubr.msk.bf16.vlgmr.msra.gmra.mrb[40].mxu0 %vm622_vm1, %v3616_v19  ;;  %3118 = vmatmul.mubr.msk.bf16.vlgmr.msra.gmra.mrb[40].mxu1 %vm622_vm1, %v3616_v19 }
 0x33a   :  { %1139 = vmatprep.mubr.bf16.mxu0 %v5659_v59  ;;  %1262 = vmatprep.mubr.bf16.mxu1 %v5659_v59 }
 0x341   :  { %3109 = vmatmul.mubr.msk.bf16.gmra.mrb[44].mxu0 %vm622_vm1, %v3617_v11  ;;  %3119 = vmatmul.mubr.msk.bf16.gmra.mrb[44].mxu1 %vm622_vm1, %v3617_v11 }
 0x342   :  { %1149 = vmatprep.mubr.bf16.mxu0 %v5659_v59  ;;  %1272 = vmatprep.mubr.bf16.mxu1 %v5659_v59 }
 0x349   :  { %3110 = vmatmul.mubr.msk.bf16.gmra.mrb[48].mxu0 %vm622_vm1, %v3618_v50  ;;  %3120 = vmatmul.mubr.msk.bf16.gmra.mrb[48].mxu1 %vm622_vm1, %v3618_v50 }
 0x34a   :  { %1282 = vmatprep.mubr.bf16.mxu1 %v5659_v59  ;;  %1159 = vmatprep.mubr.bf16.mxu0 %v5659_v59 }
 0x351   :  { %3121 = vmatmul.mubr.msk.bf16.gmra.mrb[52].mxu1 %vm622_vm1, %v3619_v52  ;;  %3111 = vmatmul.mubr.msk.bf16.gmra.mrb[52].mxu0 %vm622_vm1, %v3619_v52 }
 0x352   :  { %1292 = vmatprep.mubr.bf16.mxu1 %v5659_v59  ;;  %1169 = vmatprep.mubr.bf16.mxu0 %v5659_v59 }
 0x359   :  { %3122 = vmatmul.mubr.msk.bf16.gmra.mrb[56].mxu1 %vm622_vm1, %v3620_v6  ;;  %3112 = vmatmul.mubr.msk.bf16.gmra.mrb[56].mxu0 %vm622_vm1, %v3620_v6 }
 0x35a   :  { %1302 = vmatprep.mubr.bf16.mxu1 %v5659_v59  ;;  %1179 = vmatprep.mubr.bf16.mxu0 %v5659_v59 }
 0x361   :  { %3123 = vmatmul.mubr.msk.bf16.gmra.mrb[60].mxu1 %vm622_vm1, %v3621_v9  ;;  %3113 = vmatmul.mubr.msk.bf16.gmra.mrb[60].mxu0 %vm622_vm1, %v3621_v9 }
 0x362   :  { %1189 = vmatprep.mubr.bf16.mxu0 %v5659_v59  ;;  %1312 = vmatprep.mubr.bf16.mxu1 %v5659_v59 }
 0x369   :  { %3114 = vmatmul.mubr.msk.bf16.gmra.mrb[64].mxu0 %vm622_vm1, %v3622_v13  ;;  %3124 = vmatmul.mubr.msk.bf16.gmra.mrb[64].mxu1 %vm622_vm1, %v3622_v13 }
 0x36a   :  { %1322 = vmatprep.mubr.bf16.mxu1 %v5659_v59  ;;  %1199 = vmatprep.mubr.bf16.mxu0 %v5659_v59 }
 0x371   :  { %3125 = vmatmul.mubr.msk.bf16.gmra.mrb[68].mxu1 %vm622_vm1, %v3623_v5  ;;  %3115 = vmatmul.mubr.msk.bf16.gmra.mrb[68].mxu0 %vm622_vm1, %v3623_v5 }
 0x372   :  { %1332 = vmatprep.mubr.bf16.mxu1 %v5659_v59  ;;  %1209 = vmatprep.mubr.bf16.mxu0 %v5659_v59 }
 0x379   :  { %3126 = vmatmul.mubr.msk.bf16.gmra.mrb[72].mxu1 %vm622_vm1, %v3624_v63  ;;  %3116 = vmatmul.mubr.msk.bf16.gmra.mrb[72].mxu0 %vm622_vm1, %v3624_v63 }
 0x40c   :  { %v1131_v20 = vpop.f32.mrb[40].mxu0  ;;  %v1254_v24 = vpop.f32.mrb[40].mxu1 }
 0x40d   :  { %1351 = vrot.lane.b32.xlu0 %v1254_v24, %s3653_s26  ;;  %1343 = vrot.lane.b32.xlu1 %v1131_v20, %s3653_s26  ;;  %v1133_v17 = vpop.f32.mrb[41].mxu0  ;;  %v1256_v23 = vpop.f32.mrb[41].mxu1 }
 0x40e   :  { %v1135_v30 = vpop.f32.mrb[42].mxu0  ;;  %v1258_v60 = vpop.f32.mrb[42].mxu1 }
 0x40f   :  { %v1137_v49 = vpop.f32.mrb[43].mxu0  ;;  %v1260_v58 = vpop.f32.mrb[43].mxu1 }
 0x411   :  { %1355 = vrot.lane.b32.xlu1 %v1256_v23, %s3653_s26  ;;  %1347 = vrot.lane.b32.xlu0 %v1133_v17, %s3653_s26 }
 0x414   :  { %v1141_v25 = vpop.f32.mrb[44].mxu0  ;;  %v1264_v34 = vpop.f32.mrb[44].mxu1 }
 0x415   :  { %1353 = vrot.lane.b32.xlu1 %v1258_v60, %s3653_s26  ;;  %1345 = vrot.lane.b32.xlu0 %v1135_v30, %s3653_s26  ;;  %v1143_v36 = vpop.f32.mrb[45].mxu0  ;;  %v1266_v32 = vpop.f32.mrb[45].mxu1 }
 0x416   :  { %v1145_v2 = vpop.f32.mrb[46].mxu0  ;;  %v1268_v18 = vpop.f32.mrb[46].mxu1 }
 0x417   :  { %v1147_v26 = vpop.f32.mrb[47].mxu0  ;;  %v1270_v12 = vpop.f32.mrb[47].mxu1 }
 0x419   :  { %1349 = vrot.lane.b32.xlu1 %v1137_v49, %s3653_s26  ;;  %1383 = vrot.lane.b32.xlu0 %v1141_v25, %s3654_s27 }
 0x41c   :  { %v1151_v28 = vpop.f32.mrb[48].mxu0  ;;  %v1274_v27 = vpop.f32.mrb[48].mxu1 }
 0x41d   :  { %1357 = vrot.lane.b32.xlu1 %v1260_v58, %s3653_s26  ;;  %1391 = vrot.lane.b32.xlu0 %v1264_v34, %s3654_s27  ;;  %v1153_v15 = vpop.f32.mrb[49].mxu0  ;;  %v1276_v45 = vpop.f32.mrb[49].mxu1 }
 0x41e   :  { %v1155_v43 = vpop.f32.mrb[50].mxu0  ;;  %v1278_v39 = vpop.f32.mrb[50].mxu1 }
 0x41f   :  { %v1157_v3 = vpop.f32.mrb[51].mxu0  ;;  %v1280_v22 = vpop.f32.mrb[51].mxu1 }
 0x421   :  { %1395 = vrot.lane.b32.xlu1 %v1266_v32, %s3654_s27  ;;  %1385 = vrot.lane.b32.xlu0 %v1145_v2, %s3654_s27 }
 0x424   :  { %v1161_v44 = vpop.f32.mrb[52].mxu0  ;;  %v1284_v8 = vpop.f32.mrb[52].mxu1 }
 0x425   :  { %1387 = vrot.lane.b32.xlu1 %v1143_v36, %s3654_s27  ;;  %1393 = vrot.lane.b32.xlu0 %v1268_v18, %s3654_s27  ;;  %v1163_v53 = vpop.f32.mrb[53].mxu0  ;;  %v1286_v1 = vpop.f32.mrb[53].mxu1 }
 0x426   :  { %v1288_v4 = vpop.f32.mrb[54].mxu1  ;;  %v1165_v31 = vpop.f32.mrb[54].mxu0 }
 0x427   :  { %v1290_v35 = vpop.f32.mrb[55].mxu1  ;;  %v1167_v16 = vpop.f32.mrb[55].mxu0 }
 0x429   :  { %1397 = vrot.lane.b32.xlu1 %v1270_v12, %s3654_s27  ;;  %1389 = vrot.lane.b32.xlu0 %v1147_v26, %s3654_s27 }
 0x42c   :  { %v4478_v61 = vpop.f32.mrb[56].mxu1  ;;  %v4480_v14 = vpop.f32.mrb[56].mxu0 }
 0x42d   :  { %5660 = vst [vmem:[#allocation11_spill] sm:$0xff] %v4480_v14  ;;  %1423 = vrot.lane.b32.xlu0 %v1151_v28, %s3655_s28  ;;  %1427 = vrot.lane.b32.xlu1 %v1153_v15, %s3655_s28  ;;  %v4484_v19 = vpop.f32.mrb[57].mxu1  ;;  %v4486_v59 = vpop.f32.mrb[57].mxu0 }
 0x42e   :  { %5661 = vst [vmem:[#allocation12_spill] sm:$0xff] %v4484_v19  ;;  %v4488_v11 = vpop.f32.mrb[58].mxu1  ;;  %v4490_v50 = vpop.f32.mrb[58].mxu0 }
 0x42f   :  { %5662 = vst [vmem:[#allocation13_spill] sm:$0xff] %v4488_v11  ;;  %5663 = vst [vmem:[#allocation14_spill] sm:$0xff] %v4490_v50  ;;  %v4492_v52 = vpop.f32.mrb[59].mxu1  ;;  %v4494_v6 = vpop.f32.mrb[59].mxu0 }
 0x430   :  { %5664 = vst [vmem:[#allocation15_spill] sm:$0xff] %v4492_v52  ;;  %5665 = vst [vmem:[#allocation16_spill] sm:$0xff] %v4494_v6 }
 0x431   :  { %1431 = vrot.lane.b32.xlu0 %v1274_v27, %s3655_s28  ;;  %1435 = vrot.lane.b32.xlu1 %v1276_v45, %s3655_s28 }
 0x434   :  { %v1304_v9 = vpop.f32.mrb[60].mxu1  ;;  %v1181_v13 = vpop.f32.mrb[60].mxu0 }
 0x435   :  { %1433 = vrot.lane.b32.xlu0 %v1278_v39, %s3655_s28  ;;  %1425 = vrot.lane.b32.xlu1 %v1155_v43, %s3655_s28  ;;  %v1183_v5 = vpop.f32.mrb[61].mxu0  ;;  %v1306_v63 = vpop.f32.mrb[61].mxu1 }
 0x436   :  { %v1185_v20 = vpop.f32.mrb[62].mxu0  ;;  %v1308_v24 = vpop.f32.mrb[62].mxu1 }
 0x437   :  { %v1187_v17 = vpop.f32.mrb[63].mxu0  ;;  %v1310_v23 = vpop.f32.mrb[63].mxu1 }
 0x439   :  { %1437 = vrot.lane.b32.xlu1 %v1280_v22, %s3655_s28  ;;  %1429 = vrot.lane.b32.xlu0 %v1157_v3, %s3655_s28  ;;  %s3664_s28 = smov 8  }
 0x43c   :  { %v1191_v30 = vpop.f32.mrb[64].mxu0  ;;  %v1314_v60 = vpop.f32.mrb[64].mxu1 }
 0x43d   :  { %1463 = vrot.lane.b32.xlu1 %v1161_v44, %s3656_s29  ;;  %1467 = vrot.lane.b32.xlu0 %v1163_v53, %s3656_s29  ;;  %v4504_v49 = vpop.f32.mrb[65].mxu0  ;;  %v4506_v58 = vpop.f32.mrb[65].mxu1 }
 0x43e   :  { %v4508_v25 = vpop.f32.mrb[66].mxu0  ;;  %v4510_v34 = vpop.f32.mrb[66].mxu1 }
 0x43f   :  { %v4512_v36 = vpop.f32.mrb[67].mxu1  ;;  %v4514_v32 = vpop.f32.mrb[67].mxu0 }
 0x441   :  { %1471 = vrot.lane.b32.xlu1 %v1284_v8, %s3656_s29  ;;  %1475 = vrot.lane.b32.xlu0 %v1286_v1, %s3656_s29 }
 0x444   :  { %v4518_v2 = vpop.f32.mrb[68].mxu1  ;;  %v4520_v18 = vpop.f32.mrb[68].mxu0 }
 0x445   :  { %1465 = vrot.lane.b32.xlu1 %v1165_v31, %s3656_s29  ;;  %1469 = vrot.lane.b32.xlu0 %v1167_v16, %s3656_s29  ;;  %v4524_v26 = vpop.f32.mrb[69].mxu1  ;;  %v4526_v12 = vpop.f32.mrb[69].mxu0  ;;  %v1688_v31 = vld [vmem:[%s5580_s11 + $0x88] sm:$0xff] }
 0x446   :  { %v4528_v28 = vpop.f32.mrb[70].mxu0  ;;  %v4530_v27 = vpop.f32.mrb[70].mxu1 }
 0x447   :  { %v4532_v15 = vpop.f32.mrb[71].mxu0  ;;  %v4534_v45 = vpop.f32.mrb[71].mxu1 }
 0x449   :  { %1473 = vrot.lane.b32.xlu1 %v1288_v4, %s3656_s29  ;;  %1519 = vrot.lane.b32.xlu0 %v1304_v9, %s3657_s0  ;;  %v1687_v4 = vld [vmem:[%s5580_s11 + $0x80] sm:$0xff]  ;;  %v1672_v9 = vld [vmem:[%s5580_s11 + $0x8] sm:$0xff] }
 0x44a   :  { %v3473_v16 = vpack.c.bf16 %v1688_v31, %v1687_v4  ;;  %v1689_v4 = vld [vmem:[%s5580_s11 + $0x90] sm:$0xff]  ;;  %v1690_v31 = vld [vmem:[%s5580_s11 + $0x98] sm:$0xff] }
 0x44c   :  { %v4538_v43 = vpop.f32.mrb[72].mxu1  ;;  %v4540_v39 = vpop.f32.mrb[72].mxu0  ;;  %3474 = vmatprep.subr.bf16.mxu0 %v3473_v16  ;;  %v3477_v16 = vpack.c.bf16 %v1690_v31, %v1689_v4  ;;  %v1692_v4 = vld [vmem:[%s5580_s11 + $0xa8] sm:$0xff]  ;;  %v1723_v31 = vld [vmem:[%s5580_s11 + $0x1a0] sm:$0xff] }
 0x44d   :  { %1477 = vrot.lane.b32.xlu1 %v1290_v35, %s3656_s29  ;;  %1511 = vrot.lane.b32.xlu0 %v1181_v13, %s3657_s0  ;;  %v4544_v3 = vpop.f32.mrb[73].mxu0  ;;  %v4546_v22 = vpop.f32.mrb[73].mxu1  ;;  %v1671_v35 = vld [vmem:[%s5580_s11] sm:$0xff] }
 0x44e   :  { %v4548_v44 = vpop.f32.mrb[74].mxu0  ;;  %v4550_v8 = vpop.f32.mrb[74].mxu1  ;;  %v1719_v13 = vld [vmem:[%s5580_s11 + $0x180] sm:$0xff] }
 0x44f   :  { %v4552_v53 = vpop.f32.mrb[75].mxu0  ;;  %v4554_v1 = vpop.f32.mrb[75].mxu1 }
 0x451   :  { %1523 = vrot.lane.b32.xlu0 %v1306_v63, %s3657_s0  ;;  %1515 = vrot.lane.b32.xlu1 %v1183_v5, %s3657_s0  ;;  %v3475_v5 = vpack.c.bf16 %v1672_v9, %v1671_v35  ;;  %v1720_v63 = vld [vmem:[%s5580_s11 + $0x188] sm:$0xff]  ;;  %v1721_v35 = vld [vmem:[%s5580_s11 + $0x190] sm:$0xff] }
 0x452   :  { %v1722_v9 = vld [vmem:[%s5580_s11 + $0x198] sm:$0xff] }
 0x453   :  { %3476 = vmatpush3.bf16.msra.mxu0 %v3475_v5  ;;  %v3509_v5 = vpack.c.bf16 %v1722_v9, %v1721_v35  ;;  %v1724_v35 = vld [vmem:[%s5580_s11 + $0x1a8] sm:$0xff] }
 0x454   :  { %3478 = vmatprep.subr.bf16.mxu0 %v3477_v16  ;;  %v1675_v16 = vld [vmem:[%s5580_s11 + $0x20] sm:$0xff]  ;;  %v3513_v9 = vpack.c.bf16 %v1724_v35, %v1723_v31 }
 0x455   :  { %1521 = vrot.lane.b32.xlu1 %v1308_v24, %s3657_s0  ;;  %1517 = vrot.lane.b32.xlu0 %v1187_v17, %s3657_s0  ;;  %v1704_v24 = vld [vmem:[%s5580_s11 + $0x108] sm:$0xff]  ;;  %v3505_v17 = vpack.c.bf16 %v1720_v63, %v1719_v13  ;;  %v1673_v13 = vld [vmem:[%s5580_s11 + $0x10] sm:$0xff] }
 0x456   :  { %v1674_v63 = vld [vmem:[%s5580_s11 + $0x18] sm:$0xff] }
 0x457   :  { %3506 = vmatprep.subr.bf16.mxu1 %v3505_v17  ;;  %v1691_v17 = vld [vmem:[%s5580_s11 + $0xa0] sm:$0xff] }
 0x459   :  { %1513 = vrot.lane.b32.xlu1 %v1185_v20, %s3657_s0  ;;  %1525 = vrot.lane.b32.xlu0 %v1310_v23, %s3657_s0  ;;  %v1703_v20 = vld [vmem:[%s5580_s11 + $0x100] sm:$0xff] }
 0x45a   :  { %v3507_v23 = vpack.c.bf16 %v1704_v24, %v1703_v20  ;;  %v3479_v20 = vpack.c.bf16 %v1674_v63, %v1673_v13  ;;  %v1676_v13 = vld [vmem:[%s5580_s11 + $0x28] sm:$0xff] }
 0x45c   :  { %3508 = vmatpush3.bf16.msra.mxu1 %v3507_v23  ;;  %v3481_v23 = vpack.c.bf16 %v1692_v4, %v1691_v17  ;;  %3480 = vmatpush3.bf16.msra.mxu0 %v3479_v20  ;;  %v1725_v20 = vld [vmem:[%s5580_s11 + $0x1b0] sm:$0xff]  ;;  %v1726_v17 = vld [vmem:[%s5580_s11 + $0x1b8] sm:$0xff] }
 0x45d   :  { %1559 = vrot.lane.b32.xlu0 %v1314_v60, %s3658_s30  ;;  %1551 = vrot.lane.b32.xlu1 %v1191_v30, %s3658_s30  ;;  %v1705_v60 = vld [vmem:[%s5580_s11 + $0x110] sm:$0xff]  ;;  %v1706_v30 = vld [vmem:[%s5580_s11 + $0x118] sm:$0xff]  ;;  %v3517_v31 = vpack.c.bf16 %v1726_v17, %v1725_v20 }
 0x45e   :  { %v3511_v24 = vpack.c.bf16 %v1706_v30, %v1705_v60  ;;  %3510 = vmatprep.subr.bf16.mxu1 %v3509_v5  ;;  %3482 = vmatprep.subr.bf16.mxu0 %v3481_v23  ;;  %v3483_v5 = vpack.c.bf16 %v1676_v13, %v1675_v16  ;;  %v1693_v60 = vld [vmem:[%s5580_s11 + $0xb0] sm:$0xff]  ;;  %v1694_v30 = vld [vmem:[%s5580_s11 + $0xb8] sm:$0xff]  ;;  %v1696_v13 = vld [vmem:[%s5580_s11 + $0xc8] sm:$0xff] }
 0x45f   :  { %v1677_v4 = vld [vmem:[%s5580_s11 + $0x30] sm:$0xff]  ;;  %v1678_v23 = vld [vmem:[%s5580_s11 + $0x38] sm:$0xff] }
 0x460   :  { %3512 = vmatpush3.bf16.msra.mxu1 %v3511_v24  ;;  %v3485_v24 = vpack.c.bf16 %v1694_v30, %v1693_v60  ;;  %3484 = vmatpush3.bf16.msra.mxu0 %v3483_v5  ;;  %v3487_v35 = vpack.c.bf16 %v1678_v23, %v1677_v4  ;;  %v1728_v5 = vld [vmem:[%s5580_s11 + $0x1c8] sm:$0xff]  ;;  %v1697_v17 = vld [vmem:[%s5580_s11 + $0xd0] sm:$0xff]  ;;  %v1698_v4 = vld [vmem:[%s5580_s11 + $0xd8] sm:$0xff] }
 0x461   :  { %1563 = vrot.lane.b32.xlu0 %v4506_v58, %s3658_s30  ;;  %1555 = vrot.lane.b32.xlu1 %v4504_v49, %s3658_s30  ;;  %v1707_v58 = vld [vmem:[%s5580_s11 + $0x120] sm:$0xff]  ;;  %v1708_v49 = vld [vmem:[%s5580_s11 + $0x128] sm:$0xff]  ;;  %v3493_v23 = vpack.c.bf16 %v1698_v4, %v1697_v17 }
 0x462   :  { %v3515_v63 = vpack.c.bf16 %v1708_v49, %v1707_v58  ;;  %3514 = vmatprep.subr.bf16.mxu1 %v3513_v9  ;;  %3486 = vmatprep.subr.bf16.mxu0 %v3485_v24  ;;  %v1695_v9 = vld [vmem:[%s5580_s11 + $0xc0] sm:$0xff]  ;;  %v1680_v30 = vld [vmem:[%s5580_s11 + $0x48] sm:$0xff]  ;;  %v1701_v17 = vld [vmem:[%s5580_s11 + $0xf0] sm:$0xff] }
 0x463   :  { %v1727_v58 = vld [vmem:[%s5580_s11 + $0x1c0] sm:$0xff]  ;;  %v3489_v49 = vpack.c.bf16 %v1696_v13, %v1695_v9  ;;  %v1702_v4 = vld [vmem:[%s5580_s11 + $0xf8] sm:$0xff] }
 0x464   :  { %3516 = vmatpush3.bf16.msra.mxu1 %v3515_v63  ;;  %v1679_v63 = vld [vmem:[%s5580_s11 + $0x40] sm:$0xff]  ;;  %3488 = vmatpush3.bf16.msra.mxu0 %v3487_v35  ;;  %v3521_v60 = vpack.c.bf16 %v1728_v5, %v1727_v58 }
 0x465   :  { %1561 = vrot.lane.b32.xlu0 %v4510_v34, %s3658_s30  ;;  %1553 = vrot.lane.b32.xlu1 %v4508_v25, %s3658_s30  ;;  %v1709_v34 = vld [vmem:[%s5580_s11 + $0x130] sm:$0xff]  ;;  %v1710_v25 = vld [vmem:[%s5580_s11 + $0x138] sm:$0xff]  ;;  %v3491_v20 = vpack.c.bf16 %v1680_v30, %v1679_v63 }
 0x466   :  { %v3519_v16 = vpack.c.bf16 %v1710_v25, %v1709_v34  ;;  %3518 = vmatprep.subr.bf16.mxu1 %v3517_v31  ;;  %3490 = vmatprep.subr.bf16.mxu0 %v3489_v49  ;;  %v1729_v31 = vld [vmem:[%s5580_s11 + $0x1d0] sm:$0xff]  ;;  %v1730_v34 = vld [vmem:[%s5580_s11 + $0x1d8] sm:$0xff]  ;;  %v1699_v58 = vld [vmem:[%s5580_s11 + $0xe0] sm:$0xff] }
 0x467   :  { %v1681_v25 = vld [vmem:[%s5580_s11 + $0x50] sm:$0xff]  ;;  %v3525_v35 = vpack.c.bf16 %v1730_v34, %v1729_v31  ;;  %v1700_v49 = vld [vmem:[%s5580_s11 + $0xe8] sm:$0xff]  ;;  %v1731_v5 = vld [vmem:[%s5580_s11 + $0x1e0] sm:$0xff] }
 0x468   :  { %3520 = vmatpush3.bf16.msra.mxu1 %v3519_v16  ;;  %3492 = vmatpush3.bf16.msra.mxu0 %v3491_v20  ;;  %v1682_v16 = vld [vmem:[%s5580_s11 + $0x58] sm:$0xff]  ;;  %v3497_v63 = vpack.c.bf16 %v1700_v49, %v1699_v58  ;;  %v1683_v30 = vld [vmem:[%s5580_s11 + $0x60] sm:$0xff]  ;;  %v1733_v31 = vld [vmem:[%s5580_s11 + $0x1f0] sm:$0xff] }
 0x469   :  { %1599 = vrot.lane.b32.xlu0 %v4518_v2, %s3659_s18  ;;  %1557 = vrot.lane.b32.xlu1 %v4514_v32, %s3658_s30  ;;  %v1711_v2 = vld [vmem:[%s5580_s11 + $0x140] sm:$0xff]  ;;  %v1712_v32 = vld [vmem:[%s5580_s11 + $0x148] sm:$0xff]  ;;  %v3495_v9 = vpack.c.bf16 %v1682_v16, %v1681_v25 }
 0x46a   :  { %v3523_v24 = vpack.c.bf16 %v1712_v32, %v1711_v2  ;;  %3522 = vmatprep.subr.bf16.mxu1 %v3521_v60  ;;  %3494 = vmatprep.subr.bf16.mxu0 %v3493_v23  ;;  %v1732_v60 = vld [vmem:[%s5580_s11 + $0x1e8] sm:$0xff]  ;;  %v3501_v23 = vpack.c.bf16 %v1702_v4, %v1701_v17  ;;  %v1734_v34 = vld [vmem:[%s5580_s11 + $0x1f8] sm:$0xff]  ;;  %v1685_v25 = vld [vmem:[%s5580_s11 + $0x70] sm:$0xff] }
 0x46b   :  { %v3529_v2 = vpack.c.bf16 %v1732_v60, %v1731_v5  ;;  %v1684_v32 = vld [vmem:[%s5580_s11 + $0x68] sm:$0xff]  ;;  %v1686_v16 = vld [vmem:[%s5580_s11 + $0x78] sm:$0xff] }
 0x46c   :  { %3524 = vmatpush3.bf16.msra.mxu1 %v3523_v24  ;;  %3496 = vmatpush3.bf16.msra.mxu0 %v3495_v9  ;;  %v3499_v20 = vpack.c.bf16 %v1684_v32, %v1683_v30  ;;  %v5666_v9 = vmov 0.0  }
 0x46d   :  { %1603 = vrot.lane.b32.xlu0 %v4524_v26, %s3659_s18  ;;  %1565 = vrot.lane.b32.xlu1 %v4512_v36, %s3658_s30  ;;  %v1713_v26 = vld [vmem:[%s5580_s11 + $0x150] sm:$0xff]  ;;  %v1714_v36 = vld [vmem:[%s5580_s11 + $0x158] sm:$0xff] }
 0x46e   :  { %v3527_v13 = vpack.c.bf16 %v1714_v36, %v1713_v26  ;;  %3526 = vmatprep.subr.bf16.mxu1 %v3525_v35  ;;  %3498 = vmatprep.subr.bf16.mxu0 %v3497_v63  ;;  %v3533_v35 = vpack.c.bf16 %v1734_v34, %v1733_v31  ;;  %v3503_v26 = vpack.c.bf16 %v1686_v16, %v1685_v25 }
 0x470   :  { %3528 = vmatpush3.bf16.msra.mxu1 %v3527_v13  ;;  %3500 = vmatpush3.bf16.msra.mxu0 %v3499_v20 }
 0x471   :  { %1591 = vrot.lane.b32.xlu1 %v4520_v18, %s3659_s18  ;;  %1597 = vrot.lane.b32.xlu0 %v4532_v15, %s3659_s18  ;;  %v1715_v18 = vld [vmem:[%s5580_s11 + $0x160] sm:$0xff]  ;;  %v1716_v15 = vld [vmem:[%s5580_s11 + $0x168] sm:$0xff] }
 0x472   :  { %v3531_v24 = vpack.c.bf16 %v1716_v15, %v1715_v18  ;;  %3530 = vmatprep.subr.bf16.mxu1 %v3529_v2  ;;  %3502 = vmatprep.subr.bf16.mxu0 %v3501_v23 }
 0x474   :  { %3532 = vmatpush3.bf16.msra.mxu1 %v3531_v24  ;;  %3504 = vmatpush3.bf16.msra.mxu0 %v3503_v26 }
 0x475   :  { %1595 = vrot.lane.b32.xlu1 %v4526_v12, %s3659_s18  ;;  %1605 = vrot.lane.b32.xlu0 %v4534_v45, %s3659_s18  ;;  %v1717_v12 = vld [vmem:[%s5580_s11 + $0x170] sm:$0xff]  ;;  %v1718_v45 = vld [vmem:[%s5580_s11 + $0x178] sm:$0xff] }
 0x476   :  { %v3535_v36 = vpack.c.bf16 %v1718_v45, %v1717_v12  ;;  %3534 = vmatprep.subr.bf16.mxu1 %v3533_v35  ;;  %3334 = vmatprep.subr.bf16.mxu0 %v5666_v9 }
 0x478   :  { %3536 = vmatpush3.bf16.msra.mxu1 %v3535_v36 }
 0x479   :  { %1601 = vrot.lane.b32.xlu1 %v4530_v27, %s3659_s18  ;;  %1639 = vrot.lane.b32.xlu0 %v4538_v43, %s3660_s19 }
 0x47d   :  { %1593 = vrot.lane.b32.xlu1 %v4528_v28, %s3659_s18  ;;  %1631 = vrot.lane.b32.xlu0 %v4540_v39, %s3660_s19  ;;  %v1736_v39 = vld [vmem:[%s5581_s8 + $0x8] sm:$0xff] }
 0x47f   :  { %v1352_v13 = vpop.permute.xlu0 %1351  ;;  %v1344_v58 = vpop.permute.xlu1 %1343 }
 0x481   :  { %1643 = vrot.lane.b32.xlu0 %v4546_v22, %s3660_s19  ;;  %1635 = vrot.lane.b32.xlu1 %v4544_v3, %s3660_s19 }
 0x483   :  { %v1356_v27 = vpop.permute.xlu1 %1355  ;;  %v1348_v43 = vpop.permute.xlu0 %1347 }
 0x484   :  { %v1365_v29 = vsel %vm312_vm11, %v1356_v27, %v1344_v58  ;;  %v1359_v62 = vsel %vm312_vm11, %v1352_v13, %v1356_v27  ;;  %v1361_v54 = vsel %vm312_vm11, %v1348_v43, %v1352_v13  ;;  %v1363_v11 = vsel %vm312_vm11, %v1344_v58, %v1348_v43 }
 0x485   :  { %1641 = vrot.lane.b32.xlu0 %v4550_v8, %s3660_s19  ;;  %1637 = vrot.lane.b32.xlu1 %v4552_v53, %s3660_s19  ;;  %v2189_v8 = vld [vmem:[%s5582_s9 + $0x8] sm:$0xff]  ;;  %v1370_v27 = vmul.f32 %v3952_v40, %v1359_v62  ;;  %v1368_v58 = vmul.f32 %v3977_v46, %v1363_v11  ;;  %v1369_v43 = vmul.f32 %v3955_v41, %v1361_v54 }
 0x487   :  { %v4797_v28 = vpop.permute.xlu1 %1353  ;;  %v4799_v49 = vpop.permute.xlu0 %1345 }
 0x489   :  { %1645 = vrot.lane.b32.xlu0 %v4554_v1, %s3660_s19  ;;  %1633 = vrot.lane.b32.xlu1 %v4548_v44, %s3660_s19  ;;  %v1735_v1 = vld [vmem:[%s5581_s8] sm:$0xff]  ;;  %s3663_s19 = smov 9   ;;  %s3666_s8 = smov 121  }
 0x48a   :  { %v2188_v44 = vld [vmem:[%s5582_s9] sm:$0xff]  ;;  %s3667_s9 = smov 120  }
 0x48b   :  { %v1350_v3 = vpop.permute.xlu1 %1349  ;;  %v4808_v22 = vpop.permute.xlu0 %1383 }
 0x48c   :  { %v1364_v13 = vsel %vm312_vm11, %v4799_v49, %v1350_v3 }
 0x48d   :  { %1744 = vperm.xlu0 %3602, %v1736_v39   ;;  %1739 = vperm.xlu1 %3603, %v1735_v1  }
 0x48f   :  { %v1358_v53 = vpop.permute.xlu1 %1357  ;;  %v1392_v5 = vpop.permute.xlu0 %1391 }
 0x491   :  { %2197 = vperm.xlu0 %3602, %v2189_v8   ;;  %2192 = vperm.xlu1 %3603, %v2188_v44  }
 0x493   :  { %v1396_v63 = vpop.permute.xlu1 %1395  ;;  %v1386_v60 = vpop.permute.xlu0 %1385 }
 0x494   :  { %v1399_v11 = vsel %vm353_vm13, %v1392_v5, %v1396_v63 }
 0x497   :  { %v1388_v30 = vpop.permute.xlu1 %1387  ;;  %v1394_v2 = vpop.permute.xlu0 %1393 }
 0x498   :  { %v1401_v6 = vsel %vm353_vm13, %v1388_v30, %v1392_v5  ;;  %v1418_v5 = vadd.f32 %v1399_v11, %v1370_v27 }
 0x49b   :  { %v1398_v32 = vpop.permute.xlu1 %1397  ;;  %v1390_v18 = vpop.permute.xlu0 %1389 }
 0x49c   :  { %v1402_v62 = vsel %vm353_vm13, %v1390_v18, %v1394_v2 }
 0x49f   :  { %v4819_v15 = vpop.permute.xlu0 %1423  ;;  %v1428_v20 = vpop.permute.xlu1 %1427 }
 0x4a3   :  { %v4821_v24 = vpop.permute.xlu0 %1431  ;;  %v4823_v17 = vpop.permute.xlu1 %1435 }
 0x4a7   :  { %v4825_v4 = vpop.permute.xlu0 %1433  ;;  %v4827_v31 = vpop.permute.xlu1 %1425 }
 0x4ab   :  { %v4829_v23 = vpop.permute.xlu1 %1437  ;;  %v4831_v34 = vpop.permute.xlu0 %1429 }
 0x4af   :  { %v4833_v25 = vpop.permute.xlu1 %1463  ;;  %v4835_v35 = vpop.permute.xlu0 %1467 }
 0x4b3   :  { %v4837_v16 = vpop.permute.xlu1 %1471  ;;  %v4839_v12 = vpop.permute.xlu0 %1475 }
 0x4b7   :  { %v4841_v45 = vpop.permute.xlu1 %1465  ;;  %v4843_v26 = vpop.permute.xlu0 %1469 }
 0x4bb   :  { %v4845_v36 = vpop.permute.xlu1 %1473  ;;  %v4847_v39 = vpop.permute.xlu0 %1519 }
 0x4bf   :  { %v4849_v8 = vpop.permute.xlu1 %1477  ;;  %v4851_v1 = vpop.permute.xlu0 %1511 }
 0x4c3   :  { %v4853_v44 = vpop.permute.xlu0 %1523  ;;  %v4855_v9 = vpop.permute.xlu1 %1515 }
 0x4c7   :  { %v4857_v21 = vpop.permute.xlu1 %1521  ;;  %v4859_v57 = vpop.permute.xlu0 %1517 }
 0x4c8   :  { %5667 = vst [vmem:[#allocation17_spill] sm:$0xff] %v4857_v21  ;;  %5668 = vst [vmem:[#allocation18_spill] sm:$0xff] %v4859_v57  ;;  %v1409_v57 = vmul.f32 %v3987_v48, %v1401_v6  ;;  %v1413_v6 = vmul.f32 %v3987_v48, %v1402_v62  ;;  %v1445_v48 = vsel %vm382_vm3, %v4823_v17, %v4819_v15 }
 0x4cb   :  { %v4861_v0 = vpop.permute.xlu1 %1513  ;;  %v4863_v33 = vpop.permute.xlu0 %1525 }
 0x4cc   :  { %5669 = vst [vmem:[#allocation19_spill] sm:$0xff] %v4861_v0  ;;  %5670 = vst [vmem:[#allocation20_spill] sm:$0xff] %v4863_v33  ;;  %v1367_v0 = vmul.f32 %v3935_v37, %v1365_v29  ;;  %v1405_v33 = vsel %vm353_vm13, %v1396_v63, %v4808_v22  ;;  %v1406_v29 = vsel %vm353_vm13, %v1398_v32, %v1386_v60 }
 0x4cd   :  { %v1407_v54 = vmul.f32 %v3982_v47, %v1405_v33  ;;  %v1404_v33 = vsel %vm353_vm13, %v1386_v60, %v1390_v18  ;;  %v1417_v63 = vadd.f32 %v1409_v57, %v1369_v43  ;;  %v1444_v57 = vsel %vm382_vm3, %v4827_v31, %v4831_v34 }
 0x4cf   :  { %v4869_v52 = vpop.permute.xlu0 %1559  ;;  %v4871_v50 = vpop.permute.xlu1 %1551 }
 0x4d0   :  { %5671 = vst [vmem:[#allocation21_spill] sm:$0xff] %v4869_v52  ;;  %5672 = vst [vmem:[#allocation22_spill] sm:$0xff] %v4871_v50  ;;  %v1362_v50 = vsel %vm312_vm11, %v1350_v3, %v4797_v28  ;;  %v1366_v52 = vsel %vm312_vm11, %v1358_v53, %v4799_v49  ;;  %v1360_v3 = vsel %vm312_vm11, %v4797_v28, %v1358_v53  ;;  %vm3662_vm11 = vmmov 0  }
 0x4d1   :  { %v1372_v49 = vmul.f32 %v3977_v46, %v1364_v13  ;;  %v1373_v21 = vmul.f32 %v3955_v41, %v1362_v50  ;;  %v1371_v10 = vmul.f32 %v3935_v37, %v1366_v52  ;;  %v1400_v28 = vsel %vm353_vm13, %v1394_v2, %v1398_v32 }
 0x4d2   :  { %v1374_v53 = vmul.f32 %v3952_v40, %v1360_v3  ;;  %v1443_v41 = vsel %vm382_vm3, %v4819_v15, %v1428_v20  ;;  %v1415_v52 = vadd.f32 %v1407_v54, %v1367_v0  ;;  %v1439_v32 = vsel %vm382_vm3, %v4821_v24, %v4823_v17 }
 0x4d3   :  { %v4899_v14 = vpop.permute.xlu0 %1563  ;;  %v4901_v19 = vpop.permute.xlu1 %1555  ;;  %v1420_v2 = vadd.f32 %v1404_v33, %v1372_v49  ;;  %v1421_v18 = vadd.f32 %v1413_v6, %v1373_v21  ;;  %v1483_v21 = vsel %vm419_vm2, %v4833_v25, %v4835_v35  ;;  %v1450_v27 = vmul.f32 %v3997_v51, %v1439_v32 }
 0x4d4   :  { %5673 = vst [vmem:[#allocation23_spill] sm:$0xff] %v4899_v14  ;;  %5674 = vst [vmem:[#allocation24_spill] sm:$0xff] %v4901_v19  ;;  %v1403_v14 = vsel %vm353_vm13, %v4808_v22, %v1388_v30  ;;  %v1411_v19 = vmul.f32 %v3982_v47, %v1406_v29  ;;  %v1441_v47 = vsel %vm382_vm3, %v1428_v20, %v4821_v24  ;;  %vm1963_vm13 = vcmask 130048  }
 0x4d5   :  { %v1416_v22 = vadd.f32 %v1403_v14, %v1368_v58  ;;  %v1422_v30 = vadd.f32 %v1400_v28, %v1374_v53  ;;  %v1448_v20 = vmul.f32 %v4015_v55, %v1443_v41  ;;  %v1449_v0 = vmul.f32 %v4018_v56, %v1441_v47  ;;  %v5675_v14 = vld [vmem:[#allocation2_spill] sm:$0xff] }
 0x4d6   :  { %v1419_v60 = vadd.f32 %v1411_v19, %v1371_v10  ;;  %v1447_v15 = vmul.f32 %v5675_v14, %v1445_v48  ;;  %v1442_v10 = vsel %vm382_vm3, %v4831_v34, %v4825_v4  ;;  %v1481_v19 = vsel %vm419_vm2, %v4835_v35, %v4837_v16 }
 0x4d7   :  { %v4929_v37 = vpop.permute.xlu0 %1561  ;;  %v4931_v50 = vpop.permute.xlu1 %1553  ;;  %v1446_v34 = vsel %vm382_vm3, %v4829_v23, %v4827_v31  ;;  %v1479_v13 = vsel %vm419_vm2, %v4837_v16, %v4839_v12  ;;  %v1485_v35 = vsel %vm419_vm2, %v4839_v12, %v4833_v25  ;;  %v1440_v29 = vsel %vm382_vm3, %v4825_v4, %v4829_v23 }
 0x4d8   :  { %v1452_v58 = vmul.f32 %v4015_v55, %v1444_v57  ;;  %v1484_v31 = vsel %vm419_vm2, %v4841_v45, %v4843_v26  ;;  %v1482_v16 = vsel %vm419_vm2, %v4843_v26, %v4845_v36  ;;  %v1453_v43 = vmul.f32 %v4018_v56, %v1442_v10 }
 0x4d9   :  { %v1488_v25 = vmul.f32 %v3977_v46, %v1483_v21  ;;  %v1489_v12 = vmul.f32 %v3960_v42, %v1481_v19  ;;  %v1486_v4 = vsel %vm419_vm2, %v4849_v8, %v4841_v45  ;;  %v1456_v23 = vadd.f32 %v1448_v20, %v1416_v22  ;;  %v5676_v19 = vld [vmem:[#allocation4_spill] sm:$0xff] }
 0x4da   :  { %v1451_v62 = vmul.f32 %v5675_v14, %v1446_v34  ;;  %v1487_v3 = vmul.f32 %v3938_v38, %v1485_v35  ;;  %v1490_v11 = vmul.f32 %v3952_v40, %v1479_v13  ;;  %v1457_v56 = vadd.f32 %v1449_v0, %v1417_v63  ;;  %v5678_v34 = vld [vmem:[#allocation18_spill] sm:$0xff]  ;;  %v5679_v35 = vld [vmem:[#allocation12_spill] sm:$0xff] }
 0x4db   :  { %v4960_v24 = vpop.permute.xlu0 %1599  ;;  %v4962_v17 = vpop.permute.xlu1 %1557  ;;  %v1492_v49 = vmul.f32 %v3977_v46, %v1484_v31  ;;  %v1493_v28 = vmul.f32 %v3960_v42, %v1482_v16  ;;  %v1480_v45 = vsel %vm419_vm2, %v4845_v36, %v4849_v8  ;;  %v1455_v33 = vadd.f32 %v1447_v15, %v1415_v52  ;;  %v5681_v31 = vld [vmem:[#allocation16_spill] sm:$0xff] }
 0x4dc   :  { %v1458_v6 = vadd.f32 %v1450_v27, %v1418_v5  ;;  %v1454_v53 = vmul.f32 %v3997_v51, %v1440_v29  ;;  %v1491_v41 = vmul.f32 %v3938_v38, %v1486_v4  ;;  %v1460_v47 = vadd.f32 %v1452_v58, %v1420_v2  ;;  %v5680_v29 = vld [vmem:[#allocation11_spill] sm:$0xff]  ;;  %v5684_v4 = vld [vmem:[#allocation14_spill] sm:$0xff] }
 0x4dd   :  { %v1461_v22 = vadd.f32 %v1453_v43, %v1421_v18  ;;  %v1496_v48 = vadd.f32 %v1488_v25, %v1456_v23  ;;  %v1497_v32 = vadd.f32 %v1489_v12, %v1457_v56  ;;  %v1459_v63 = vadd.f32 %v1451_v62, %v1419_v60  ;;  %v5683_v43 = vld [vmem:[#allocation3_spill] sm:$0xff] }
 0x4de   :  { %v1495_v20 = vadd.f32 %v1487_v3, %v1455_v33  ;;  %v1498_v46 = vadd.f32 %v1490_v11, %v1458_v6  ;;  %v1494_v0 = vmul.f32 %v3952_v40, %v1480_v45  ;;  %v1500_v10 = vadd.f32 %v1492_v49, %v1460_v47  ;;  %v5685_v62 = vld [vmem:[#allocation23_spill] sm:$0xff]  ;;  %v5686_v3 = vld [vmem:[#allocation21_spill] sm:$0xff]  ;;  %v5687_v49 = vld [vmem:[#allocation22_spill] sm:$0xff] }
 0x4df   :  { %v5000_v54 = vpop.permute.xlu0 %1603  ;;  %v5002_v26 = vpop.permute.xlu1 %1565  ;;  %v1501_v36 = vadd.f32 %v1493_v28, %v1461_v22  ;;  %v1527_v8 = vsel %vm452_vm4, %v4847_v39, %v4853_v44  ;;  %v1533_v5 = vsel %vm452_vm4, %v4853_v44, %v4851_v1  ;;  %v1462_v52 = vadd.f32 %v1454_v53, %v1422_v30  ;;  %v5677_v30 = vld [vmem:[#allocation17_spill] sm:$0xff]  ;;  %v5688_v45 = vld [vmem:[#allocation24_spill] sm:$0xff]  ;;  %v5689_v47 = vld [vmem:[#allocation19_spill] sm:$0xff] }
 0x4e0   :  { %v1499_v60 = vadd.f32 %v1491_v41, %v1459_v63  ;;  %v1505_v2 = vadd.f32 %v1497_v32, %v4478_v61  ;;  %v1504_v40 = vadd.f32 %v1496_v48, %v4486_v59  ;;  %v1529_v18 = vsel %vm452_vm4, %v4855_v9, %v4847_v39  ;;  %v5690_v22 = vld [vmem:[#allocation15_spill] sm:$0xff] }
 0x4e1   :  { %v1531_v15 = vsel %vm452_vm4, %v4851_v1, %v4855_v9  ;;  %v1502_v21 = vadd.f32 %v1494_v0, %v1462_v52  ;;  %v1537_v27 = vmul.f32 %v5676_v19, %v1527_v8  ;;  %v1538_v44 = vmul.f32 %v3997_v51, %v1533_v5  ;;  %v5682_v9 = vld [vmem:[#allocation13_spill] sm:$0xff]  ;;  %v5692_v5 = vld [vmem:[#allocation6_spill] sm:$0xff] }
 0x4e2   :  { %v1530_v61 = vsel %vm452_vm4, %v5678_v34, %v5677_v30  ;;  %v1506_v39 = vadd.f32 %v1498_v46, %v5679_v35  ;;  %v1503_v58 = vadd.f32 %v1495_v20, %v5680_v29  ;;  %v1508_v16 = vadd.f32 %v1500_v10, %v5681_v31  ;;  %v5691_v20 = vld [vmem:[#allocation20_spill] sm:$0xff] }
 0x4e3   :  { %v1592_v57 = vpop.permute.xlu1 %1591  ;;  %v5013_v14 = vpop.permute.xlu0 %1597  ;;  %v5045_v1 = vadd.f32 %v1501_v36, %v5682_v9  ;;  %v1535_v25 = vmul.f32 %v5683_v43, %v1531_v15  ;;  %v1536_v12 = vmul.f32 %v4015_v55, %v1529_v18  ;;  %v1507_v23 = vadd.f32 %v1499_v60, %v5684_v4 }
 0x4e4   :  { %v1567_v11 = vsel %vm481_vm6, %v5686_v3, %v5685_v62  ;;  %v1540_v56 = vmul.f32 %v4015_v55, %v1530_v61  ;;  %v1573_v28 = vsel %vm481_vm6, %v5685_v62, %v5687_v49  ;;  %v1569_v33 = vsel %vm481_vm6, %v5688_v45, %v5686_v3  ;;  %v5694_v61 = vld [vmem:[#allocation8_spill] sm:$0xff] }
 0x4e5   :  { %v1571_v6 = vsel %vm481_vm6, %v5687_v49, %v5688_v45  ;;  %v1545_v53 = vadd.f32 %v1537_v27, %v1505_v2  ;;  %v1546_v41 = vadd.f32 %v1538_v44, %v1506_v39  ;;  %v1532_v55 = vsel %vm452_vm4, %v5689_v47, %v5678_v34  ;;  %v5693_v2 = vld [vmem:[#allocation5_spill] sm:$0xff]  ;;  %v5695_v39 = vld [vmem:[#allocation7_spill] sm:$0xff] }
 0x4e6   :  { %v1510_v48 = vadd.f32 %v1502_v21, %v5690_v22  ;;  %v1528_v46 = vsel %vm452_vm4, %v5677_v30, %v5691_v20  ;;  %v1577_v0 = vmul.f32 %v3960_v42, %v1567_v11  ;;  %v1613_v10 = vsel %vm518_vm8, %v5000_v54, %v1592_v57 }
 0x4e7   :  { %v1596_v59 = vpop.permute.xlu1 %1595  ;;  %v5039_v13 = vpop.permute.xlu0 %1605  ;;  %v1534_v8 = vsel %vm452_vm4, %v5691_v20, %v5689_v47  ;;  %v1578_v52 = vmul.f32 %v5692_v5, %v1573_v28  ;;  %v1575_v60 = vmul.f32 %v3938_v38, %v1571_v6  ;;  %v1576_v18 = vmul.f32 %v5693_v2, %v1569_v33  ;;  %v5696_v6 = vld [vmem:[#allocation10_spill] sm:$0xff]  ;;  %v5697_v47 = vld [vmem:[#allocation9_spill] sm:$0xff] }
 0x4e8   :  { %v1609_v36 = vsel %vm518_vm8, %v1596_v59, %v4960_v24  ;;  %v1543_v15 = vadd.f32 %v1535_v25, %v1503_v58  ;;  %v1544_v21 = vadd.f32 %v1536_v12, %v1504_v40  ;;  %v1548_v27 = vadd.f32 %v1540_v56, %v1508_v16 }
 0x4e9   :  { %v1539_v44 = vmul.f32 %v5683_v43, %v1532_v55  ;;  %v1570_v30 = vsel %vm481_vm6, %v4962_v17, %v4929_v37  ;;  %v1607_v34 = vsel %vm518_vm8, %v4960_v24, %v5000_v54  ;;  %v1618_v35 = vmul.f32 %v5694_v61, %v1613_v10 }
 0x4ea   :  { %v1616_v29 = vmul.f32 %v5695_v39, %v1609_v36  ;;  %v1541_v40 = vmul.f32 %v5676_v19, %v1528_v46  ;;  %v1542_v16 = vmul.f32 %v3997_v51, %v1534_v8  ;;  %v1585_v9 = vadd.f32 %v1577_v0, %v1545_v53 }
 0x4eb   :  { %v1602_v32 = vpop.permute.xlu1 %1601  ;;  %v1640_v63 = vpop.permute.xlu0 %1639  ;;  %v1611_v25 = vsel %vm518_vm8, %v1592_v57, %v1596_v59  ;;  %v1586_v12 = vadd.f32 %v1578_v52, %v1546_v41  ;;  %v1584_v4 = vadd.f32 %v1576_v18, %v1544_v21  ;;  %v1572_v24 = vsel %vm481_vm6, %v4931_v50, %v4962_v17 }
 0x4ec   :  { %v1583_v54 = vadd.f32 %v1575_v60, %v1543_v15  ;;  %v1580_v62 = vmul.f32 %v5693_v2, %v1570_v30  ;;  %v1625_v3 = vadd.f32 %v1607_v34, %v1585_v9  ;;  %v1568_v51 = vsel %vm481_vm6, %v4929_v37, %v5002_v26 }
 0x4ed   :  { %v1574_v57 = vsel %vm481_vm6, %v5002_v26, %v4931_v50  ;;  %v1626_v59 = vadd.f32 %v1618_v35, %v1586_v12  ;;  %v1624_v56 = vadd.f32 %v1616_v29, %v1584_v4  ;;  %v1610_v17 = vsel %vm518_vm8, %v5013_v14, %v1602_v32 }
 0x4ee   :  { %v1623_v11 = vadd.f32 %v1611_v25, %v1583_v54  ;;  %v1547_v22 = vadd.f32 %v1539_v44, %v1507_v23  ;;  %v1581_v20 = vmul.f32 %v3960_v42, %v1568_v51  ;;  %v1620_v46 = vmul.f32 %v5695_v39, %v1610_v17 }
 0x4ef   :  { %v1594_v31 = vpop.permute.xlu1 %1593  ;;  %v1632_v58 = vpop.permute.xlu0 %1631  ;;  %v1549_v60 = vadd.f32 %v1541_v40, %v5045_v1  ;;  %v1579_v2 = vmul.f32 %v3938_v38, %v1572_v24  ;;  %v1588_v18 = vadd.f32 %v1580_v62, %v1548_v27  ;;  %v1582_v23 = vmul.f32 %v5692_v5, %v1574_v57 }
 0x4f0   :  { %v1550_v42 = vadd.f32 %v1542_v16, %v1510_v48  ;;  %v1608_v21 = vsel %vm518_vm8, %v1602_v32, %v5039_v13  ;;  %v1612_v48 = vsel %vm518_vm8, %v1594_v31, %v5013_v14 }
 0x4f1   :  { %v1628_v30 = vadd.f32 %v1620_v46, %v1588_v18  ;;  %v1589_v38 = vadd.f32 %v1581_v20, %v1549_v60  ;;  %v3628_v20 = vld [vmem:[%s5583_s4 + $0x18] sm:$0xff]   ;;  %v3629_v46 = vld [vmem:[%s5583_s4 + $0x20] sm:$0xff]  }
 0x4f2   :  { %v1590_v27 = vadd.f32 %v1582_v23, %v1550_v42 }
 0x4f3   :  { %v1644_v49 = vpop.permute.xlu0 %1643  ;;  %v1636_v28 = vpop.permute.xlu1 %1635  ;;  %v1629_v29 = vadd.f32 %v1608_v21, %v1589_v38 }
 0x4f4   :  { %v1647_v45 = vsel %vm547_vm15, %v1640_v63, %v1644_v49  ;;  %v1653_v37 = vsel %vm547_vm15, %v1644_v49, %v1632_v58  ;;  %v1649_v33 = vsel %vm547_vm15, %v1636_v28, %v1640_v63  ;;  %v1651_v50 = vsel %vm547_vm15, %v1632_v58, %v1636_v28 }
 0x4f5   :  { %v1657_v26 = vmul.f32 %v5676_v19, %v1647_v45  ;;  %v1658_v53 = vmul.f32 %v5696_v6, %v1653_v37  ;;  %v1655_v41 = vmul.f32 %v5683_v43, %v1651_v50  ;;  %v1656_v55 = vmul.f32 %v5697_v47, %v1649_v33 }
 0x4f6   :  { %v1614_v63 = vsel %vm518_vm8, %v5039_v13, %v1594_v31  ;;  %v1587_v13 = vadd.f32 %v1579_v2, %v1547_v22  ;;  %v3627_v22 = vld [vmem:[%s5583_s4 + $0x10] sm:$0xff]   ;;  %vm2823_vm8 = vcmask 261120  }
 0x4f7   :  { %v1665_v0 = vadd.f32 %v1657_v26, %v1625_v3  ;;  %v1663_v10 = vadd.f32 %v1655_v41, %v1623_v11  ;;  %v1642_v36 = vpop.permute.xlu0 %1641  ;;  %v1664_v8 = vadd.f32 %v1656_v55, %v1624_v56  ;;  %v1666_v52 = vadd.f32 %v1658_v53, %v1626_v59  ;;  %v1638_v15 = vpop.permute.xlu1 %1637  ;;  %v3626_v55 = vld [vmem:[%s5583_s4 + $0x8] sm:$0xff]  }
 0x4f8   :  { %v1650_v44 = vsel %vm547_vm15, %v1638_v15, %v1642_v36  ;;  %v1622_v34 = vmul.f32 %v5694_v61, %v1614_v63  ;;  %v1627_v16 = vadd.f32 %v1612_v48, %v1587_v13  ;;  %v3630_v63 = vld [vmem:[%s5583_s4 + $0x28] sm:$0xff]  }
 0x4f9   :  { %1811 = vmatprep.mubr.f32.mxu0 %v1664_v8  ;;  %1886 = vmatprep.mubr.f32.mxu1 %v1666_v52  ;;  %v1660_v1 = vmul.f32 %v5697_v47, %v1650_v44  ;;  %v3625_v47 = vld [vmem:[%s5583_s4] sm:$0xff]  }
 0x4fa   :  { %1812 = vmatmul.mubr.f32.vlgmr.msra.gmra.mrb[76].mxu0 %v1663_v10  ;;  %1887 = vmatmul.mubr.f32.vlgmr.msra.gmra.mrb[76].mxu1 %v1665_v0  ;;  %v1630_v9 = vadd.f32 %v1622_v34, %v1590_v27  ;;  %v3631_v0 = vld [vmem:[%s5583_s4 + $0x30] sm:$0xff]   ;;  %v3632_v10 = vld [vmem:[%s5583_s4 + $0x38] sm:$0xff]  }
 0x4fb   :  { %v1646_v5 = vpop.permute.xlu0 %1645  ;;  %v1634_v35 = vpop.permute.xlu1 %1633  ;;  %v1668_v39 = vadd.f32 %v1660_v1, %v1628_v30 }
 0x4fc   :  { %v1648_v32 = vsel %vm547_vm15, %v1642_v36, %v1646_v5  ;;  %v1652_v58 = vsel %vm547_vm15, %v1634_v35, %v1638_v15  ;;  %v1654_v40 = vsel %vm547_vm15, %v1646_v5, %v1634_v35  ;;  %v3633_v36 = vld [vmem:[%s5583_s4 + $0x40] sm:$0xff]   ;;  %s3665_s4 = smov 7   ;;  %vm3024_vm15 = vcmask 15360  }
 0x4fd   :  { %v1661_v61 = vmul.f32 %v5676_v19, %v1648_v32  ;;  %v1659_v14 = vmul.f32 %v5683_v43, %v1652_v58  ;;  %v1662_v31 = vmul.f32 %v5696_v6, %v1654_v40  ;;  %1816 = vmatprep.mubr.f32.mxu0 %v1668_v39  ;;  %v5698_v19 = vmov 0.0  }
 0x4ff   :  { %v1669_v25 = vadd.f32 %v1661_v61, %v1629_v29  ;;  %v1667_v12 = vadd.f32 %v1659_v14, %v1627_v16  ;;  %v1670_v4 = vadd.f32 %v1662_v31, %v1630_v9 }
 0x501   :  { %1817 = vmatmul.mubr.f32.gmra.mrb[78].mxu0 %v1667_v12  ;;  %1891 = vmatprep.mubr.f32.mxu1 %v1670_v4 }
 0x502   :  { %1892 = vmatmul.mubr.f32.gmra.mrb[78].mxu1 %v1669_v25  ;;  %3336 = vmatprep.mubr.msk.bf16.mxu0 %vm3662_vm11, %v5698_v19 }
 0x50c   :  { %v1740_v24 = vpop.permute.xlu1 %1739  ;;  %v1745_v37 = vpop.permute.xlu0 %1744 }
 0x5cd   :  { %v3227_v54 = vpop.f32.mrb[76].mxu0  ;;  %v3265_v62 = vpop.f32.mrb[76].mxu1 }
 0x5ce   :  { %v3228_v3 = vpop.f32.mrb[77].mxu0  ;;  %v3266_v51 = vpop.f32.mrb[77].mxu1 }
 0x5cf   :  { %v3229_v57 = vadd.f32 %v3228_v3, %v3227_v54  ;;  %v3267_v43 = vadd.f32 %v3266_v51, %v3265_v62  ;;  %v3634_v62 = vld [vmem:[%s5584_s5] sm:$0xff]  }
 0x5d0   :  { %3374 = vmatprep.mubr.msk.bf16.mxu1 %vm1963_vm13, %v3634_v62 }
 0x5d1   :  { %v1814_v59 = vadd.f32 %v3229_v57, %v1740_v24  ;;  %v5238_v57 = vpop.permute.xlu1 %2192 }
 0x5d3   :  { %v1889_v11 = vadd.f32 %v3267_v43, %v1814_v59  ;;  %v5240_v43 = vpop.permute.xlu0 %2197 }
 0x5d4   :  { %v3230_v56 = vpop.f32.mrb[78].mxu0 }
 0x5d5   :  { %v3231_v17 = vpop.f32.mrb[79].mxu0  ;;  %v3268_v49 = vpop.f32.mrb[78].mxu1  ;;  %v1897_v6 = vmax.f32 %v1889_v11, 0.0  ;;  %v2096_v11 = vand.u32 63, %v3876_v7 }
 0x5d6   :  { %v3232_v28 = vadd.f32 %v3231_v17, %v3230_v56  ;;  %v3269_v45 = vpop.f32.mrb[79].mxu1  ;;  %v2097_v56 = vand.u32 7, %v3876_v7 }
 0x5d7   :  { %v3270_v33 = vadd.f32 %v3269_v45, %v3268_v49  ;;  %vm2102_vm3 = vcmp.ge.s32.totalorder %v2096_v11, 8  ;;  %vm5274_vm7 = vcmp.lt.s32.totalorder %v2096_v11, 56 }
 0x5d8   :  { %v1819_v50 = vadd.f32 %v3232_v28, %v1745_v37  ;;  %vm5244_vm2 = vcmp.ge.s32.totalorder %v2097_v56, 1  ;;  %vm5248_vm4 = vcmp.lt.s32.totalorder %v2097_v56, 7  ;;  %v5257_v7 = vsel %vm2102_vm3, 1.0, %v5698_v19  ;;  %v3636_v28 = vld [vmem:[%s5584_s5 + $0x10] sm:$0xff]  }
 0x5d9   :  { %vm2104_vm5 = vmand %vm2102_vm3, %vm5244_vm2  ;;  %v3640_v37 = vld [vmem:[%s5584_s5 + $0x30] sm:$0xff]  }
 0x5da   :  { %v1894_v26 = vadd.f32 %v3270_v33, %v1819_v50  ;;  %vm2126_vm6 = vmand %vm2102_vm3, %vm5248_vm4 }
 0x5db   :  { %vm2160_vm9 = vmand %vm5274_vm7, %vm5244_vm2 }
 0x5dc   :  { %v1898_v53 = vmax.f32 %v1894_v26, 0.0  ;;  %v5260_v26 = vsel %vm2104_vm5, 1.0, %v5698_v19  ;;  %vm2181_vm10 = vmand %vm5274_vm7, %vm5248_vm4 }
 0x5de   :  { %v1899_v41 = vpack.c.bf16 %v1898_v53, %v1897_v6  ;;  %v5263_v6 = vsel %vm2126_vm6, 1.0, %v5698_v19 }
 0x5e0   :  { %3335 = vmatpush3.bf16.msra.mxu0 %v1899_v41 }
 0x5e3   :  { %3337 = vmatmul.mubr.msk.bf16.vlgmr.msra.gmra.mrb[80].mxu0 %vm1963_vm13, %v3625_v47  ;;  %v5269_v47 = vsel %vm5244_vm2, 1.0, %v5698_v19 }
 0x5e4   :  { %3340 = vmatprep.mubr.msk.bf16.mxu0 %vm3662_vm11, %v5698_v19 }
 0x5eb   :  { %3341 = vmatmul.mubr.msk.bf16.gmra.mrb[84].mxu0 %vm1963_vm13, %v3626_v55 }
 0x5ec   :  { %3344 = vmatprep.mubr.msk.bf16.mxu0 %vm3662_vm11, %v5698_v19 }
 0x5f3   :  { %3345 = vmatmul.mubr.msk.bf16.gmra.mrb[88].mxu0 %vm1963_vm13, %v3627_v22 }
 0x5f4   :  { %3348 = vmatprep.mubr.msk.bf16.mxu0 %vm3662_vm11, %v5698_v19 }
 0x5fb   :  { %3349 = vmatmul.mubr.msk.bf16.gmra.mrb[92].mxu0 %vm1963_vm13, %v3628_v20 }
 0x5fc   :  { %3352 = vmatprep.mubr.msk.bf16.mxu0 %vm3662_vm11, %v5698_v19 }
 0x603   :  { %3353 = vmatmul.mubr.msk.bf16.gmra.mrb[96].mxu0 %vm1963_vm13, %v3629_v46 }
 0x604   :  { %3356 = vmatprep.mubr.msk.bf16.mxu0 %vm3662_vm11, %v5698_v19 }
 0x60b   :  { %3357 = vmatmul.mubr.msk.bf16.gmra.mrb[100].mxu0 %vm1963_vm13, %v3630_v63 }
 0x60c   :  { %3360 = vmatprep.mubr.msk.bf16.mxu0 %vm3662_vm11, %v5698_v19 }
 0x613   :  { %3361 = vmatmul.mubr.msk.bf16.gmra.mrb[104].mxu0 %vm1963_vm13, %v3631_v0  ;;  %v3650_v0 = vld [vmem:[%s5584_s5 + $0x80] sm:$0xff]  }
 0x614   :  { %3364 = vmatprep.mubr.msk.bf16.mxu0 %vm3662_vm11, %v5698_v19 }
 0x61b   :  { %3365 = vmatmul.mubr.msk.bf16.gmra.mrb[108].mxu0 %vm1963_vm13, %v3632_v10 }
 0x61c   :  { %3368 = vmatprep.mubr.msk.bf16.mxu0 %vm3662_vm11, %v5698_v19 }
 0x623   :  { %3369 = vmatmul.mubr.msk.bf16.gmra.mrb[112].mxu0 %vm1963_vm13, %v3633_v36 }
 0x6b6   :  { %v2025_v8 = vpop.f32.mrb[80].mxu0 }
 0x6b7   :  { %2098 = vrot.lane.b32.xlu1 %v2025_v8, %s3663_s19  ;;  %v3338_v52 = vpop.f32.mrb[81].mxu0 }
 0x6b8   :  { %v2028_v60 = vpop.f32.mrb[82].mxu0 }
 0x6b9   :  { %2100 = vrot.lane.b32.xlu0 %v2028_v60, %s3663_s19  ;;  %v3339_v2 = vpop.f32.mrb[83].mxu0 }
 0x6be   :  { %v2033_v18 = vpop.f32.mrb[84].mxu0 }
 0x6bf   :  { %2111 = vrot.lane.b32.xlu1 %v2033_v18, %s3664_s28  ;;  %v3342_v23 = vpop.f32.mrb[85].mxu0 }
 0x6c0   :  { %v2036_v15 = vpop.f32.mrb[86].mxu0 }
 0x6c1   :  { %2113 = vrot.lane.b32.xlu0 %v2036_v15, %s3664_s28  ;;  %v3343_v42 = vpop.f32.mrb[87].mxu0  ;;  %v5289_v15 = vsel %vm5248_vm4, 1.0, %v5698_v19 }
 0x6c6   :  { %v2041_v21 = vpop.f32.mrb[88].mxu0 }
 0x6c7   :  { %2121 = vrot.lane.b32.xlu1 %v2041_v21, %s3665_s4  ;;  %v3346_v44 = vpop.f32.mrb[89].mxu0 }
 0x6c8   :  { %v2044_v30 = vpop.f32.mrb[90].mxu0 }
 0x6c9   :  { %2123 = vrot.lane.b32.xlu0 %v2044_v30, %s3665_s4  ;;  %v3347_v34 = vpop.f32.mrb[91].mxu0  ;;  %v5292_v30 = vsel %vm2160_vm9, 1.0, %v5698_v19 }
 0x6ce   :  { %v2049_v1 = vpop.f32.mrb[92].mxu0 }
 0x6cf   :  { %2133 = vrot.lane.b32.xlu1 %v2049_v1, %s3656_s29  ;;  %v3350_v38 = vpop.f32.mrb[93].mxu0 }
 0x6d0   :  { %v2052_v48 = vpop.f32.mrb[94].mxu0 }
 0x6d1   :  { %2135 = vrot.lane.b32.xlu0 %v2052_v48, %s3656_s29  ;;  %v3351_v5 = vpop.f32.mrb[95].mxu0  ;;  %v5298_v48 = vsel %vm5274_vm7, 1.0, %v5698_v19 }
 0x6d6   :  { %v5222_v27 = vpop.f32.mrb[96].mxu0 }
 0x6d7   :  { %v3354_v13 = vpop.f32.mrb[97].mxu0 }
 0x6d8   :  { %v5224_v32 = vpop.f32.mrb[98].mxu0 }
 0x6d9   :  { %v3355_v35 = vpop.f32.mrb[99].mxu0 }
 0x6de   :  { %v2065_v39 = vpop.f32.mrb[100].mxu0 }
 0x6df   :  { %2145 = vrot.lane.b32.xlu1 %v2065_v39, %s3657_s0  ;;  %v3358_v29 = vpop.f32.mrb[101].mxu0 }
 0x6e0   :  { %v2068_v61 = vpop.f32.mrb[102].mxu0 }
 0x6e1   :  { %2147 = vrot.lane.b32.xlu0 %v2068_v61, %s3657_s0  ;;  %v3359_v58 = vpop.f32.mrb[103].mxu0 }
 0x6e6   :  { %v2073_v40 = vpop.f32.mrb[104].mxu0 }
 0x6e7   :  { %2155 = vrot.lane.b32.xlu1 %v2073_v40, %s3666_s8  ;;  %v3362_v16 = vpop.f32.mrb[105].mxu0 }
 0x6e8   :  { %v2076_v9 = vpop.f32.mrb[106].mxu0 }
 0x6e9   :  { %2157 = vrot.lane.b32.xlu0 %v2076_v9, %s3666_s8  ;;  %v3363_v14 = vpop.f32.mrb[107].mxu0  ;;  %v5311_v9 = vsel %vm2181_vm10, 1.0, %v5698_v19 }
 0x6ee   :  { %v2081_v31 = vpop.f32.mrb[108].mxu0 }
 0x6ef   :  { %2167 = vrot.lane.b32.xlu1 %v2081_v31, %s3667_s9  ;;  %v3366_v25 = vpop.f32.mrb[109].mxu0 }
 0x6f0   :  { %v2084_v12 = vpop.f32.mrb[110].mxu0 }
 0x6f1   :  { %2169 = vrot.lane.b32.xlu0 %v2084_v12, %s3667_s9  ;;  %v3367_v4 = vpop.f32.mrb[111].mxu0 }
 0x6f6   :  { %v2089_v24 = vpop.f32.mrb[112].mxu0 }
 0x6f7   :  { %2177 = vrot.lane.b32.xlu1 %v2089_v24, %s3668_s20  ;;  %v3370_v54 = vpop.f32.mrb[113].mxu0 }
 0x6f8   :  { %v2092_v3 = vpop.f32.mrb[114].mxu0 }
 0x6f9   :  { %2179 = vrot.lane.b32.xlu0 %v2092_v3, %s3668_s20  ;;  %v3371_v51 = vpop.f32.mrb[115].mxu0 }
 0x729   :  { %v2099_v59 = vpop.permute.xlu1 %2098 }
 0x72a   :  { %v2107_v22 = vmul.f32 %v5260_v26, %v2099_v59 }
 0x72b   :  { %v2101_v17 = vpop.permute.xlu0 %2100 }
 0x72c   :  { %v2108_v10 = vmul.f32 %v5260_v26, %v2101_v17 }
 0x731   :  { %v2112_v49 = vpop.permute.xlu1 %2111 }
 0x732   :  { %v2117_v41 = vmul.f32 %v5257_v7, %v2112_v49  ;;  %v3635_v49 = vld [vmem:[%s5584_s5 + $0x8] sm:$0xff]  }
 0x733   :  { %v2114_v45 = vpop.permute.xlu0 %2113 }
 0x734   :  { %v2118_v20 = vmul.f32 %v5257_v7, %v2114_v45  ;;  %v2119_v36 = vadd.f32 %v2117_v41, %v2107_v22  ;;  %v3639_v45 = vld [vmem:[%s5584_s5 + $0x28] sm:$0xff]   ;;  %v3644_v41 = vld [vmem:[%s5584_s5 + $0x50] sm:$0xff]   ;;  %v3646_v22 = vld [vmem:[%s5584_s5 + $0x60] sm:$0xff]  }
 0x736   :  { %v2120_v2 = vadd.f32 %v2118_v20, %v2108_v10  ;;  %v3647_v20 = vld [vmem:[%s5584_s5 + $0x68] sm:$0xff]  }
 0x737   :  { %v3651_v10 = vld [vmem:[%s5584_s5 + $0x88] sm:$0xff]  }
 0x739   :  { %v2122_v33 = vpop.permute.xlu1 %2121 }
 0x73a   :  { %v2129_v46 = vmul.f32 %v5263_v6, %v2122_v33  ;;  %v3641_v33 = vld [vmem:[%s5584_s5 + $0x38] sm:$0xff]  }
 0x73b   :  { %v2124_v50 = vpop.permute.xlu0 %2123 }
 0x73c   :  { %v2130_v8 = vmul.f32 %v5263_v6, %v2124_v50  ;;  %v2131_v18 = vadd.f32 %v2129_v46, %v2119_v36  ;;  %v3642_v50 = vld [vmem:[%s5584_s5 + $0x40] sm:$0xff]   ;;  %v3648_v46 = vld [vmem:[%s5584_s5 + $0x70] sm:$0xff]  }
 0x73e   :  { %v2132_v21 = vadd.f32 %v2130_v8, %v2120_v2 }
 0x741   :  { %v2134_v53 = vpop.permute.xlu1 %2133 }
 0x742   :  { %v2139_v52 = vmul.f32 %v5269_v47, %v2134_v53  ;;  %v3643_v53 = vld [vmem:[%s5584_s5 + $0x48] sm:$0xff]  }
 0x743   :  { %v2136_v55 = vpop.permute.xlu0 %2135 }
 0x744   :  { %v2140_v23 = vmul.f32 %v5269_v47, %v2136_v55  ;;  %v2141_v44 = vadd.f32 %v2139_v52, %v2131_v18  ;;  %v3645_v55 = vld [vmem:[%s5584_s5 + $0x58] sm:$0xff]  }
 0x746   :  { %v2142_v1 = vadd.f32 %v2140_v23, %v2132_v21  ;;  %v2143_v13 = vadd.f32 %v2141_v44, %v5222_v27 }
 0x748   :  { %v2144_v58 = vadd.f32 %v2142_v1, %v5224_v32 }
 0x751   :  { %v2146_v63 = vpop.permute.xlu1 %2145 }
 0x752   :  { %v2151_v38 = vmul.f32 %v5289_v15, %v2146_v63  ;;  %v3649_v63 = vld [vmem:[%s5584_s5 + $0x78] sm:$0xff]  }
 0x753   :  { %v2148_v60 = vpop.permute.xlu0 %2147 }
 0x754   :  { %v2152_v35 = vmul.f32 %v5289_v15, %v2148_v60  ;;  %v2153_v61 = vadd.f32 %v2151_v38, %v2143_v13 }
 0x756   :  { %v2154_v27 = vadd.f32 %v2152_v35, %v2144_v58 }
 0x759   :  { %v2156_v42 = vpop.permute.xlu1 %2155 }
 0x75a   :  { %v2163_v39 = vmul.f32 %v5292_v30, %v2156_v42 }
 0x75b   :  { %v2158_v34 = vpop.permute.xlu0 %2157 }
 0x75c   :  { %v2164_v40 = vmul.f32 %v5292_v30, %v2158_v34  ;;  %v2165_v14 = vadd.f32 %v2163_v39, %v2153_v61  ;;  %v2694_v39 = vld [vmem:[%s5585_s12] sm:$0xff] }
 0x75e   :  { %v2166_v12 = vadd.f32 %v2164_v40, %v2154_v27  ;;  %v2696_v27 = vld [vmem:[%s5585_s12 + $0x10] sm:$0xff] }
 0x761   :  { %v2168_v5 = vpop.permute.xlu1 %2167 }
 0x762   :  { %v2173_v16 = vmul.f32 %v5298_v48, %v2168_v5 }
 0x763   :  { %v2170_v29 = vpop.permute.xlu0 %2169 }
 0x764   :  { %v2174_v31 = vmul.f32 %v5298_v48, %v2170_v29  ;;  %v2175_v4 = vadd.f32 %v2173_v16, %v2165_v14  ;;  %v2695_v29 = vld [vmem:[%s5585_s12 + $0x8] sm:$0xff]  ;;  %v2697_v14 = vld [vmem:[%s5585_s12 + $0x18] sm:$0xff] }
 0x765   :  { %v3537_v61 = vpack.c.bf16 %v2695_v29, %v2694_v39 }
 0x766   :  { %v2176_v62 = vadd.f32 %v2174_v31, %v2166_v12  ;;  %v2698_v12 = vld [vmem:[%s5585_s12 + $0x20] sm:$0xff] }
 0x767   :  { %3538 = vmatprep.subr.bf16.mxu0 %v3537_v61 }
 0x768   :  { %3540 = vmatpush3.bf16.msra.mxu0 %v3537_v61 }
 0x769   :  { %v2178_v25 = vpop.permute.xlu1 %2177 }
 0x76a   :  { %v2184_v24 = vmul.f32 %v5311_v9, %v2178_v25  ;;  %v3541_v25 = vpack.c.bf16 %v2697_v14, %v2696_v27 }
 0x76b   :  { %v2180_v54 = vpop.permute.xlu0 %2179 }
 0x76c   :  { %v2186_v3 = vadd.f32 %v2184_v24, %v2175_v4  ;;  %v2185_v32 = vmul.f32 %v5311_v9, %v2180_v54  ;;  %3542 = vmatprep.subr.bf16.mxu0 %v3541_v25  ;;  %v2699_v4 = vld [vmem:[%s5585_s12 + $0x28] sm:$0xff] }
 0x76d   :  { %3544 = vmatpush3.bf16.msra.mxu0 %v3541_v25  ;;  %v3545_v24 = vpack.c.bf16 %v2699_v4, %v2698_v12 }
 0x76e   :  { %v2200_v51 = vadd.f32 %v5238_v57, %v2186_v3  ;;  %v2187_v59 = vadd.f32 %v2185_v32, %v2176_v62  ;;  %v3637_v57 = vld [vmem:[%s5584_s5 + $0x18] sm:$0xff]   ;;  %v2700_v32 = vld [vmem:[%s5585_s12 + $0x30] sm:$0xff] }
 0x76f   :  { %3546 = vmatprep.subr.bf16.mxu0 %v3545_v24 }
 0x770   :  { %v2201_v19 = vadd.f32 %v5240_v43, %v2187_v59  ;;  %v2202_v11 = vmax.f32 %v2200_v51, 0.0  ;;  %v3638_v43 = vld [vmem:[%s5584_s5 + $0x20] sm:$0xff]   ;;  %v2701_v51 = vld [vmem:[%s5585_s12 + $0x38] sm:$0xff] }
 0x771   :  { %3548 = vmatpush3.bf16.msra.mxu0 %v3545_v24 }
 0x772   :  { %v2203_v56 = vmax.f32 %v2201_v19, 0.0  ;;  %v3549_v19 = vpack.c.bf16 %v2701_v51, %v2700_v32 }
 0x774   :  { %v2204_v17 = vpack.c.bf16 %v2203_v56, %v2202_v11  ;;  %3550 = vmatprep.subr.bf16.mxu0 %v3549_v19  ;;  %v2702_v11 = vld [vmem:[%s5585_s12 + $0x40] sm:$0xff]  ;;  %v2703_v56 = vld [vmem:[%s5585_s12 + $0x48] sm:$0xff] }
 0x775   :  { %3552 = vmatpush3.bf16.msra.mxu0 %v3549_v19 }
 0x776   :  { %3372 = vmatprep.subr.bf16.mxu1 %v2204_v17 }
 0x777   :  { %3373 = vmatpush3.bf16.msra.mxu1 %v2204_v17  ;;  %v3553_v17 = vpack.c.bf16 %v2703_v56, %v2702_v11 }
 0x779   :  { %3554 = vmatprep.subr.bf16.mxu0 %v3553_v17 }
 0x77a   :  { %3375 = vmatmul.mubr.msk.bf16.vlgmr.msra.gmra.mrb[80].mxu1 %vm1963_vm13, %v3635_v49  ;;  %3556 = vmatpush3.bf16.msra.mxu0 %v3553_v17 }
 0x77b   :  { %3378 = vmatprep.mubr.msk.bf16.mxu1 %vm1963_vm13, %v3636_v28 }
 0x782   :  { %3379 = vmatmul.mubr.msk.bf16.gmra.mrb[84].mxu1 %vm1963_vm13, %v3637_v57 }
 0x783   :  { %3382 = vmatprep.mubr.msk.bf16.mxu1 %vm1963_vm13, %v3638_v43  ;;  %v2704_v43 = vld [vmem:[%s5585_s12 + $0x50] sm:$0xff] }
 0x78a   :  { %3383 = vmatmul.mubr.msk.bf16.gmra.mrb[88].mxu1 %vm1963_vm13, %v3639_v45  ;;  %v2705_v45 = vld [vmem:[%s5585_s12 + $0x58] sm:$0xff] }
 0x78b   :  { %3386 = vmatprep.mubr.msk.bf16.mxu1 %vm1963_vm13, %v3640_v37 }
 0x792   :  { %3387 = vmatmul.mubr.msk.bf16.gmra.mrb[92].mxu1 %vm1963_vm13, %v3641_v33  ;;  %v3557_v33 = vpack.c.bf16 %v2705_v45, %v2704_v43 }
 0x793   :  { %3390 = vmatprep.mubr.msk.bf16.mxu1 %vm1963_vm13, %v3642_v50  ;;  %v2706_v50 = vld [vmem:[%s5585_s12 + $0x60] sm:$0xff] }
 0x794   :  { %3558 = vmatprep.subr.bf16.mxu0 %v3557_v33 }
 0x795   :  { %3560 = vmatpush3.bf16.msra.mxu0 %v3557_v33 }
 0x79a   :  { %3391 = vmatmul.mubr.msk.bf16.gmra.mrb[96].mxu1 %vm1963_vm13, %v3643_v53  ;;  %v2707_v53 = vld [vmem:[%s5585_s12 + $0x68] sm:$0xff] }
 0x79b   :  { %3394 = vmatprep.mubr.msk.bf16.mxu1 %vm1963_vm13, %v3644_v41  ;;  %v3561_v41 = vpack.c.bf16 %v2707_v53, %v2706_v50 }
 0x79d   :  { %3562 = vmatprep.subr.bf16.mxu0 %v3561_v41 }
 0x79e   :  { %3564 = vmatpush3.bf16.msra.mxu0 %v3561_v41 }
 0x7a2   :  { %3395 = vmatmul.mubr.msk.bf16.gmra.mrb[100].mxu1 %vm1963_vm13, %v3645_v55 }
 0x7a3   :  { %3398 = vmatprep.mubr.msk.bf16.mxu1 %vm1963_vm13, %v3646_v22 }
 0x7aa   :  { %3399 = vmatmul.mubr.msk.bf16.gmra.mrb[104].mxu1 %vm1963_vm13, %v3647_v20 }
 0x7ab   :  { %3402 = vmatprep.mubr.msk.bf16.mxu1 %vm1963_vm13, %v3648_v46  ;;  %v2708_v46 = vld [vmem:[%s5585_s12 + $0x70] sm:$0xff] }
 0x7b2   :  { %3403 = vmatmul.mubr.msk.bf16.gmra.mrb[108].mxu1 %vm1963_vm13, %v3649_v63  ;;  %v2709_v63 = vld [vmem:[%s5585_s12 + $0x78] sm:$0xff] }
 0x7b3   :  { %3406 = vmatprep.mubr.msk.bf16.mxu1 %vm1963_vm13, %v3650_v0 }
 0x7ba   :  { %3407 = vmatmul.mubr.msk.bf16.gmra.mrb[112].mxu1 %vm1963_vm13, %v3651_v10  ;;  %v3565_v10 = vpack.c.bf16 %v2709_v63, %v2708_v46 }
 0x7bc   :  { %3566 = vmatprep.subr.bf16.mxu0 %v3565_v10 }
 0x7bd   :  { %3568 = vmatpush3.bf16.msra.mxu0 %v3565_v10 }
 0x84d   :  { %v3376_v36 = vpop.f32.mrb[80].mxu1 }
 0x84e   :  { %2566 = vrot.lane.b32.xlu1 %v3376_v36, %s3663_s19  ;;  %v2419_v8 = vpop.f32.mrb[81].mxu1 }
 0x84f   :  { %v3377_v52 = vpop.f32.mrb[82].mxu1 }
 0x850   :  { %2568 = vrot.lane.b32.xlu0 %v3377_v52, %s3663_s19  ;;  %v2422_v60 = vpop.f32.mrb[83].mxu1  ;;  %v2710_v52 = vld [vmem:[%s5586_s10] sm:$0xff] }
 0x852   :  { %2562 = vrot.lane.b32.xlu1 %v2419_v8, %s3663_s19 }
 0x855   :  { %v3380_v2 = vpop.f32.mrb[84].mxu1 }
 0x856   :  { %2564 = vrot.lane.b32.xlu1 %v2422_v60, %s3663_s19  ;;  %2582 = vrot.lane.b32.xlu0 %v3380_v2, %s3664_s28  ;;  %v2435_v18 = vpop.f32.mrb[85].mxu1 }
 0x857   :  { %v3381_v23 = vpop.f32.mrb[86].mxu1 }
 0x858   :  { %v2438_v42 = vpop.f32.mrb[87].mxu1 }
 0x85a   :  { %2578 = vrot.lane.b32.xlu0 %v2435_v18, %s3664_s28  ;;  %2584 = vrot.lane.b32.xlu1 %v3381_v23, %s3664_s28  ;;  %v2712_v18 = vld [vmem:[%s5586_s10 + $0x10] sm:$0xff]  ;;  %v2931_v23 = vld [vmem:[%s5587_s15] sm:$0xff] }
 0x85d   :  { %v3384_v21 = vpop.f32.mrb[88].mxu1 }
 0x85e   :  { %2580 = vrot.lane.b32.xlu0 %v2438_v42, %s3664_s28  ;;  %2598 = vrot.lane.b32.xlu1 %v3384_v21, %s3665_s4  ;;  %v2451_v44 = vpop.f32.mrb[89].mxu1  ;;  %v2711_v42 = vld [vmem:[%s5586_s10 + $0x8] sm:$0xff]  ;;  %v2713_v21 = vld [vmem:[%s5586_s10 + $0x18] sm:$0xff] }
 0x85f   :  { %v3385_v34 = vpop.f32.mrb[90].mxu1 }
 0x860   :  { %v2454_v1 = vpop.f32.mrb[91].mxu1 }
 0x862   :  { %2594 = vrot.lane.b32.xlu1 %v2451_v44, %s3665_s4  ;;  %2600 = vrot.lane.b32.xlu0 %v3385_v34, %s3665_s4  ;;  %v2932_v44 = vld [vmem:[%s5587_s15 + $0x8] sm:$0x3]  ;;  %v2828_v34 = vld [vmem:[%s5588_s13] sm:$0xff] }
 0x865   :  { %v3388_v38 = vpop.f32.mrb[92].mxu1 }
 0x866   :  { %2596 = vrot.lane.b32.xlu0 %v2454_v1, %s3665_s4  ;;  %2614 = vrot.lane.b32.xlu1 %v3388_v38, %s3656_s29  ;;  %v2467_v5 = vpop.f32.mrb[93].mxu1  ;;  %v2829_v1 = vld [vmem:[%s5588_s13 + $0x8] sm:$0xff] }
 0x867   :  { %v3389_v13 = vpop.f32.mrb[94].mxu1  ;;  %v3569_v38 = vpack.c.bf16 %v2829_v1, %v2828_v34 }
 0x868   :  { %v2470_v35 = vpop.f32.mrb[95].mxu1 }
 0x869   :  { %3570 = vmatprep.subr.bf16.mxu1 %v3569_v38 }
 0x86a   :  { %2610 = vrot.lane.b32.xlu1 %v2467_v5, %s3656_s29  ;;  %2612 = vrot.lane.b32.xlu0 %v2470_v35, %s3656_s29 }
 0x86b   :  { %3572 = vmatpush3.bf16.msra.mxu1 %v3569_v38 }
 0x86d   :  { %v5407_v58 = vpop.f32.mrb[96].mxu1 }
 0x86e   :  { %2616 = vrot.lane.b32.xlu1 %v3389_v13, %s3656_s29  ;;  %v5410_v40 = vpop.f32.mrb[97].mxu1 }
 0x86f   :  { %v5412_v16 = vpop.f32.mrb[98].mxu1 }
 0x870   :  { %v5420_v31 = vpop.f32.mrb[99].mxu1 }
 0x875   :  { %v3396_v54 = vpop.f32.mrb[100].mxu1 }
 0x876   :  { %2634 = vrot.lane.b32.xlu1 %v3396_v54, %s3657_s0  ;;  %v2499_v62 = vpop.f32.mrb[101].mxu1 }
 0x877   :  { %2630 = vrot.lane.b32.xlu0 %v2499_v62, %s3657_s0  ;;  %v3397_v3 = vpop.f32.mrb[102].mxu1 }
 0x878   :  { %v2502_v59 = vpop.f32.mrb[103].mxu1 }
 0x87a   :  { %2636 = vrot.lane.b32.xlu1 %v3397_v3, %s3657_s0 }
 0x87b   :  { %2632 = vrot.lane.b32.xlu0 %v2502_v59, %s3657_s0 }
 0x87d   :  { %v3400_v49 = vpop.f32.mrb[104].mxu1 }
 0x87e   :  { %2650 = vrot.lane.b32.xlu1 %v3400_v49, %s3666_s8  ;;  %v2515_v28 = vpop.f32.mrb[105].mxu1 }
 0x87f   :  { %v3401_v57 = vpop.f32.mrb[106].mxu1 }
 0x880   :  { %v2518_v37 = vpop.f32.mrb[107].mxu1 }
 0x881   :  { %2648 = vrot.lane.b32.xlu0 %v2518_v37, %s3666_s8 }
 0x882   :  { %2646 = vrot.lane.b32.xlu1 %v2515_v28, %s3666_s8 }
 0x885   :  { %v3404_v55 = vpop.f32.mrb[108].mxu1 }
 0x886   :  { %2652 = vrot.lane.b32.xlu1 %v3401_v57, %s3666_s8  ;;  %v2531_v22 = vpop.f32.mrb[109].mxu1 }
 0x887   :  { %2662 = vrot.lane.b32.xlu0 %v2531_v22, %s3667_s9  ;;  %v3405_v20 = vpop.f32.mrb[110].mxu1 }
 0x888   :  { %v2534_v0 = vpop.f32.mrb[111].mxu1 }
 0x88a   :  { %2666 = vrot.lane.b32.xlu1 %v3404_v55, %s3667_s9 }
 0x88b   :  { %2668 = vrot.lane.b32.xlu0 %v3405_v20, %s3667_s9 }
 0x88d   :  { %v3408_v36 = vpop.f32.mrb[112].mxu1 }
 0x88e   :  { %2682 = vrot.lane.b32.xlu1 %v3408_v36, %s3668_s20  ;;  %v2547_v8 = vpop.f32.mrb[113].mxu1 }
 0x88f   :  { %2664 = vrot.lane.b32.xlu0 %v2534_v0, %s3667_s9  ;;  %v3409_v60 = vpop.f32.mrb[114].mxu1 }
 0x890   :  { %v2550_v2 = vpop.f32.mrb[115].mxu1 }
 0x892   :  { %2716 = vperm.xlu1 %3603, %v2710_v52  }
 0x893   :  { %2678 = vrot.lane.b32.xlu0 %v2547_v8, %s3668_s20 }
 0x896   :  { %2726 = vperm.xlu1 %3603, %v2712_v18  }
 0x897   :  { %2680 = vrot.lane.b32.xlu0 %v2550_v2, %s3668_s20 }
 0x89a   :  { %2935 = vperm.xlu1 %3603, %v2931_v23  }
 0x89b   :  { %2684 = vrot.lane.b32.xlu0 %v3409_v60, %s3668_s20 }
 0x89f   :  { %2721 = vperm.xlu0 %3602, %v2711_v42  }
 0x8a3   :  { %2731 = vperm.xlu0 %3602, %v2713_v21  }
 0x8a7   :  { %2940 = vperm.xlu0 %3602, %v2932_v44  }
 0x8c0   :  { %v2567_v5 = vpop.permute.xlu1 %2566 }
 0x8c1   :  { %v2572_v46 = vmul.f32 %v5260_v26, %v2567_v5 }
 0x8c2   :  { %v2569_v35 = vpop.permute.xlu0 %2568 }
 0x8c3   :  { %v2573_v52 = vmul.f32 %v5260_v26, %v2569_v35 }
 0x8c4   :  { %v2563_v13 = vpop.permute.xlu1 %2562 }
 0x8c5   :  { %v2570_v57 = vmul.f32 %v5260_v26, %v2563_v13 }
 0x8c8   :  { %v2565_v39 = vpop.permute.xlu1 %2564  ;;  %v2583_v29 = vpop.permute.xlu0 %2582 }
 0x8c9   :  { %v2588_v50 = vmul.f32 %v5257_v7, %v2583_v29  ;;  %v2571_v41 = vmul.f32 %v5260_v26, %v2565_v39 }
 0x8cb   :  { %v2592_v60 = vadd.f32 %v2588_v50, %v2572_v46 }
 0x8cc   :  { %v2585_v61 = vpop.permute.xlu1 %2584  ;;  %v2579_v27 = vpop.permute.xlu0 %2578 }
 0x8cd   :  { %v2586_v17 = vmul.f32 %v5257_v7, %v2579_v27  ;;  %v2589_v63 = vmul.f32 %v5257_v7, %v2585_v61 }
 0x8cf   :  { %v2590_v45 = vadd.f32 %v2586_v17, %v2570_v57  ;;  %v2593_v44 = vadd.f32 %v2589_v63, %v2573_v52 }
 0x8d0   :  { %v2599_v14 = vpop.permute.xlu1 %2598  ;;  %v2581_v12 = vpop.permute.xlu0 %2580 }
 0x8d1   :  { %v2587_v37 = vmul.f32 %v5257_v7, %v2581_v12  ;;  %v2604_v0 = vmul.f32 %v5263_v6, %v2599_v14 }
 0x8d3   :  { %v2591_v10 = vadd.f32 %v2587_v37, %v2571_v41  ;;  %v2608_v34 = vadd.f32 %v2604_v0, %v2592_v60 }
 0x8d4   :  { %v2595_v25 = vpop.permute.xlu1 %2594  ;;  %v2601_v24 = vpop.permute.xlu0 %2600 }
 0x8d5   :  { %v2602_v43 = vmul.f32 %v5263_v6, %v2595_v25  ;;  %v2605_v23 = vmul.f32 %v5263_v6, %v2601_v24 }
 0x8d7   :  { %v2606_v55 = vadd.f32 %v2602_v43, %v2590_v45  ;;  %v2609_v39 = vadd.f32 %v2605_v23, %v2593_v44 }
 0x8d8   :  { %v2615_v4 = vpop.permute.xlu1 %2614  ;;  %v2597_v62 = vpop.permute.xlu0 %2596 }
 0x8d9   :  { %v2603_v22 = vmul.f32 %v5263_v6, %v2597_v62  ;;  %v2620_v2 = vmul.f32 %v5269_v47, %v2615_v4 }
 0x8db   :  { %v2607_v42 = vadd.f32 %v2603_v22, %v2591_v10  ;;  %v2624_v26 = vadd.f32 %v2620_v2, %v2608_v34 }
 0x8dc   :  { %v2611_v54 = vpop.permute.xlu1 %2610  ;;  %v2613_v32 = vpop.permute.xlu0 %2612 }
 0x8dd   :  { %v2618_v33 = vmul.f32 %v5269_v47, %v2611_v54  ;;  %v2619_v8 = vmul.f32 %v5269_v47, %v2613_v32 }
 0x8df   :  { %v2622_v36 = vadd.f32 %v2618_v33, %v2606_v55  ;;  %v2623_v7 = vadd.f32 %v2619_v8, %v2607_v42 }
 0x8e0   :  { %v2617_v3 = vpop.permute.xlu1 %2616 }
 0x8e1   :  { %v2621_v1 = vmul.f32 %v5269_v47, %v2617_v3  ;;  %v2626_v38 = vadd.f32 %v2622_v36, %v5410_v40  ;;  %v2627_v25 = vadd.f32 %v2623_v7, %v5420_v31  ;;  %v2628_v40 = vadd.f32 %v5407_v58, %v2624_v26 }
 0x8e3   :  { %v2625_v14 = vadd.f32 %v2621_v1, %v2609_v39  ;;  %v2929_v1 = vld [vmem:[%s5590_s14] sm:$0xff] }
 0x8e5   :  { %v2629_v17 = vadd.f32 %v5412_v16, %v2625_v14 }
 0x8e8   :  { %v2635_v51 = vpop.permute.xlu1 %2634 }
 0x8e9   :  { %v2631_v59 = vpop.permute.xlu0 %2630  ;;  %v2640_v27 = vmul.f32 %v5289_v15, %v2635_v51 }
 0x8ea   :  { %v2638_v21 = vmul.f32 %v5289_v15, %v2631_v59 }
 0x8ec   :  { %v2637_v19 = vpop.permute.xlu1 %2636  ;;  %v2642_v29 = vadd.f32 %v2638_v21, %v2626_v38 }
 0x8ed   :  { %v2633_v56 = vpop.permute.xlu0 %2632  ;;  %v2641_v4 = vmul.f32 %v5289_v15, %v2637_v19 }
 0x8ee   :  { %v2639_v61 = vmul.f32 %v5289_v15, %v2633_v56  ;;  %v2644_v56 = vadd.f32 %v2640_v27, %v2628_v40 }
 0x8ef   :  { %v2645_v57 = vadd.f32 %v2641_v4, %v2629_v17 }
 0x8f0   :  { %v2651_v11 = vpop.permute.xlu1 %2650  ;;  %v2643_v62 = vadd.f32 %v2639_v61, %v2627_v25 }
 0x8f1   :  { %v2656_v24 = vmul.f32 %v5292_v30, %v2651_v11 }
 0x8f3   :  { %v2649_v28 = vpop.permute.xlu0 %2648  ;;  %v2660_v15 = vadd.f32 %v2656_v24, %v2644_v56 }
 0x8f4   :  { %v2647_v49 = vpop.permute.xlu1 %2646  ;;  %v2655_v47 = vmul.f32 %v5292_v30, %v2649_v28 }
 0x8f5   :  { %v2654_v5 = vmul.f32 %v5292_v30, %v2647_v49 }
 0x8f6   :  { %v2659_v49 = vadd.f32 %v2655_v47, %v2643_v62 }
 0x8f7   :  { %v2658_v12 = vadd.f32 %v2654_v5, %v2642_v29  ;;  %v2930_v29 = vld [vmem:[%s5590_s14 + $0x8] sm:$0x3] }
 0x8f8   :  { %v2653_v20 = vpop.permute.xlu1 %2652 }
 0x8f9   :  { %v2663_v53 = vpop.permute.xlu0 %2662  ;;  %v2657_v58 = vmul.f32 %v5292_v30, %v2653_v20  ;;  %v2831_v20 = vld [vmem:[%s5588_s13 + $0x18] sm:$0xff] }
 0x8fa   :  { %v2670_v6 = vmul.f32 %v5298_v48, %v2663_v53 }
 0x8fb   :  { %v2661_v50 = vadd.f32 %v2657_v58, %v2645_v57 }
 0x8fc   :  { %v2667_v13 = vpop.permute.xlu1 %2666  ;;  %v2674_v3 = vadd.f32 %v2670_v6, %v2658_v12 }
 0x8fd   :  { %v2669_v18 = vpop.permute.xlu0 %2668  ;;  %v2672_v31 = vmul.f32 %v5298_v48, %v2667_v13 }
 0x8fe   :  { %v2673_v43 = vmul.f32 %v5298_v48, %v2669_v18 }
 0x8ff   :  { %v2676_v33 = vadd.f32 %v2672_v31, %v2660_v15 }
 0x900   :  { %v2683_v32 = vpop.permute.xlu1 %2682  ;;  %v2677_v55 = vadd.f32 %v2673_v43, %v2661_v50 }
 0x901   :  { %v2665_v35 = vpop.permute.xlu0 %2664  ;;  %v2688_v19 = vmul.f32 %v5311_v9, %v2683_v32 }
 0x902   :  { %v2671_v59 = vmul.f32 %v5298_v48, %v2665_v35  ;;  %v2830_v48 = vld [vmem:[%s5588_s13 + $0x10] sm:$0xff] }
 0x903   :  { %v2692_v41 = vadd.f32 %v2688_v19, %v2676_v33  ;;  %v3573_v46 = vpack.c.bf16 %v2831_v20, %v2830_v48 }
 0x904   :  { %v2675_v45 = vadd.f32 %v2671_v59, %v2659_v49 }
 0x905   :  { %v2679_v54 = vpop.permute.xlu0 %2678  ;;  %3574 = vmatprep.subr.bf16.mxu1 %v3573_v46 }
 0x906   :  { %v2686_v51 = vmul.f32 %v5311_v9, %v2679_v54  ;;  %3576 = vmatpush3.bf16.msra.mxu1 %v3573_v46 }
 0x908   :  { %v2690_v28 = vadd.f32 %v2686_v51, %v2674_v3 }
 0x909   :  { %v2681_v11 = vpop.permute.xlu0 %2680 }
 0x90a   :  { %v2687_v37 = vmul.f32 %v5311_v9, %v2681_v11  ;;  %3442 = vmatprep.mubr.f32.mxu0 %v2690_v28 }
 0x90c   :  { %v2691_v53 = vadd.f32 %v2687_v37, %v2675_v45 }
 0x90d   :  { %v2685_v16 = vpop.permute.xlu0 %2684 }
 0x90e   :  { %v2689_v30 = vmul.f32 %v5311_v9, %v2685_v16  ;;  %3443 = vmatmul.mubr.f32.vlgmr.msra.gmra.mrb[116].mxu0 %v2691_v53 }
 0x90f   :  { %3445 = vmatprep.mubr.f32.mxu0 %v2692_v41 }
 0x910   :  { %v2693_v22 = vadd.f32 %v2689_v30, %v2677_v55 }
 0x911   :  { %v2717_v0 = vpop.permute.xlu1 %2716 }
 0x912   :  { %3446 = vmatmul.mubr.f32.gmra.mrb[118].mxu0 %v2693_v22 }
 0x913   :  { %3470 = vmatprep.mubr.msk.f32.mxu0 %vm2823_vm8, %v2929_v1 }
 0x915   :  { %v2727_v23 = vpop.permute.xlu1 %2726 }
 0x919   :  { %v2936_v27 = vpop.permute.xlu1 %2935 }
 0x91e   :  { %v2722_v63 = vpop.permute.xlu0 %2721 }
 0x922   :  { %v2732_v60 = vpop.permute.xlu0 %2731 }
 0x926   :  { %v2941_v61 = vpop.permute.xlu0 %2940 }
 0x9e1   :  { %v3444_v10 = vpop.f32.mrb[116].mxu0 }
 0x9e2   :  { %v2806_v36 = vadd.f32 %v3444_v10, %v2722_v63  ;;  %v2800_v9 = vpop.f32.mrb[117].mxu0 }
 0x9e3   :  { %v2801_v8 = vadd.f32 %v2800_v9, %v2717_v0 }
 0x9e4   :  { %v2820_v52 = vmax.f32 %v2806_v36, 0.0 }
 0x9e5   :  { %v2819_v2 = vmax.f32 %v2801_v8, 0.0  ;;  %v3447_v18 = vpop.f32.mrb[118].mxu0 }
 0x9e6   :  { %2825 = vst.msk [vmem:[%s5589_s17 + $0x8] sm:$0xff] %vm2823_vm8, %v2820_v52  ;;  %v2816_v42 = vadd.f32 %v3447_v18, %v2732_v60  ;;  %v2810_v21 = vpop.f32.mrb[119].mxu0 }
 0x9e7   :  { %2824 = vst.msk [vmem:[%s5589_s17] sm:$0xff] %vm2823_vm8, %v2819_v2  ;;  %v2811_v44 = vadd.f32 %v2810_v21, %v2727_v23  ;;  %3456 = vmatprep.mubr.msk.f32.mxu1 %vm2823_vm8, %v2819_v2 }
 0x9e8   :  { %v2822_v34 = vmax.f32 %v2816_v42, 0.0  ;;  %3457 = vmatmul.mubr.msk.f32.vlgmr.msra.gmra.mrb[116].mxu1 %vm2823_vm8, %v2820_v52 }
 0x9e9   :  { %v2821_v7 = vmax.f32 %v2811_v44, 0.0 }
 0x9ea   :  { %2827 = vst.msk [vmem:[%s5589_s17 + $0x18] sm:$0xff] %vm2823_vm8, %v2822_v34 }
 0x9eb   :  { %2826 = vst.msk [vmem:[%s5589_s17 + $0x10] sm:$0xff] %vm2823_vm8, %v2821_v7  ;;  %3459 = vmatprep.mubr.msk.f32.mxu1 %vm2823_vm8, %v2821_v7 }
 0x9ec   :  { %3460 = vmatmul.mubr.msk.f32.gmra.mrb[118].mxu1 %vm2823_vm8, %v2822_v34 }
 0xabb   :  { %v3458_v38 = vpop.f32.mrb[116].mxu1 }
 0xabc   :  { %v2910_v5 = vpop.f32.mrb[117].mxu1 }
 0xabd   :  { %v3577_v13 = vpack.c.bf16 %v3458_v38, %v2910_v5 }
 0xabf   :  { %v3461_v26 = vpop.f32.mrb[118].mxu1  ;;  %3578 = vmatprep.subr.bf16.mxu0 %v3577_v13 }
 0xac0   :  { %v2920_v35 = vpop.f32.mrb[119].mxu1  ;;  %3580 = vmatpush3.bf16.msra.mxu0 %v3577_v13 }
 0xac1   :  { %v3581_v39 = vpack.c.bf16 %v3461_v26, %v2920_v35 }
 0xac3   :  { %3582 = vmatprep.subr.bf16.mxu0 %v3581_v39 }
 0xac4   :  { %3584 = vmatpush3.bf16.msra.mxu0 %v3581_v39 }
 0xac7   :  { %3471 = vmatmul.mubr.msk.f32.vlgmr.msra.gmra.mrb[120].mxu0 %vm2823_vm8, %v2930_v29 }
 0xb9a   :  { %v3472_v6 = vpop.f32.mrb[120].mxu0 }
 0xb9b   :  { %v3021_v14 = vadd.f32 %v3472_v6, %v2941_v61  ;;  %v3015_v25 = vpop.f32.mrb[121].mxu0 }
 0xb9c   :  { %v3016_v47 = vadd.f32 %v3015_v25, %v2936_v27 }
 0xb9d   :  { %3027 = vst.msk [vmem:[%s5591_s16 + $0x8] sm:$0x3] %vm3026_vm12, %v3021_v14 }
 0xb9e   :  { %3025 = vst.msk [vmem:[%s5591_s16] sm:$0xff] %vm3024_vm15, %v3016_v47 }

</bundles_post_ra>
